<compile_context>
chip_gen: v7x
topology: tpu7x:2x2x1
jax: 0.10.0
libtpu: 0.0.40
codegen_flags: <defaults>
</compile_context>

<pallas_src>
import functools

import jax
import jax.numpy as jnp
from jax.experimental import pallas as pl
from jax.experimental.pallas import tpu as pltpu


def _vmem_capacity_bytes():
    # v5e/v6e: 128 MiB per TensorCore; v7x: 64 MiB. Query when available, otherwise be
    # conservative so we never request more scoped VMEM than physically exists.
    try:
        return int(pltpu.get_tpu_info().vmem_capacity_bytes)
    except Exception:
        return 64 << 20


def _plora_mlp_kernel(flags_ref,                        # SMEM int32[num_token_tiles]
                      x_ref, m_ref,                     # (tm,H) bf16, (tm,1) f32
                      w1_ref, a1_ref, b1_ref,           # (1,H,tn) (H,R) (1,R,tn) bf16
                      w3_ref, a3_ref, b3_ref,           # (1,H,tn) (H,R) (1,R,tn) bf16
                      w2_ref, a2_ref, b2_ref,           # (tn,H) (tn,R) (R,H)     bf16
                      o_ref,                            # (tm,H) f32 (accumulator)
                      lo1_ref, lo3_ref,                 # (tm,R) bf16 scratch
                      acc_lo2_ref,                      # (tm,R) f32 scratch
                      *, lora_scaling):
    i = pl.program_id(0)
    k = pl.program_id(1)
    nk = pl.num_programs(1)
    have_img = flags_ref[i] != 0

    xb = x_ref[...]                                     # bf16 (tm, H)
    m_scaled = m_ref[...] * lora_scaling                # f32  (tm, 1)

    # ---- once per token tile: rank-R LoRA left factors (mask + scaling folded in) ----
    # For text-only tiles the factors are zeroed instead of computed; every later use
    # is a dot against zeros, so the unconditional B-matmuls below stay exact.
    @pl.when(jnp.logical_and(k == 0, have_img))
    def _lora_factors():
        lo1_ref[...] = (jnp.dot(xb, a1_ref[...], preferred_element_type=jnp.float32)
                        * m_scaled).astype(lo1_ref.dtype)
        lo3_ref[...] = (jnp.dot(xb, a3_ref[...], preferred_element_type=jnp.float32)
                        * m_scaled).astype(lo3_ref.dtype)

    @pl.when(jnp.logical_and(k == 0, jnp.logical_not(have_img)))
    def _zero_factors():
        lo1_ref[...] = jnp.zeros_like(lo1_ref)
        lo3_ref[...] = jnp.zeros_like(lo3_ref)

    @pl.when(k == 0)
    def _init_lo2():
        acc_lo2_ref[...] = jnp.zeros_like(acc_lo2_ref)

    # ---- gate / up projections for this I slice (base + LoRA), no scratch round-trip ----
    h1 = (jnp.dot(xb, w1_ref[0], preferred_element_type=jnp.float32)
          + jnp.dot(lo1_ref[...], b1_ref[0], preferred_element_type=jnp.float32))
    h3 = (jnp.dot(xb, w3_ref[0], preferred_element_type=jnp.float32)
          + jnp.dot(lo3_ref[...], b3_ref[0], preferred_element_type=jnp.float32))

    g = (h1 * jax.nn.sigmoid(h1)) * h3                  # SiLU(h1) * h3, f32 epilogue
    gb = g.astype(jnp.bfloat16)

    # ---- down projection: accumulate directly into the resident f32 output block ----
    contrib = jnp.dot(gb, w2_ref[...], preferred_element_type=jnp.float32)

    @pl.when(k == 0)
    def _o_init():
        o_ref[...] = contrib

    @pl.when(k != 0)
    def _o_acc():
        o_ref[...] += contrib

    # Rank-R w2-LoRA accumulator; skipped entirely for text-only tiles.
    @pl.when(have_img)
    def _lora_down_acc():
        acc_lo2_ref[...] += jnp.dot(gb, a2_ref[...], preferred_element_type=jnp.float32)

    @pl.when(jnp.logical_and(k == nk - 1, have_img))
    def _lora_down_write():
        # TODO(synk): lo2/lo1/lo3 bf16 rank-R intermediates sum over H/I; re-validate
        # numerics at production H=4096 / I=14336 / R=256.
        lo2 = (acc_lo2_ref[...] * m_scaled).astype(jnp.bfloat16)
        o_ref[...] += jnp.dot(lo2, b2_ref[...], preferred_element_type=jnp.float32)


def internlm2_mlp_plora(x, im_mask, params, *, lora_scaling=1.0, tm=256, tn=256,
                        weight_dtype=jnp.bfloat16):
    """x: (B, S, H), im_mask: (B, S) bool. Returns (B, S, H) in x.dtype."""
    B, S, H = x.shape
    I = params["w1"].shape[1]
    R = params["a1"].shape[1]
    assert I % tn == 0, "intermediate size must be a multiple of the I tile"
    assert tm % 8 == 0 and tn % 128 == 0, "tm/tn must respect the (8,128) vreg tiling"

    BS = B * S
    ntiles = pl.cdiv(BS, tm)
    BS_pad = ntiles * tm
    pad = BS_pad - BS
    nk = I // tn

    x2 = x.reshape(BS, H).astype(weight_dtype)
    m2 = im_mask.reshape(BS, 1).astype(jnp.float32)
    if pad:
        # Padded tokens have x=0, mask=0 -> output rows are zero and sliced off below.
        x2 = jnp.pad(x2, ((0, pad), (0, 0)))
        m2 = jnp.pad(m2, ((0, pad), (0, 0)))
    # Per-token-tile "tile contains at least one image token" flag (scalar prefetch -> SMEM).
    flags = jnp.any(m2.reshape(ntiles, tm) > 0.0, axis=1).astype(jnp.int32)

    p = {name: w.astype(weight_dtype) for name, w in params.items()}

    def col_block(w):
        # (D, I) -> (I//tn, D, tn): each streamed column block becomes one contiguous DMA.
        # TODO(synk): in production, pre-block weights once at load time, not per call.
        D = w.shape[0]
        return w.reshape(D, nk, tn).transpose(1, 0, 2)

    w1b, b1b = col_block(p["w1"]), col_block(p["b1"])
    w3b, b3b = col_block(p["w3"]), col_block(p["b3"])

    kernel = functools.partial(_plora_mlp_kernel, lora_scaling=float(lora_scaling))

    tok = lambda shape: pl.BlockSpec(shape, lambda i, k, fl: (i, 0))        # per-token tile
    blk = lambda shape: pl.BlockSpec(shape, lambda i, k, fl: (k, 0, 0))     # pre-blocked I stream
    row = lambda shape: pl.BlockSpec(shape, lambda i, k, fl: (k, 0))        # I-row stream
    res = lambda shape: pl.BlockSpec(shape, lambda i, k, fl: (0, 0),        # resident, 1-buffered
                                     pipeline_mode=pl.Buffered(1))

    bw = jnp.dtype(weight_dtype).itemsize
    # Explicit VMEM budget: double-buffered streamed blocks + single-buffered residents + scratch.
    streamed = 2 * (tm * H * bw                 # x
                    + tm * 4                    # mask (f32)
                    + 2 * H * tn * bw           # w1, w3 column blocks
                    + 2 * R * tn * bw           # b1, b3 column blocks
                    + tn * H * bw               # w2 row block
                    + tn * R * bw               # a2 row block
                    + tm * H * 4)               # output block (f32 accumulator)
    resident = 3 * H * R * bw                   # a1, a3, b2 (single-buffered)
    scratch = 2 * tm * R * bw + tm * R * 4      # lo1, lo3 (bf16), acc_lo2 (f32)
    cap = _vmem_capacity_bytes() - (8 << 20)    # leave headroom below physical VMEM
    vmem_limit = int(min(max(streamed + resident + scratch + (4 << 20), 32 << 20), cap))

    out2 = pl.pallas_call(
        kernel,
        out_shape=jax.ShapeDtypeStruct((BS_pad, H), jnp.float32),
        grid_spec=pltpu.PrefetchScalarGridSpec(
            num_scalar_prefetch=1,
            grid=(ntiles, nk),
            in_specs=[
                tok((tm, H)),       # x tile
                tok((tm, 1)),       # mask tile
                blk((1, H, tn)),    # w1 column block (contiguous)
                res((H, R)),        # Plora_A (w1), resident
                blk((1, R, tn)),    # Plora_B (w1) column block
                blk((1, H, tn)),    # w3 column block
                res((H, R)),        # Plora_A (w3), resident
                blk((1, R, tn)),    # Plora_B (w3) column block
                row((tn, H)),       # w2 row block (already contiguous)
                row((tn, R)),       # Plora_A (w2) row block
                res((R, H)),        # Plora_B (w2), resident
            ],
            out_specs=tok((tm, H)),
            scratch_shapes=[
                pltpu.VMEM((tm, R), weight_dtype),   # lo1 (masked rank-R factor, w1)
                pltpu.VMEM((tm, R), weight_dtype),   # lo3 (masked rank-R factor, w3)
                pltpu.VMEM((tm, R), jnp.float32),    # w2-LoRA rank-R accumulator
            ],
        ),
        compiler_params=pltpu.CompilerParams(
            dimension_semantics=("parallel", "arbitrary"),
            vmem_limit_bytes=vmem_limit,
        ),
    )(flags, x2, m2,
      w1b, p["a1"], b1b,
      w3b, p["a3"], b3b,
      p["w2"], p["a2"], p["b2"])

    return out2[:BS].reshape(B, S, H).astype(x.dtype)


def _reference(x, im_mask, params, lora_scaling=1.0):
    m = im_mask[..., None].astype(jnp.float32)

    def plora(inp, w, a, b):
        return inp @ w + m * ((inp @ a) @ b) * lora_scaling

    h1 = plora(x, params["w1"], params["a1"], params["b1"])
    h3 = plora(x, params["w3"], params["a3"], params["b3"])
    g = jax.nn.silu(h1) * h3
    return plora(g, params["w2"], params["a2"], params["b2"])


if __name__ == "__main__":
    # Small synthetic config consistent with InternLM2MLP + PLoRA(lora_r=256, lora_alpha=256).
    hidden_size = 128
    intermediate_size = 256
    lora_r = 256
    lora_alpha = 256
    lora_scaling = lora_alpha / lora_r      # = 1.0
    B, S = 2, 128

    key = jax.random.PRNGKey(0)
    ks = jax.random.split(key, 12)
    sc = 0.05

    # Weights stored as (in_features, out_features), i.e. transpose of nn.Linear's (out, in).
    params = {
        "w1": sc * jax.random.normal(ks[0], (hidden_size, intermediate_size), jnp.float32),
        "a1": sc * jax.random.normal(ks[1], (hidden_size, lora_r), jnp.float32),
        "b1": sc * jax.random.normal(ks[2], (lora_r, intermediate_size), jnp.float32),
        "w3": sc * jax.random.normal(ks[3], (hidden_size, intermediate_size), jnp.float32),
        "a3": sc * jax.random.normal(ks[4], (hidden_size, lora_r), jnp.float32),
        "b3": sc * jax.random.normal(ks[5], (lora_r, intermediate_size), jnp.float32),
        "w2": sc * jax.random.normal(ks[6], (intermediate_size, hidden_size), jnp.float32),
        "a2": sc * jax.random.normal(ks[7], (intermediate_size, lora_r), jnp.float32),
        "b2": sc * jax.random.normal(ks[8], (lora_r, hidden_size), jnp.float32),
    }

    x = jax.random.normal(ks[9], (B, S, hidden_size), jnp.float32)
    # im_mask: batch 0 has image tokens in its first half; batch 1 is text-only
    # (exercises both the LoRA path and the LoRA-skip path, one token tile each at tm=128).
    im_mask = jnp.zeros((B, S), jnp.bool_)
    im_mask = im_mask.at[0, : S // 2].set(True)

    out = internlm2_mlp_plora(x, im_mask, params, lora_scaling=lora_scaling,
                              tm=128, tn=128)
    out = jax.block_until_ready(out)

    ref = _reference(x, im_mask, params, lora_scaling=lora_scaling)
    assert out.shape == (B, S, hidden_size)
    # bf16 MXU inputs with f32 accumulation -> slightly looser tolerance vs f32 reference.
    assert jnp.allclose(out, ref, atol=3e-2, rtol=3e-2), "mismatch vs reference"

    print("KERNEL_OK")
</pallas_src>

<mosaic_0001>
module attributes {stable_mosaic.version = 11 : i64} {
  func.func @_plora_mlp_kernel(%arg0: i32, %arg1: i32, %arg2: memref<2xi32, #tpu.memory_space<smem>>, %arg3: memref<128x128xbf16, #tpu.memory_space<vmem>>, %arg4: memref<128x1xf32, #tpu.memory_space<vmem>>, %arg5: memref<1x128x128xbf16, #tpu.memory_space<vmem>>, %arg6: memref<128x256xbf16, #tpu.memory_space<vmem>>, %arg7: memref<1x256x128xbf16, #tpu.memory_space<vmem>>, %arg8: memref<1x128x128xbf16, #tpu.memory_space<vmem>>, %arg9: memref<128x256xbf16, #tpu.memory_space<vmem>>, %arg10: memref<1x256x128xbf16, #tpu.memory_space<vmem>>, %arg11: memref<128x128xbf16, #tpu.memory_space<vmem>>, %arg12: memref<128x256xbf16, #tpu.memory_space<vmem>>, %arg13: memref<256x128xbf16, #tpu.memory_space<vmem>>, %arg14: memref<128x128xf32, #tpu.memory_space<vmem>>, %arg15: memref<128x256xbf16, #tpu.memory_space<vmem>>, %arg16: memref<128x256xbf16, #tpu.memory_space<vmem>>, %arg17: memref<128x256xf32, #tpu.memory_space<vmem>>) attributes {dimension_semantics = [#tpu.dimension_semantics<parallel>, #tpu.dimension_semantics<arbitrary>], iteration_bounds = array<i64: 2, 2>, scalar_prefetch = 1 : i64, scratch_operands = 3 : i64, tpu.core_type = #tpu.core_type<tc>, window_params = [{transform_indices = @transform_0, window_bounds = array<i64: 128, 128>}, {transform_indices = @transform_1, window_bounds = array<i64: 128, 1>}, {transform_indices = @transform_2, window_bounds = array<i64: 1, 128, 128>}, {pipeline_mode = #tpu.pipeline_mode<synchronous>, transform_indices = @transform_3, window_bounds = array<i64: 128, 256>}, {transform_indices = @transform_4, window_bounds = array<i64: 1, 256, 128>}, {transform_indices = @transform_5, window_bounds = array<i64: 1, 128, 128>}, {pipeline_mode = #tpu.pipeline_mode<synchronous>, transform_indices = @transform_6, window_bounds = array<i64: 128, 256>}, {transform_indices = @transform_7, window_bounds = array<i64: 1, 256, 128>}, {transform_indices = @transform_8, window_bounds = array<i64: 128, 128>}, {transform_indices = @transform_9, window_bounds = array<i64: 128, 256>}, {pipeline_mode = #tpu.pipeline_mode<synchronous>, transform_indices = @transform_10, window_bounds = array<i64: 256, 128>}, {transform_indices = @transform_11, window_bounds = array<i64: 128, 128>}]} {
    %0 = arith.index_cast %arg0 : i32 to index
    %1 = memref.load %arg2[%0] : memref<2xi32, #tpu.memory_space<smem>>
    %c0_i32 = arith.constant 0 : i32
    %2 = arith.cmpi ne, %1, %c0_i32 : i32
    %c0 = arith.constant 0 : index
    %c0_0 = arith.constant 0 : index
    %3 = vector.load %arg3[%c0, %c0_0] : memref<128x128xbf16, #tpu.memory_space<vmem>>, vector<128x128xbf16>
    %c0_1 = arith.constant 0 : index
    %c0_2 = arith.constant 0 : index
    %4 = vector.load %arg4[%c0_1, %c0_2] : memref<128x1xf32, #tpu.memory_space<vmem>>, vector<128x1xf32>
    %cst = arith.constant 1.000000e+00 : f32
    %5 = vector.broadcast %cst : f32 to vector<128x1xf32>
    %6 = arith.mulf %4, %5 : vector<128x1xf32>
    %c0_i32_3 = arith.constant 0 : i32
    %7 = arith.cmpi eq, %arg1, %c0_i32_3 : i32
    %8 = arith.andi %7, %2 : i1
    %9 = arith.extui %8 : i1 to i32
    %c0_i32_4 = arith.constant 0 : i32
    %10 = arith.cmpi ne, %9, %c0_i32_4 : i32
    scf.if %10 {
      %c0_39 = arith.constant 0 : index
      %c0_40 = arith.constant 0 : index
      %57 = vector.load %arg6[%c0_39, %c0_40] : memref<128x256xbf16, #tpu.memory_space<vmem>>, vector<128x256xbf16>
      %cst_41 = arith.constant dense<0.000000e+00> : vector<128x256xf32>
      %58 = tpu.matmul %3, %57, %cst_41 {dimension_numbers = #tpu.dot_dimension_numbers<[1], [0], [0], [1], [0, 0, 1, 1], [], []>} : vector<128x128xbf16>, vector<128x256xbf16>, vector<128x256xf32> -> vector<128x256xf32>
      %59 = vector.broadcast %6 : vector<128x1xf32> to vector<128x256xf32>
      %60 = arith.mulf %58, %59 : vector<128x256xf32>
      %61 = arith.truncf %60 : vector<128x256xf32> to vector<128x256xbf16>
      %c0_42 = arith.constant 0 : index
      %c0_43 = arith.constant 0 : index
      %62 = vector.load %arg15[%c0_42, %c0_43] : memref<128x256xbf16, #tpu.memory_space<vmem>>, vector<128x256xbf16>
      tpu.vector_store %arg15[%c0_42, %c0_43], %61 {strides = array<i32>} : memref<128x256xbf16, #tpu.memory_space<vmem>>, vector<128x256xbf16>,
      %c0_44 = arith.constant 0 : index
      %c0_45 = arith.constant 0 : index
      %63 = vector.load %arg9[%c0_44, %c0_45] : memref<128x256xbf16, #tpu.memory_space<vmem>>, vector<128x256xbf16>
      %cst_46 = arith.constant dense<0.000000e+00> : vector<128x256xf32>
      %64 = tpu.matmul %3, %63, %cst_46 {dimension_numbers = #tpu.dot_dimension_numbers<[1], [0], [0], [1], [0, 0, 1, 1], [], []>} : vector<128x128xbf16>, vector<128x256xbf16>, vector<128x256xf32> -> vector<128x256xf32>
      %65 = vector.broadcast %6 : vector<128x1xf32> to vector<128x256xf32>
      %66 = arith.mulf %64, %65 : vector<128x256xf32>
      %67 = arith.truncf %66 : vector<128x256xf32> to vector<128x256xbf16>
      %c0_47 = arith.constant 0 : index
      %c0_48 = arith.constant 0 : index
      %68 = vector.load %arg16[%c0_47, %c0_48] : memref<128x256xbf16, #tpu.memory_space<vmem>>, vector<128x256xbf16>
      tpu.vector_store %arg16[%c0_47, %c0_48], %67 {strides = array<i32>} : memref<128x256xbf16, #tpu.memory_space<vmem>>, vector<128x256xbf16>,
    } else {
    }
    %c0_i32_5 = arith.constant 0 : i32
    %11 = arith.cmpi eq, %arg1, %c0_i32_5 : i32
    %true = arith.constant true
    %12 = arith.xori %2, %true : i1
    %13 = arith.andi %11, %12 : i1
    %14 = arith.extui %13 : i1 to i32
    %c0_i32_6 = arith.constant 0 : i32
    %15 = arith.cmpi ne, %14, %c0_i32_6 : i32
    scf.if %15 {
      %cst_39 = arith.constant 0.000000e+00 : bf16
      %57 = vector.broadcast %cst_39 : bf16 to vector<128x256xbf16>
      %c0_40 = arith.constant 0 : index
      %c0_41 = arith.constant 0 : index
      %58 = vector.load %arg15[%c0_40, %c0_41] : memref<128x256xbf16, #tpu.memory_space<vmem>>, vector<128x256xbf16>
      tpu.vector_store %arg15[%c0_40, %c0_41], %57 {strides = array<i32>} : memref<128x256xbf16, #tpu.memory_space<vmem>>, vector<128x256xbf16>,
      %cst_42 = arith.constant 0.000000e+00 : bf16
      %59 = vector.broadcast %cst_42 : bf16 to vector<128x256xbf16>
      %c0_43 = arith.constant 0 : index
      %c0_44 = arith.constant 0 : index
      %60 = vector.load %arg16[%c0_43, %c0_44] : memref<128x256xbf16, #tpu.memory_space<vmem>>, vector<128x256xbf16>
      tpu.vector_store %arg16[%c0_43, %c0_44], %59 {strides = array<i32>} : memref<128x256xbf16, #tpu.memory_space<vmem>>, vector<128x256xbf16>,
    } else {
    }
    %c0_i32_7 = arith.constant 0 : i32
    %16 = arith.cmpi eq, %arg1, %c0_i32_7 : i32
    %17 = arith.extui %16 : i1 to i32
    %c0_i32_8 = arith.constant 0 : i32
    %18 = arith.cmpi ne, %17, %c0_i32_8 : i32
    scf.if %18 {
      %cst_39 = arith.constant 0.000000e+00 : f32
      %57 = vector.broadcast %cst_39 : f32 to vector<128x256xf32>
      %c0_40 = arith.constant 0 : index
      %c0_41 = arith.constant 0 : index
      %58 = vector.load %arg17[%c0_40, %c0_41] : memref<128x256xf32, #tpu.memory_space<vmem>>, vector<128x256xf32>
      tpu.vector_store %arg17[%c0_40, %c0_41], %57 {strides = array<i32>} : memref<128x256xf32, #tpu.memory_space<vmem>>, vector<128x256xf32>,
    } else {
    }
    %c0_9 = arith.constant 0 : index
    %c0_10 = arith.constant 0 : index
    %c0_11 = arith.constant 0 : index
    %19 = vector.load %arg5[%c0_9, %c0_10, %c0_11] : memref<1x128x128xbf16, #tpu.memory_space<vmem>>, vector<1x128x128xbf16>
    %20 = vector.shape_cast %19 : vector<1x128x128xbf16> to vector<128x128xbf16>
    %cst_12 = arith.constant dense<0.000000e+00> : vector<128x128xf32>
    %21 = tpu.matmul %3, %20, %cst_12 {dimension_numbers = #tpu.dot_dimension_numbers<[1], [0], [0], [1], [0, 0, 1, 1], [], []>} : vector<128x128xbf16>, vector<128x128xbf16>, vector<128x128xf32> -> vector<128x128xf32>
    %c0_13 = arith.constant 0 : index
    %c0_14 = arith.constant 0 : index
    %22 = vector.load %arg15[%c0_13, %c0_14] : memref<128x256xbf16, #tpu.memory_space<vmem>>, vector<128x256xbf16>
    %c0_15 = arith.constant 0 : index
    %c0_16 = arith.constant 0 : index
    %c0_17 = arith.constant 0 : index
    %23 = vector.load %arg7[%c0_15, %c0_16, %c0_17] : memref<1x256x128xbf16, #tpu.memory_space<vmem>>, vector<1x256x128xbf16>
    %24 = vector.shape_cast %23 : vector<1x256x128xbf16> to vector<256x128xbf16>
    %cst_18 = arith.constant dense<0.000000e+00> : vector<128x128xf32>
    %25 = tpu.matmul %22, %24, %cst_18 {dimension_numbers = #tpu.dot_dimension_numbers<[1], [0], [0], [1], [0, 0, 1, 1], [], []>} : vector<128x256xbf16>, vector<256x128xbf16>, vector<128x128xf32> -> vector<128x128xf32>
    %26 = arith.addf %21, %25 : vector<128x128xf32>
    %c0_19 = arith.constant 0 : index
    %c0_20 = arith.constant 0 : index
    %c0_21 = arith.constant 0 : index
    %27 = vector.load %arg8[%c0_19, %c0_20, %c0_21] : memref<1x128x128xbf16, #tpu.memory_space<vmem>>, vector<1x128x128xbf16>
    %28 = vector.shape_cast %27 : vector<1x128x128xbf16> to vector<128x128xbf16>
    %cst_22 = arith.constant dense<0.000000e+00> : vector<128x128xf32>
    %29 = tpu.matmul %3, %28, %cst_22 {dimension_numbers = #tpu.dot_dimension_numbers<[1], [0], [0], [1], [0, 0, 1, 1], [], []>} : vector<128x128xbf16>, vector<128x128xbf16>, vector<128x128xf32> -> vector<128x128xf32>
    %c0_23 = arith.constant 0 : index
    %c0_24 = arith.constant 0 : index
    %30 = vector.load %arg16[%c0_23, %c0_24] : memref<128x256xbf16, #tpu.memory_space<vmem>>, vector<128x256xbf16>
    %c0_25 = arith.constant 0 : index
    %c0_26 = arith.constant 0 : index
    %c0_27 = arith.constant 0 : index
    %31 = vector.load %arg10[%c0_25, %c0_26, %c0_27] : memref<1x256x128xbf16, #tpu.memory_space<vmem>>, vector<1x256x128xbf16>
    %32 = vector.shape_cast %31 : vector<1x256x128xbf16> to vector<256x128xbf16>
    %cst_28 = arith.constant dense<0.000000e+00> : vector<128x128xf32>
    %33 = tpu.matmul %30, %32, %cst_28 {dimension_numbers = #tpu.dot_dimension_numbers<[1], [0], [0], [1], [0, 0, 1, 1], [], []>} : vector<128x256xbf16>, vector<256x128xbf16>, vector<128x128xf32> -> vector<128x128xf32>
    %34 = arith.addf %29, %33 : vector<128x128xf32>
    %35 = arith.negf %26 : vector<128x128xf32>
    %36 = math.exp %35 : vector<128x128xf32>
    %cst_29 = arith.constant 1.000000e+00 : f32
    %37 = vector.broadcast %cst_29 : f32 to vector<128x128xf32>
    %38 = arith.addf %37, %36 : vector<128x128xf32>
    %39 = arith.divf %37, %38 : vector<128x128xf32>
    %40 = arith.mulf %26, %39 : vector<128x128xf32>
    %41 = arith.mulf %40, %34 : vector<128x128xf32>
    %42 = arith.truncf %41 : vector<128x128xf32> to vector<128x128xbf16>
    %c0_30 = arith.constant 0 : index
    %c0_31 = arith.constant 0 : index
    %43 = vector.load %arg11[%c0_30, %c0_31] : memref<128x128xbf16, #tpu.memory_space<vmem>>, vector<128x128xbf16>
    %cst_32 = arith.constant dense<0.000000e+00> : vector<128x128xf32>
    %44 = tpu.matmul %42, %43, %cst_32 {dimension_numbers = #tpu.dot_dimension_numbers<[1], [0], [0], [1], [0, 0, 1, 1], [], []>} : vector<128x128xbf16>, vector<128x128xbf16>, vector<128x128xf32> -> vector<128x128xf32>
    %c0_i32_33 = arith.constant 0 : i32
    %45 = arith.cmpi eq, %arg1, %c0_i32_33 : i32
    %46 = arith.extui %45 : i1 to i32
    %c0_i32_34 = arith.constant 0 : i32
    %47 = arith.cmpi ne, %46, %c0_i32_34 : i32
    scf.if %47 {
      %c0_39 = arith.constant 0 : index
      %c0_40 = arith.constant 0 : index
      %57 = vector.load %arg14[%c0_39, %c0_40] : memref<128x128xf32, #tpu.memory_space<vmem>>, vector<128x128xf32>
      tpu.vector_store %arg14[%c0_39, %c0_40], %44 {strides = array<i32>} : memref<128x128xf32, #tpu.memory_space<vmem>>, vector<128x128xf32>,
    } else {
    }
    %c0_i32_35 = arith.constant 0 : i32
    %48 = arith.cmpi ne, %arg1, %c0_i32_35 : i32
    %49 = arith.extui %48 : i1 to i32
    %c0_i32_36 = arith.constant 0 : i32
    %50 = arith.cmpi ne, %49, %c0_i32_36 : i32
    scf.if %50 {
      %c0_39 = arith.constant 0 : index
      %c0_40 = arith.constant 0 : index
      %57 = vector.load %arg14[%c0_39, %c0_40] : memref<128x128xf32, #tpu.memory_space<vmem>>, vector<128x128xf32>
      %58 = arith.addf %57, %44 : vector<128x128xf32>
      %c0_41 = arith.constant 0 : index
      %c0_42 = arith.constant 0 : index
      %59 = vector.load %arg14[%c0_41, %c0_42] : memref<128x128xf32, #tpu.memory_space<vmem>>, vector<128x128xf32>
      tpu.vector_store %arg14[%c0_41, %c0_42], %58 {strides = array<i32>} : memref<128x128xf32, #tpu.memory_space<vmem>>, vector<128x128xf32>,
    } else {
    }
    %51 = arith.extui %2 : i1 to i32
    %c0_i32_37 = arith.constant 0 : i32
    %52 = arith.cmpi ne, %51, %c0_i32_37 : i32
    scf.if %52 {
      %c0_39 = arith.constant 0 : index
      %c0_40 = arith.constant 0 : index
      %57 = vector.load %arg17[%c0_39, %c0_40] : memref<128x256xf32, #tpu.memory_space<vmem>>, vector<128x256xf32>
      %c0_41 = arith.constant 0 : index
      %c0_42 = arith.constant 0 : index
      %58 = vector.load %arg12[%c0_41, %c0_42] : memref<128x256xbf16, #tpu.memory_space<vmem>>, vector<128x256xbf16>
      %cst_43 = arith.constant dense<0.000000e+00> : vector<128x256xf32>
      %59 = tpu.matmul %42, %58, %cst_43 {dimension_numbers = #tpu.dot_dimension_numbers<[1], [0], [0], [1], [0, 0, 1, 1], [], []>} : vector<128x128xbf16>, vector<128x256xbf16>, vector<128x256xf32> -> vector<128x256xf32>
      %60 = arith.addf %57, %59 : vector<128x256xf32>
      %c0_44 = arith.constant 0 : index
      %c0_45 = arith.constant 0 : index
      %61 = vector.load %arg17[%c0_44, %c0_45] : memref<128x256xf32, #tpu.memory_space<vmem>>, vector<128x256xf32>
      tpu.vector_store %arg17[%c0_44, %c0_45], %60 {strides = array<i32>} : memref<128x256xf32, #tpu.memory_space<vmem>>, vector<128x256xf32>,
    } else {
    }
    %c1_i32 = arith.constant 1 : i32
    %53 = arith.cmpi eq, %arg1, %c1_i32 : i32
    %54 = arith.andi %53, %2 : i1
    %55 = arith.extui %54 : i1 to i32
    %c0_i32_38 = arith.constant 0 : i32
    %56 = arith.cmpi ne, %55, %c0_i32_38 : i32
    scf.if %56 {
      %c0_39 = arith.constant 0 : index
      %c0_40 = arith.constant 0 : index
      %57 = vector.load %arg17[%c0_39, %c0_40] : memref<128x256xf32, #tpu.memory_space<vmem>>, vector<128x256xf32>
      %58 = vector.broadcast %6 : vector<128x1xf32> to vector<128x256xf32>
      %59 = arith.mulf %57, %58 : vector<128x256xf32>
      %60 = arith.truncf %59 : vector<128x256xf32> to vector<128x256xbf16>
      %c0_41 = arith.constant 0 : index
      %c0_42 = arith.constant 0 : index
      %61 = vector.load %arg14[%c0_41, %c0_42] : memref<128x128xf32, #tpu.memory_space<vmem>>, vector<128x128xf32>
      %c0_43 = arith.constant 0 : index
      %c0_44 = arith.constant 0 : index
      %62 = vector.load %arg13[%c0_43, %c0_44] : memref<256x128xbf16, #tpu.memory_space<vmem>>, vector<256x128xbf16>
      %cst_45 = arith.constant dense<0.000000e+00> : vector<128x128xf32>
      %63 = tpu.matmul %60, %62, %cst_45 {dimension_numbers = #tpu.dot_dimension_numbers<[1], [0], [0], [1], [0, 0, 1, 1], [], []>} : vector<128x256xbf16>, vector<256x128xbf16>, vector<128x128xf32> -> vector<128x128xf32>
      %64 = arith.addf %61, %63 : vector<128x128xf32>
      %c0_46 = arith.constant 0 : index
      %c0_47 = arith.constant 0 : index
      %65 = vector.load %arg14[%c0_46, %c0_47] : memref<128x128xf32, #tpu.memory_space<vmem>>, vector<128x128xf32>
      tpu.vector_store %arg14[%c0_46, %c0_47], %64 {strides = array<i32>} : memref<128x128xf32, #tpu.memory_space<vmem>>, vector<128x128xf32>,
    } else {
    }
    return
  }
  func.func @transform_0(%arg0: i32, %arg1: i32, %arg2: memref<2xi32, #tpu.memory_space<smem>>) -> (i32, i32) {
    %c0_i32 = arith.constant 0 : i32
    %c0_i32_0 = arith.constant 0 : i32
    return %arg0, %c0_i32 : i32, i32
  }
  func.func @transform_1(%arg0: i32, %arg1: i32, %arg2: memref<2xi32, #tpu.memory_space<smem>>) -> (i32, i32) {
    %c0_i32 = arith.constant 0 : i32
    %c0_i32_0 = arith.constant 0 : i32
    return %arg0, %c0_i32 : i32, i32
  }
  func.func @transform_2(%arg0: i32, %arg1: i32, %arg2: memref<2xi32, #tpu.memory_space<smem>>) -> (i32, i32, i32) {
    %c0_i32 = arith.constant 0 : i32
    %c0_i32_0 = arith.constant 0 : i32
    %c0_i32_1 = arith.constant 0 : i32
    return %arg1, %c0_i32, %c0_i32_0 : i32, i32, i32
  }
  func.func @transform_3(%arg0: i32, %arg1: i32, %arg2: memref<2xi32, #tpu.memory_space<smem>>) -> (i32, i32) {
    %c0_i32 = arith.constant 0 : i32
    %c0_i32_0 = arith.constant 0 : i32
    %c0_i32_1 = arith.constant 0 : i32
    return %c0_i32, %c0_i32_0 : i32, i32
  }
  func.func @transform_4(%arg0: i32, %arg1: i32, %arg2: memref<2xi32, #tpu.memory_space<smem>>) -> (i32, i32, i32) {
    %c0_i32 = arith.constant 0 : i32
    %c0_i32_0 = arith.constant 0 : i32
    %c0_i32_1 = arith.constant 0 : i32
    return %arg1, %c0_i32, %c0_i32_0 : i32, i32, i32
  }
  func.func @transform_5(%arg0: i32, %arg1: i32, %arg2: memref<2xi32, #tpu.memory_space<smem>>) -> (i32, i32, i32) {
    %c0_i32 = arith.constant 0 : i32
    %c0_i32_0 = arith.constant 0 : i32
    %c0_i32_1 = arith.constant 0 : i32
    return %arg1, %c0_i32, %c0_i32_0 : i32, i32, i32
  }
  func.func @transform_6(%arg0: i32, %arg1: i32, %arg2: memref<2xi32, #tpu.memory_space<smem>>) -> (i32, i32) {
    %c0_i32 = arith.constant 0 : i32
    %c0_i32_0 = arith.constant 0 : i32
    %c0_i32_1 = arith.constant 0 : i32
    return %c0_i32, %c0_i32_0 : i32, i32
  }
  func.func @transform_7(%arg0: i32, %arg1: i32, %arg2: memref<2xi32, #tpu.memory_space<smem>>) -> (i32, i32, i32) {
    %c0_i32 = arith.constant 0 : i32
    %c0_i32_0 = arith.constant 0 : i32
    %c0_i32_1 = arith.constant 0 : i32
    return %arg1, %c0_i32, %c0_i32_0 : i32, i32, i32
  }
  func.func @transform_8(%arg0: i32, %arg1: i32, %arg2: memref<2xi32, #tpu.memory_space<smem>>) -> (i32, i32) {
    %c0_i32 = arith.constant 0 : i32
    %c0_i32_0 = arith.constant 0 : i32
    return %arg1, %c0_i32 : i32, i32
  }
  func.func @transform_9(%arg0: i32, %arg1: i32, %arg2: memref<2xi32, #tpu.memory_space<smem>>) -> (i32, i32) {
    %c0_i32 = arith.constant 0 : i32
    %c0_i32_0 = arith.constant 0 : i32
    return %arg1, %c0_i32 : i32, i32
  }
  func.func @transform_10(%arg0: i32, %arg1: i32, %arg2: memref<2xi32, #tpu.memory_space<smem>>) -> (i32, i32) {
    %c0_i32 = arith.constant 0 : i32
    %c0_i32_0 = arith.constant 0 : i32
    %c0_i32_1 = arith.constant 0 : i32
    return %c0_i32, %c0_i32_0 : i32, i32
  }
  func.func @transform_11(%arg0: i32, %arg1: i32, %arg2: memref<2xi32, #tpu.memory_space<smem>>) -> (i32, i32) {
    %c0_i32 = arith.constant 0 : i32
    %c0_i32_0 = arith.constant 0 : i32
    return %arg0, %c0_i32 : i32, i32
  }
}

</mosaic_0001>

<bundles_post_ra>
// kernel: tpu_custom_call.1
= control target key start
LH: loop header
LB: loop body
LE: loop exit
PB: predicated region body
PF: predicated region fallthrough
CT: control target
= control target key end

     0   :  { %s6377_s0 = inlined_call_operand.vmem [shape: s32[2], index: 0, kind: input, shape index: {}]   ;;  %s6378_s1 = inlined_call_operand.hbm [shape: bf16[256,128], index: 1, kind: input, shape index: {}]   ;;  %s6379_s2 = inlined_call_operand.vmem [shape: f32[256,1], index: 2, kind: input, shape index: {}]   ;;  %s6380_s3 = inlined_call_operand.hbm [shape: bf16[2,128,128], index: 3, kind: input, shape index: {}]   ;;  %s6381_s4 = inlined_call_operand.hbm [shape: bf16[128,256], index: 4, kind: input, shape index: {}]   ;;  %s6382_s5 = inlined_call_operand.vmem [shape: bf16[2,256,128], index: 5, kind: input, shape index: {}]   ;;  %s6383_s6 = inlined_call_operand.hbm [shape: bf16[2,128,128], index: 6, kind: input, shape index: {}]   ;;  %s6384_s7 = inlined_call_operand.hbm [shape: bf16[128,256], index: 7, kind: input, shape index: {}]   ;;  %s6385_s8 = inlined_call_operand.hbm [shape: bf16[2,256,128], index: 8, kind: input, shape index: {}]   ;;  %s6386_s9 = inlined_call_operand.hbm [shape: bf16[256,128], index: 9, kind: input, shape index: {}]   ;;  %s6387_s10 = inlined_call_operand.hbm [shape: bf16[256,256], index: 10, kind: input, shape index: {}]   ;;  %s6388_s11 = inlined_call_operand.hbm [shape: bf16[256,128], index: 11, kind: input, shape index: {}]   ;;  %s6389_s12 = inlined_call_operand.hbm [shape: f32[256,128], index: 12, kind: output, shape index: {}]  }
   0x1   :  { %6424 = sst [smem:[#allocation45_spill]] %s6378_s1  ;;  %s17_s23 = sshll.u32 %s6377_s0, 4  ;;  %s18_s23 = int_to_ptr.vmem [resolvable:$true] %s17_s23 }
   0x2   :  { %6425 = sst [smem:[#allocation46_spill]] %s6379_s2  ;;  %s4700_s24 = scalar_lea.vmem %s18_s23, 16 }
   0x3   :  { %6426 = sst [smem:[#allocation47_spill]] %s6381_s4  ;;  %p4701_p0 = scmp.ne.s32.totalorder %s18_s23, %s4700_s24 }
   0x4   :  { %6427 = sst [smem:[#allocation48_spill]] %s6382_s5  ;;  %p4705_p1 = scmp.lt.s32.totalorder %s18_s23, %s18_s23 }
   0x5   :  { %6428 = sst [smem:[#allocation49_spill]] %s6383_s6  ;;  %p4706_p2 = scmp.lt.s32.totalorder %s4700_s24, %s4700_s24 }
   0x6   :  { %6429 = sst [smem:[#allocation50_spill]] %s6384_s7 }
   0x7   :  { %6430 = sst [smem:[#allocation51_spill]] %s6385_s8  ;;  %p4707_p3 = por %p4706_p2, %p4705_p1 }
   0x8   :  { %6431 = sst [smem:[#allocation52_spill]] %s6386_s9 }
   0x9   :  { %6432 = sst [smem:[#allocation53_spill]] %s6388_s11  ;;  %p4708_p4 = pnand %p4707_p3, %p4701_p0 }
   0xa   :  { %6433 = sst [smem:[#allocation54_spill]] %s6389_s12 }
   0xb   :  { %4711 = shalt.err (!%p4708_p4)  }
   0xc   :  { %s5130_s25 = smov [#allocation6]  }
   0xd   :  { %20 = dma.vmem_to_smem %s18_s23, 16, %s5130_s25, [#allocation5] }
   0xe   :  { %5048 = dma.done.wait [#allocation5], 16 }
   0xf   :  { %5049 = vsyncadd [#allocation5], 4294967280 }
  0x10   :  { %22 = sfence }
  0x11   :  { %23 = vsyncpa [#allocation8], 0 }
  0x12   :  { %25 = vsyncpa [#allocation8 + $0x1], 0 }
  0x13   :  { %26 = vsyncpa [#allocation11], 0 }
  0x14   :  { %28 = vsyncpa [#allocation11 + $0x1], 0 }
  0x15   :  { %29 = vsyncpa [#allocation14], 0 }
  0x16   :  { %31 = vsyncpa [#allocation14 + $0x1], 0 }
  0x17   :  { %32 = vsyncpa [#allocation17], 0 }
  0x18   :  { %34 = vsyncpa [#allocation17 + $0x1], 0 }
  0x19   :  { %35 = vsyncpa [#allocation20], 0 }
  0x1a   :  { %37 = vsyncpa [#allocation20 + $0x1], 0 }
  0x1b   :  { %38 = vsyncpa [#allocation9], 0 }
  0x1c   :  { %40 = vsyncpa [#allocation9 + $0x1], 0  ;;  %s5220_s0 = smov 0   ;;  %s5222_s26 = smov 0  }
  0x1d   :  { %s5224_s27 = smov 0   ;;  %s5226_s28 = smov 0  }
  0x1e   :  { %s5228_s29 = smov 0   ;;  %s5230_s30 = smov 0  }
  0x1f   :  { %s5232_s13 = smov 0   ;;  %s5234_s14 = smov 0  }
  0x20   :  { %s5236_s15 = smov 0   ;;  %s5238_s16 = smov 0  }
  0x21   :  { %s5240_s17 = smov 0  }
  0x22 LB: > { %6434 = sst [smem:[#allocation33_spill]] %s5096_s27  ;;  %s5274_s18 = sadd.s32 4294967295, %s5128_s17   ;;  %s5128_s17 = sphi %s5240_s17, %s46_s17   ;;  %s5124_s16 = sphi %s5238_s16, %s6518_s16   ;;  %s5120_s15 = sphi %s5236_s15, %s6517_s15   ;;  %s5116_s14 = sphi %s5234_s14, %s6508_s14   ;;  %s5112_s13 = sphi %s5232_s13, %s6516_s13   ;;  %s5108_s30 = sphi %s5230_s30, %s6515_s30   ;;  %s5104_s29 = sphi %s5228_s29, %s6514_s29   ;;  %s5100_s28 = sphi %s5226_s28, %s6513_s28   ;;  %s5096_s27 = sphi %s5224_s27, %s6507_s27   ;;  %s5092_s26 = sphi %s5222_s26, %s6512_s26   ;;  %s5088_s0 = sphi %s5220_s0, %s6511_s0  }
  0x23   : > { %6435 = sst [smem:[#allocation34_spill]] %s5100_s28  ;;  %s3724_s19 = sadd.s32 4294967294, %s5128_s17  }
  0x24   : > { %6436 = sst [smem:[#allocation35_spill]] %s5112_s13  ;;  %p78_p5 = scmp.ne.s32.totalorder %s5104_s29, %s5100_s28 }
  0x25   : > { %6437 = sst [smem:[#allocation36_spill]] %s5116_s14  ;;  %p6398_p6 = scmp.eq.s32.totalorder %s5274_s18, 0 }
  0x26   : > { %6438 = sst [smem:[#allocation37_spill]] %s5124_s16  ;;  %p130_p7 = scmp.ne.s32.totalorder %s5092_s26, %s5088_s0 }
  0x27   : > { %p5284_p9 = por %p6398_p6, %p78_p5  ;;  %p353_p10 = scmp.eq.s32.totalorder %s3724_s19, 3 }
  0x28   : > { %p5290_p11 = por %p130_p7, %p6398_p6  ;;  %p3725_p12 = scmp.ge.s32.totalorder %s5128_s17, 1 }
  0x29   : > { %s6439_s20 = scalar_select %p5284_p9, 1, 0 }
  0x2a   : > { %s6441_s21 = scalar_select %p5290_p11, 1, 0 }
  0x2b   : > { %6440 = sst [smem:[#allocation38_spill]] %s6439_s20  ;;  %p5295_p13 = por %p353_p10, %p78_p5 }
  0x2c   : > { %6442 = sst [smem:[#allocation39_spill]] %s6441_s21  ;;  %p360_p0 = scmp.lt.s32.totalorder %s5128_s17, 5 }
  0x2d   : > { %s6443_s22 = scalar_select %p5295_p13, 1, 0 }
  0x2e   : > { %p5300_p1 = pnand %p3725_p12, %p360_p0  ;;  %s5131_s24 = smov [#allocation12]  }
  0x2f   : > { %6444 = sst [smem:[#allocation40_spill]] %s6443_s22  ;;  %s372_s25 = sshll.u32 %s5131_s24, 4  ;;  %s5304_s25 = int_to_ptr.vmem [resolvable:$true] %s372_s25 }
  0x30   : > { %s6445_s23 = scalar_select %p5300_p1, 1, 0 }
  0x31   : > { %p4344_p2 = pneg %p5300_p1  ;;  %s5132_s19 = smov [#allocation15]  }
  0x32   : > { %6446 = sst [smem:[#allocation41_spill]] %s6445_s23  ;;  %s385_s22 = sshll.u32 %s5132_s19, 4  ;;  %s5314_s22 = int_to_ptr.vmem [resolvable:$true] %s385_s22 }
  0x33   : > { %p5310_p3 = pnand %p4344_p2, %p6398_p6  ;;  %s5133_s28 = smov [#allocation21]  }
  0x34   : > { %s5316_s12 = sshll.u32 %s5133_s28, 4  ;;  %s6448_s4 = sld [smem:[#allocation47_spill]]  ;;  %s399_s12 = int_to_ptr.vmem [resolvable:$true] %s5316_s12 }
  0x35   : > { %p5326_p5 = pneg %p5310_p3 }
  0x3a   : > { %s4712_s24 = scalar_lea.hbm %s6448_s4, 2048 }
  0x3b   : > { %p4713_p4 = scmp.ne.s32.totalorder %s6448_s4, %s4712_s24  ;;  %p4719_p12 = scmp.lt.u32.totalorder %s4712_s24, %s6448_s4 }
  0x3d   : > { %p4715_p7 = pnand %p5326_p5, %p4713_p4 }
  0x3f   : > { %p4716_p10 = pneg %p4715_p7 }
  0x41   : > { %p4721_p0 = pnand %p4719_p12, %p4716_p10 }
  0x43   : > { %4724 = shalt.err (!%p4721_p0)
}
  0x44   : > { %s4725_s2 = scalar_lea.vmem %s5304_s25, 2048  ;;  %p4733_p13 = scmp.lt.s32.totalorder %s5304_s25, %s5304_s25 }
  0x45   : > { %p4726_p2 = scmp.ne.s32.totalorder %s5304_s25, %s4725_s2  ;;  %p4734_p11 = scmp.lt.s32.totalorder %s4725_s2, %s4725_s2 }
  0x47   : > { %p4728_p6 = pnand %p4726_p2, %p5326_p5  ;;  %p4735_p4 = por %p4734_p11, %p4733_p13 }
  0x49   : > { %p4729_p8 = pneg %p4728_p6 }
  0x4b   : > { %p4736_p7 = pnand %p4735_p4, %p4729_p8 }
  0x4d   : > { %4739 = shalt.err (!%p4736_p7)
}
  0x4e   : > { %s6407_s5 = smov 128   ;;  %s6408_s13 = smov 8  }
  0x4f   : > { %4347 = dma.hbm_to_vmem [thread:$0]  (!%p5310_p3), %s6448_s4, 2048, %s5304_s25, [#allocation11], %s6407_s5, %s6407_s5, %s6408_s13  }
  0x50   : > { %s6450_s7 = sld [smem:[#allocation50_spill]] }
  0x56   : > { %s4740_s2 = scalar_lea.hbm %s6450_s7, 2048 }
  0x57   : > { %p4741_p6 = scmp.ne.s32.totalorder %s6450_s7, %s4740_s2  ;;  %p4747_p13 = scmp.lt.u32.totalorder %s4740_s2, %s6450_s7 }
  0x59   : > { %p4743_p8 = pnand %p4741_p6, %p5326_p5 }
  0x5b   : > { %p4744_p11 = pneg %p4743_p8 }
  0x5d   : > { %p4749_p10 = pnand %p4747_p13, %p4744_p11 }
  0x5f   : > { %4752 = shalt.err (!%p4749_p10)
}
  0x60   : > { %s4753_s25 = scalar_lea.vmem %s5314_s22, 2048  ;;  %p4761_p4 = scmp.lt.s32.totalorder %s5314_s22, %s5314_s22 }
  0x61   : > { %p4754_p12 = scmp.ne.s32.totalorder %s5314_s22, %s4753_s25  ;;  %p4762_p7 = scmp.lt.s32.totalorder %s4753_s25, %s4753_s25 }
  0x63   : > { %p4756_p0 = pnand %p4754_p12, %p5326_p5  ;;  %p4763_p6 = por %p4762_p7, %p4761_p4 }
  0x65   : > { %p4757_p2 = pneg %p4756_p0 }
  0x67   : > { %p4764_p8 = pnand %p4763_p6, %p4757_p2 }
  0x69   : > { %4767 = shalt.err (!%p4764_p8)
}
  0x6a   : > { %4350 = dma.hbm_to_vmem [thread:$0]  (!%p5310_p3), %s6450_s7, 2048, %s5314_s22, [#allocation14], %s6407_s5, %s6407_s5, %s6408_s13  }
  0x6b   : > { %s6451_s11 = sld [smem:[#allocation53_spill]] }
  0x71   : > { %s4768_s14 = scalar_lea.hbm %s6451_s11, 2048 }
  0x72   : > { %p4769_p11 = scmp.ne.s32.totalorder %s6451_s11, %s4768_s14  ;;  %p4775_p12 = scmp.lt.u32.totalorder %s4768_s14, %s6451_s11 }
  0x74   : > { %p4771_p13 = pnand %p4769_p11, %p5326_p5 }
  0x76   : > { %p4772_p10 = pneg %p4771_p13 }
  0x78   : > { %p4777_p0 = pnand %p4775_p12, %p4772_p10 }
  0x7a   : > { %4780 = shalt.err (!%p4777_p0)
}
  0x7b   : > { %s4781_s25 = scalar_lea.vmem %s399_s12, 2048  ;;  %p4789_p6 = scmp.lt.s32.totalorder %s399_s12, %s399_s12 }
  0x7c   : > { %p4782_p2 = scmp.ne.s32.totalorder %s399_s12, %s4781_s25  ;;  %p4790_p8 = scmp.lt.s32.totalorder %s4781_s25, %s4781_s25 }
  0x7e   : > { %p4784_p4 = pnand %p4782_p2, %p5326_p5  ;;  %p4791_p9 = por %p4790_p8, %p4789_p6 }
  0x80   : > { %p4785_p7 = pneg %p4784_p4 }
  0x82   : > { %p4792_p1 = pnand %p4791_p9, %p4785_p7 }
  0x84   : > { %4795 = shalt.err (!%p4792_p1)
}
  0x85   : > { %s6409_s22 = smov 64   ;;  %s6411_s21 = smov 4  }
  0x86   : > { %4353 = dma.hbm_to_vmem [thread:$0]  (!%p5310_p3), %s6451_s11, 2048, %s399_s12, [#allocation20], %s6409_s22, %s6409_s22, %s6411_s21  }
  0x87   : > { %p6415_p9 = scmp.eq.s32.totalorder %s5128_s17, 0  ;;  %s55_s20 = sadd.s32 1, %s5120_s15 }
  0x88   : > { %s117_s23 = sadd.s32 1, %s5096_s27  ;;  %p5401_p1 = scmp.ge.s32.totalorder %s55_s20, 2 }
  0x89   : > { %p124_p5 = scmp.ne.s32.totalorder %s5096_s27, %s5092_s26  ;;  %p6414_p11 = scmp.lt.s32.totalorder %s5128_s17, 4 }
  0x8a   : > { %s6452_s14 = scalar_select %p5401_p1, 1, 0 }
  0x8b   : > { %s5409_s0 = sand.u32 1, %s5128_s17   ;;  %s6520_s20 = smov (%p5401_p1, %s55_s20), 0 }
  0x8c   : > { %6453 = sst [smem:[#allocation42_spill]] %s6520_s20  ;;  %p126_p3 = por %p124_p5, %p6415_p9 }
  0x8d   : > { %s444_s12 = sand.u32 1, %s5096_s27   ;;  %s114_s24 = ssub.s32 %s5120_s15, %s6520_s20 }
  0x8e   : > { %s5420_s19 = sshll.u32 %s444_s12, 6  ;;  %p115_p13 = scmp.eq.s32.totalorder %s114_s24, 0 }
  0x8f   : > { %p5424_p10 = pnand %p6414_p11, %p126_p3  ;;  %s5428_s2 = sshll.u32 %s444_s12, 7 }
  0x90   : > { %s5431_s25 = scalar_select %p115_p13, %s5096_s27, %s117_s23  }
  0x91   : > { %s6454_s28 = scalar_select %p5424_p10, 1, 0 }
  0x92   : > { %6455 = sst [smem:[#allocation43_spill]] %s5431_s25  ;;  %s6413_s6 = sshll.u32 %s5120_s15, 11 }
  0x93   : > { %s496_s9 = scalar_lea.vmem [#allocation16], %s5428_s2  ;;  %s6456_s8 = sld [smem:[#allocation51_spill]] }
  0x94   : > { %s503_s5 = sshll.u32 %s496_s9, 4  ;;  %p5449_p0 = pneg %p5424_p10  ;;  %s5442_s5 = int_to_ptr.vmem [resolvable:$true] %s503_s5 }
  0x99   : > { %s5440_s21 = scalar_lea.hbm %s6456_s8, %s6413_s6  ;;  %s4801_s9 = scalar_lea.hbm %s6456_s8, 4096 }
  0x9a   : > { %s4796_s24 = scalar_lea.hbm %s5440_s21, 2048  ;;  %p4802_p7 = scmp.lt.u32.totalorder %s5440_s21, %s6456_s8 }
  0x9b   : > { %p4797_p12 = scmp.ne.s32.totalorder %s5440_s21, %s4796_s24  ;;  %p4803_p6 = scmp.lt.u32.totalorder %s4801_s9, %s4796_s24 }
  0x9c   : > { %p4805_p5 = scmp.lt.u32.totalorder %s4796_s24, %s5440_s21 }
  0x9d   : > { %p4799_p2 = pnand %p5449_p0, %p4797_p12  ;;  %p4804_p8 = por %p4803_p6, %p4802_p7 }
  0x9f   : > { %p4800_p4 = pneg %p4799_p2  ;;  %p4806_p3 = por %p4805_p5, %p4804_p8 }
  0xa1   : > { %p4807_p13 = pnand %p4806_p3, %p4800_p4 }
  0xa3   : > { %4810 = shalt.err (!%p4807_p13)
}
  0xa4   : > { %s4811_s12 = scalar_lea.vmem %s5442_s5, 2048  ;;  %s5138_s13 = smov [#allocation16]  }
  0xa5   : > { %p4812_p12 = scmp.ne.s32.totalorder %s5442_s5, %s4811_s12  ;;  %s4816_s22 = sshll.u32 %s5138_s13, 4  ;;  %s4817_s22 = int_to_ptr.vmem [resolvable:$false] %s4816_s22 }
  0xa6   : > { %s4818_s4 = scalar_lea.vmem %s4817_s22, 4096  ;;  %p4819_p9 = scmp.lt.s32.totalorder %s5442_s5, %s4817_s22 }
  0xa7   : > { %p4814_p2 = pnand %p4812_p12, %p5449_p0  ;;  %p4820_p1 = scmp.lt.s32.totalorder %s4818_s4, %s4811_s12 }
  0xa9   : > { %p4815_p11 = pneg %p4814_p2  ;;  %p4821_p7 = por %p4820_p1, %p4819_p9 }
  0xab   : > { %p4822_p6 = pnand %p4821_p7, %p4815_p11 }
  0xad   : > { %4825 = shalt.err (!%p4822_p6)
}
  0xae   : > { %s6458_s6 = smov 4   ;;  %s6459_s24 = smov 64  }
  0xaf   : > { %s6460_s9 = scalar_lea.sflag [#allocation17], %s5409_s0  ;;  %s6461_s12 = sshll.u32 %s5120_s15, 11 }
  0xb0   : > { %4366 = dma.hbm_to_vmem [thread:$0]  (!%p5424_p10), %s5440_s21, 2048, %s5442_s5, %s6460_s9, %s6459_s24, %s6459_s24, %s6458_s6  }
  0xb1   : > { %s5482_s4 = scalar_lea.hbm %s6387_s10, %s6461_s12  ;;  %s538_s7 = scalar_lea.vmem [#allocation19], %s5428_s2 }
  0xb2   : > { %s546_s8 = sshll.u32 %s538_s7, 4  ;;  %s58_s11 = sadd.s32 1, %s5124_s16  ;;  %s5485_s8 = int_to_ptr.vmem [resolvable:$true] %s546_s8 }
  0xb3   : > { %s65_s20 = sadd.s32 1, %s5108_s30  ;;  %p6462_p9 = scmp.ne.s32.totalorder %s6452_s14, 0 }
  0xb4   : > { %p72_p1 = scmp.ne.s32.totalorder %s5108_s30, %s5104_s29  ;;  %s412_s25 = sand.u32 1, %s5108_s30  }
  0xb5   : > { %s6522_s11 = smov (!%p6462_p9, %s58_s11), %s5124_s16  ;;  %p6463_p4 = scmp.eq.s32.totalorder %s5128_s17, 0 }
  0xb6   : > { %p60_p11 = scmp.ge.s32.totalorder %s6522_s11, 2  ;;  %p6464_p5 = scmp.eq.s32.totalorder %s5274_s18, 3 }
  0xb7   : > { %p74_p8 = por %p6463_p4, %p72_p1  ;;  %s3730_s7 = sshll.u32 %s412_s25, 6 }
  0xb8   : > { %p5499_p3 = por %p6464_p5, %p72_p1  ;;  %s6524_s11 = smov (%p60_p11, %s6522_s11), 0 }
  0xb9   : > { %6466 = sst [smem:[#allocation44_spill]] %s6524_s11  ;;  %s3925_s21 = sshll.u32 %s5124_s16, 10 }
  0xba   : > { %s6465_s5 = scalar_select %p5499_p3, 1, 0 }
  0xbb   : > { %s62_s2 = ssub.s32 %s5124_s16, %s6524_s11  ;;  %s6467_s1 = sld [smem:[#allocation45_spill]] }
  0xbc   : > { %p63_p13 = scmp.eq.s32.totalorder %s62_s2, 0  ;;  %s416_s13 = scalar_lea.vmem [#allocation7], %s3730_s7 }
  0xbd   : > { %s423_s22 = sshll.u32 %s416_s13, 4  ;;  %p6468_p12 = scmp.lt.s32.totalorder %s5128_s17, 4  ;;  %s5522_s22 = int_to_ptr.vmem [resolvable:$true] %s423_s22 }
  0xbe   : > { %s5520_s11 = scalar_select %p63_p13, %s5108_s30, %s65_s20  }
  0xbf   : > { %p5515_p2 = pnand %p6468_p12, %p74_p8  ;;  %s5524_s2 = scalar_lea.sflag [#allocation8], %s412_s25 }
  0xc1   : > { %s5511_s12 = scalar_lea.hbm %s6467_s1, %s3925_s21  ;;  %p4828_p6 = pneg %p5515_p2 }
  0xc2   : > { %s4826_s21 = scalar_lea.hbm %s5511_s12, 1024  ;;  %s4831_s9 = scalar_lea.hbm %s6467_s1, 2048 }
  0xc3   : > { %p4827_p7 = scmp.ne.s32.totalorder %s5511_s12, %s4826_s21  ;;  %p4832_p11 = scmp.lt.u32.totalorder %s5511_s12, %s6467_s1 }
  0xc4   : > { %p4833_p4 = scmp.lt.u32.totalorder %s4831_s9, %s4826_s21  ;;  %p4835_p5 = scmp.lt.u32.totalorder %s4826_s21, %s5511_s12 }
  0xc5   : > { %p4829_p9 = pnand %p4828_p6, %p4827_p7 }
  0xc6   : > { %p4834_p8 = por %p4833_p4, %p4832_p11 }
  0xc7   : > { %p4830_p1 = pneg %p4829_p9 }
  0xc8   : > { %p4836_p13 = por %p4835_p5, %p4834_p8 }
  0xca   : > { %p4837_p12 = pnand %p4836_p13, %p4830_p1 }
  0xcc   : > { %4840 = shalt.err (!%p4837_p12)
}
  0xcd   : > { %s4841_s20 = scalar_lea.vmem %s5522_s22, 1024  ;;  %s5139_s25 = smov [#allocation7]  }
  0xce   : > { %p4842_p7 = scmp.ne.s32.totalorder %s5522_s22, %s4841_s20  ;;  %s4846_s7 = sshll.u32 %s5139_s25, 4  ;;  %s4847_s7 = int_to_ptr.vmem [resolvable:$false] %s4846_s7 }
  0xcf   : > { %s4848_s16 = scalar_lea.vmem %s4847_s7, 2048  ;;  %p4849_p10 = scmp.lt.s32.totalorder %s5522_s22, %s4847_s7 }
  0xd0   : > { %p4844_p9 = pnand %p4842_p7, %p4828_p6  ;;  %p4850_p11 = scmp.lt.s32.totalorder %s4848_s16, %s4841_s20 }
  0xd2   : > { %p4845_p3 = pneg %p4844_p9  ;;  %p4851_p4 = por %p4850_p11, %p4849_p10 }
  0xd4   : > { %p4852_p8 = pnand %p4851_p4, %p4845_p3 }
  0xd6   : > { %4855 = shalt.err (!%p4852_p8)
}
  0xd7   : > { %4357 = dma.hbm_to_vmem [thread:$0]  (!%p5515_p2), %s5511_s12, 1024, %s5522_s22, %s5524_s2, %s6459_s24, %s6459_s24, %s6458_s6  }
  0xd8   : > { %s5556_s21 = sshll.u32 %s5120_s15, 10  ;;  %s446_s14 = scalar_lea.vmem [#allocation10], %s5420_s19 }
  0xd9   : > { %s453_s9 = sshll.u32 %s446_s14, 4  ;;  %s5563_s27 = scalar_lea.hbm %s6380_s3, %s5556_s21  ;;  %s5565_s9 = int_to_ptr.vmem [resolvable:$true] %s453_s9 }
  0xda   : > { %s443_s25 = scalar_lea.sflag [#allocation11], %s5409_s0  ;;  %s4856_s7 = scalar_lea.hbm %s5563_s27, 1024 }
  0xdb   : > { %p4857_p10 = scmp.ne.s32.totalorder %s5563_s27, %s4856_s7  ;;  %s4861_s2 = scalar_lea.hbm %s6380_s3, 2048 }
  0xdc   : > { %p4862_p6 = scmp.lt.u32.totalorder %s5563_s27, %s6380_s3  ;;  %p4863_p1 = scmp.lt.u32.totalorder %s4861_s2, %s4856_s7 }
  0xdd   : > { %p4859_p3 = pnand %p4857_p10, %p5449_p0  ;;  %p4865_p13 = scmp.lt.u32.totalorder %s4856_s7, %s5563_s27 }
  0xde   : > { %p4864_p5 = por %p4863_p1, %p4862_p6 }
  0xdf   : > { %p4860_p2 = pneg %p4859_p3 }
  0xe0   : > { %p4866_p12 = por %p4865_p13, %p4864_p5 }
  0xe2   : > { %p4867_p7 = pnand %p4866_p12, %p4860_p2 }
  0xe4   : > { %4870 = shalt.err (!%p4867_p7)
}
  0xe5   : > { %s4871_s13 = scalar_lea.vmem %s5565_s9, 1024  ;;  %s5140_s20 = smov [#allocation10]  }
  0xe6   : > { %p4872_p9 = scmp.ne.s32.totalorder %s5565_s9, %s4871_s13  ;;  %s4876_s12 = sshll.u32 %s5140_s20, 4  ;;  %s4877_s12 = int_to_ptr.vmem [resolvable:$false] %s4876_s12 }
  0xe7   : > { %s4878_s22 = scalar_lea.vmem %s4877_s12, 2048  ;;  %p4879_p8 = scmp.lt.s32.totalorder %s5565_s9, %s4877_s12 }
  0xe8   : > { %p4874_p11 = pnand %p4872_p9, %p5449_p0  ;;  %p4880_p10 = scmp.lt.s32.totalorder %s4878_s22, %s4871_s13 }
  0xea   : > { %p4875_p4 = pneg %p4874_p11  ;;  %p4881_p3 = por %p4880_p10, %p4879_p8 }
  0xec   : > { %p4882_p6 = pnand %p4881_p3, %p4875_p4 }
  0xee   : > { %4885 = shalt.err (!%p4882_p6)
}
  0xef   : > { %p6470_p2 = scmp.ne.s32.totalorder %s6454_s28, 0  ;;  %s6471_s16 = sld [smem:[#allocation49_spill]] }
  0xf0   : > { %s475_s13 = scalar_lea.vmem [#allocation13], %s5420_s19  ;;  %s472_s22 = scalar_lea.sflag [#allocation14], %s5409_s0 }
  0xf1   : > { %4360 = dma.hbm_to_vmem [thread:$0]  (!%p6470_p2), %s5563_s27, 1024, %s5565_s9, %s443_s25, %s6459_s24, %s6459_s24, %s6458_s6  }
  0xf2   : > { %s482_s12 = sshll.u32 %s475_s13, 4  ;;  %s5601_s12 = int_to_ptr.vmem [resolvable:$true] %s482_s12 }
  0xf5   : > { %s6472_s20 = smov %s6471_s16  ;;  %s5598_s14 = scalar_lea.hbm %s6471_s16, %s5556_s21 }
  0xf6   : > { %s4886_s1 = scalar_lea.hbm %s5598_s14, 1024  ;;  %s4891_s25 = scalar_lea.hbm %s6472_s20, 2048 }
  0xf7   : > { %p4887_p1 = scmp.ne.s32.totalorder %s5598_s14, %s4886_s1  ;;  %p4892_p12 = scmp.lt.u32.totalorder %s5598_s14, %s6472_s20 }
  0xf8   : > { %p4893_p7 = scmp.lt.u32.totalorder %s4891_s25, %s4886_s1  ;;  %p4895_p11 = scmp.lt.u32.totalorder %s4886_s1, %s5598_s14 }
  0xf9   : > { %p4889_p5 = pnand %p4887_p1, %p5449_p0 }
  0xfa   : > { %p4894_p9 = por %p4893_p7, %p4892_p12 }
  0xfb   : > { %p4890_p13 = pneg %p4889_p5 }
  0xfc   : > { %p4896_p4 = por %p4895_p11, %p4894_p9 }
  0xfe   : > { %p4897_p8 = pnand %p4896_p4, %p4890_p13 }
 0x100   : > { %4900 = shalt.err (!%p4897_p8)
}
 0x101   : > { %s4901_s16 = scalar_lea.vmem %s5601_s12, 1024  ;;  %s5141_s13 = smov [#allocation13]  }
 0x102   : > { %p4902_p10 = scmp.ne.s32.totalorder %s5601_s12, %s4901_s16  ;;  %s4906_s9 = sshll.u32 %s5141_s13, 4  ;;  %s4907_s9 = int_to_ptr.vmem [resolvable:$false] %s4906_s9 }
 0x103   : > { %s4908_s27 = scalar_lea.vmem %s4907_s9, 2048  ;;  %p4909_p1 = scmp.lt.s32.totalorder %s5601_s12, %s4907_s9 }
 0x104   : > { %p4904_p3 = pnand %p4902_p10, %p5449_p0  ;;  %p4910_p5 = scmp.lt.s32.totalorder %s4908_s27, %s4901_s16 }
 0x106   : > { %p4905_p6 = pneg %p4904_p3  ;;  %p4911_p12 = por %p4910_p5, %p4909_p1 }
 0x108   : > { %p4912_p7 = pnand %p4911_p12, %p4905_p6 }
 0x10a   : > { %4915 = shalt.err (!%p4912_p7)
}
 0x10b   : > { %4363 = dma.hbm_to_vmem [thread:$0]  (!%p6470_p2), %s5598_s14, 1024, %s5601_s12, %s472_s22, %s6459_s24, %s6459_s24, %s6458_s6  }
 0x10c   : > { %s6473_s7 = sld [smem:[#allocation52_spill]]  ;;  %s517_s16 = scalar_lea.vmem [#allocation18], %s5420_s19 }
 0x10d   : > { %s524_s13 = sshll.u32 %s517_s16, 4  ;;  %s5637_s13 = int_to_ptr.vmem [resolvable:$true] %s524_s13 }
 0x112   : > { %s5634_s2 = scalar_lea.hbm %s6473_s7, %s5556_s21  ;;  %s4921_s12 = scalar_lea.hbm %s6473_s7, 2048 }
 0x113   : > { %s4916_s9 = scalar_lea.hbm %s5634_s2, 1024  ;;  %p4922_p4 = scmp.lt.u32.totalorder %s5634_s2, %s6473_s7 }
 0x114   : > { %p4917_p13 = scmp.ne.s32.totalorder %s5634_s2, %s4916_s9  ;;  %p4923_p8 = scmp.lt.u32.totalorder %s4921_s12, %s4916_s9 }
 0x115   : > { %p4925_p3 = scmp.lt.u32.totalorder %s4916_s9, %s5634_s2 }
 0x116   : > { %p4919_p9 = pnand %p4917_p13, %p5449_p0  ;;  %p4924_p10 = por %p4923_p8, %p4922_p4 }
 0x118   : > { %p4920_p11 = pneg %p4919_p9  ;;  %p4926_p6 = por %p4925_p3, %p4924_p10 }
 0x11a   : > { %p4927_p1 = pnand %p4926_p6, %p4920_p11 }
 0x11c   : > { %4930 = shalt.err (!%p4927_p1)
}
 0x11d   : > { %s4931_s19 = scalar_lea.vmem %s5637_s13, 1024  ;;  %s5142_s1 = smov [#allocation18]  }
 0x11e   : > { %p4932_p5 = scmp.ne.s32.totalorder %s5637_s13, %s4931_s19  ;;  %s4936_s25 = sshll.u32 %s5142_s1, 4  ;;  %s4937_s25 = int_to_ptr.vmem [resolvable:$false] %s4936_s25 }
 0x11f   : > { %s4938_s16 = scalar_lea.vmem %s4937_s25, 2048  ;;  %p4939_p13 = scmp.lt.s32.totalorder %s5637_s13, %s4937_s25 }
 0x120   : > { %p4934_p12 = pnand %p4932_p5, %p5449_p0  ;;  %p4940_p9 = scmp.lt.s32.totalorder %s4938_s16, %s4931_s19 }
 0x122   : > { %p4935_p7 = pneg %p4934_p12  ;;  %p4941_p4 = por %p4940_p9, %p4939_p13 }
 0x124   : > { %p4942_p8 = pnand %p4941_p4, %p4935_p7 }
 0x126   : > { %4945 = shalt.err (!%p4942_p8)
}
 0x127   : > { %s6474_s9 = scalar_lea.sflag [#allocation17], %s5409_s0  ;;  %s535_s27 = scalar_lea.sflag [#allocation20], %s5409_s0 }
 0x128   : > { %4369 = dma.hbm_to_vmem [thread:$0]  (!%p6470_p2), %s5634_s2, 1024, %s5637_s13, %s6474_s9, %s6459_s24, %s6459_s24, %s6458_s6  }
 0x129   : > { %s4946_s14 = scalar_lea.hbm %s5482_s4, 2048  ;;  %s4951_s21 = scalar_lea.hbm %s6387_s10, 4096 }
 0x12a   : > { %p4947_p11 = scmp.ne.s32.totalorder %s5482_s4, %s4946_s14  ;;  %p4952_p6 = scmp.lt.u32.totalorder %s5482_s4, %s6387_s10 }
 0x12b   : > { %p4953_p1 = scmp.lt.u32.totalorder %s4951_s21, %s4946_s14  ;;  %p4955_p12 = scmp.lt.u32.totalorder %s4946_s14, %s5482_s4 }
 0x12c   : > { %p4949_p10 = pnand %p4947_p11, %p5449_p0 }
 0x12d   : > { %p4954_p5 = por %p4953_p1, %p4952_p6 }
 0x12e   : > { %p4950_p3 = pneg %p4949_p10 }
 0x12f   : > { %p4956_p7 = por %p4955_p12, %p4954_p5 }
 0x131   : > { %p4957_p13 = pnand %p4956_p7, %p4950_p3 }
 0x133   : > { %4960 = shalt.err (!%p4957_p13)
}
 0x134   : > { %s4961_s6 = scalar_lea.vmem %s5485_s8, 2048  ;;  %s5143_s24 = smov [#allocation19]  }
 0x135   : > { %p4962_p9 = scmp.ne.s32.totalorder %s5485_s8, %s4961_s6  ;;  %s4966_s2 = sshll.u32 %s5143_s24, 4  ;;  %s4967_s2 = int_to_ptr.vmem [resolvable:$false] %s4966_s2 }
 0x136   : > { %s4968_s13 = scalar_lea.vmem %s4967_s2, 4096  ;;  %p4969_p11 = scmp.lt.s32.totalorder %s5485_s8, %s4967_s2 }
 0x137   : > { %p4964_p4 = pnand %p4962_p9, %p5449_p0  ;;  %p4970_p10 = scmp.lt.s32.totalorder %s4968_s13, %s4961_s6 }
 0x139   : > { %p4965_p8 = pneg %p4964_p4  ;;  %p4971_p6 = por %p4970_p10, %p4969_p11 }
 0x13b   : > { %p4972_p1 = pnand %p4971_p6, %p4965_p8 }
 0x13d   : > { %4975 = shalt.err (!%p4972_p1)
}
 0x13e   : > { %s6475_s25 = smov 8   ;;  %s6476_s16 = smov 128  }
 0x13f   : > { %4372 = dma.hbm_to_vmem [thread:$0]  (!%p6470_p2), %s5482_s4, 2048, %s5485_s8, %s535_s27, %s6476_s16, %s6476_s16, %s6475_s25  }
 0x140   : > { %s6477_s23 = sld [smem:[#allocation41_spill]] }
 0x146   : > { %p6478_p0 = scmp.ne.s32.totalorder %s6477_s23, 0 }
 0x147   : > { %s6479_s9 = sld [smem:[#allocation38_spill]] (!%p6478_p0)  ;;  %s5695_s14 = sand.u32 (!%p6478_p0), 1, %s5104_s29  }
 0x148   : > { %558 = sbr.rel (%p6478_p0) target bundleno = 2002 (0x7d2), region = 64  ;;  %s3750_s12 = sshll.u32 (!%p6478_p0), %s5695_s14, 6 }
 0x149   : > { %s561_s22 = scalar_lea.sflag (!%p6478_p0), [#allocation8], %s5695_s14  ;;  %s5699_s28 = scalar_lea.vmem (!%p6478_p0), [#allocation7], %s3750_s12 }
 0x14d   : > { %p6480_p3 = scmp.ne.s32.totalorder (!%p6478_p0), %s6479_s9, 0 }
 0x14f   : > { %5051 = dma.done.wait (%p6480_p3), %s561_s22, 1024  }
 0x150   : > { %5053 = vsyncadd (%p6480_p3), %s561_s22, 4294966272  ;;  %s6481_s8 = sld [smem:[#allocation39_spill]]  ;;  %s569_s0 = sand.u32 1, %s5274_s18  }
 0x151   : > { %s571_s4 = sand.u32 1, %s5092_s26   ;;  %s570_s21 = scalar_lea.sflag [#allocation11], %s569_s0 }
 0x152   : > { %s3751_s27 = sshll.u32 %s571_s4, 6 }
 0x153   : > { %s5707_s19 = scalar_lea.vmem [#allocation10], %s3751_s27 }
 0x156   : > { %p6482_p2 = scmp.ne.s32.totalorder %s6481_s8, 0 }
 0x158   : > { %5055 = dma.done.wait (%p6482_p2), %s570_s21, 1024  }
 0x159   : > { %5057 = vsyncadd (%p6482_p2), %s570_s21, 4294966272  ;;  %p6483_p5 = scmp.eq.s32.totalorder %s5274_s18, 0 }
 0x15b   : > { %5059 = dma.done.wait (%p6483_p5), [#allocation11], 2048   ;;  %p6484_p12 = pmov %p6483_p5 }
 0x15c   : > { %s583_s1 = scalar_lea.sflag [#allocation14], %s569_s0  ;;  %s5717_s6 = scalar_lea.vmem [#allocation13], %s3751_s27 }
 0x15d   : > { %5061 = vsyncadd (%p6484_p12), [#allocation11], 4294965248 }
 0x15e   : > { %5063 = dma.done.wait (%p6482_p2), %s583_s1, 1024  }
 0x15f   : > { %5065 = vsyncadd (%p6482_p2), %s583_s1, 4294966272  ;;  %p6485_p7 = pmov %p6483_p5 }
 0x160   : > { %p6486_p13 = pmov %p6483_p5 }
 0x161   : > { %5067 = dma.done.wait (%p6485_p7), [#allocation14], 2048  }
 0x162   : > { %5069 = vsyncadd (%p6486_p13), [#allocation14], 4294965248  ;;  %s3755_s24 = sshll.u32 %s571_s4, 7  ;;  %s596_s2 = scalar_lea.sflag [#allocation17], %s569_s0 }
 0x163   : > { %s5727_s13 = scalar_lea.vmem [#allocation16], %s3755_s24 }
 0x164   : > { %5071 = dma.done.wait (%p6482_p2), %s596_s2, 3072  }
 0x165   : > { %5073 = vsyncadd (%p6482_p2), %s596_s2, 4294964224  ;;  %s5733_s25 = scalar_lea.vmem [#allocation18], %s3751_s27  ;;  %s614_s16 = scalar_lea.sflag [#allocation20], %s569_s0 }
 0x166   : > { %s5735_s23 = scalar_lea.vmem [#allocation19], %s3755_s24 }
 0x167   : > { %5075 = dma.done.wait (%p6482_p2), %s614_s16, 2048  }
 0x168   : > { %5077 = vsyncadd (%p6482_p2), %s614_s16, 4294965248  ;;  %p6487_p9 = pmov %p6483_p5 }
 0x169   : > { %p6488_p4 = pmov %p6483_p5 }
 0x16a   : > { %5079 = dma.done.wait (%p6487_p9), [#allocation20], 2048  }
 0x16b   : > { %5081 = vsyncadd (%p6488_p4), [#allocation20], 4294965248  ;;  %s6489_s9 = sld [smem:[#allocation36_spill]]  ;;  %s6490_s12 = sld [smem:[#allocation35_spill]]  ;;  %v5759_v0 = vld [vmem:[%s5699_s28] sm:$0xf] }
 0x16c   : > { %s3759_s18 = sshll.u32 %s5695_s14, 7  ;;  %s6491_s21 = sld [smem:[#allocation46_spill]]  ;;  %v5762_v1 = vld [vmem:[%s5699_s28 + $0x4] sm:$0xf]  ;;  %v5768_v3 = vld [vmem:[%s5699_s28 + $0x8] sm:$0xf] }
 0x16d   : > { %v5771_v4 = vld [vmem:[%s5699_s28 + $0xc] sm:$0xf]  ;;  %v5774_v5 = vld [vmem:[%s5699_s28 + $0x10] sm:$0xf]  ;;  %v5777_v6 = vld [vmem:[%s5699_s28 + $0x14] sm:$0xf] }
 0x16e   : > { %v5780_v7 = vld [vmem:[%s5699_s28 + $0x18] sm:$0xf]  ;;  %v5783_v8 = vld [vmem:[%s5699_s28 + $0x1c] sm:$0xf]  ;;  %v5794_v9 = vld [vmem:[%s5699_s28 + $0x20] sm:$0xf] }
 0x16f   : > { %v5797_v10 = vld [vmem:[%s5699_s28 + $0x24] sm:$0xf]  ;;  %v5800_v11 = vld [vmem:[%s5699_s28 + $0x28] sm:$0xf]  ;;  %v5803_v12 = vld [vmem:[%s5699_s28 + $0x2c] sm:$0xf] }
 0x170   : > { %v5806_v13 = vld [vmem:[%s5699_s28 + $0x30] sm:$0xf]  ;;  %v5809_v14 = vld [vmem:[%s5699_s28 + $0x34] sm:$0xf]  ;;  %v5812_v15 = vld [vmem:[%s5699_s28 + $0x38] sm:$0xf] }
 0x171   : > { %s3760_s22 = sshll.u32 %s6489_s9, 4  ;;  %s5747_s8 = sld [smem:[#allocation6 + %s6489_s9]]  ;;  %v5815_v16 = vld [vmem:[%s5699_s28 + $0x3c] sm:$0xf] }
 0x172   : > { %p697_p8 = scmp.lt.s32.totalorder %s3760_s22, 31  ;;  %p745_p11 = scmp.eq.s32.totalorder %s6490_s12, 0 }
 0x173   : > { %p702_p10 = scmp.lt.s32.totalorder %s6490_s12, 1  ;;  %s6493_s9 = sld [smem:[#allocation48_spill]] }
 0x174   : > { %s6526_s22 = smov (!%p697_p8, %s3760_s22), 31 }
 0x175   : > { %s3761_s0 = sshll.u32 %s6526_s22, 3  ;;  %s6528_s12 = smov (!%p702_p10, %s6490_s12), 1 }
 0x176   : > { %s5754_s1 = scalar_lea.vmem %s6491_s21, %s3761_s0  ;;  %s3932_s28 = sshll.u32 %s6528_s12, 7 }
 0x177   : > { %p712_p6 = scmp.ne.s32.totalorder %s5747_s8, 0  ;;  %v5765_v2 = vld [vmem:[%s5754_s1] sm:$0xff]  ;;  %v5818_v17 = vld [vmem:[%s5754_s1 + $0x8] sm:$0xff]  ;;  %v5824_v18 = vld [vmem:[%s5754_s1 + $0x10] sm:$0xff]  ;;  %s5872_s12 = scalar_lea.vmem [#allocation22], %s3759_s18 }
 0x178   : > { %v5827_v19 = vld [vmem:[%s5754_s1 + $0x18] sm:$0xff]  ;;  %v5830_v20 = vld [vmem:[%s5754_s1 + $0x20] sm:$0xff]  ;;  %v5833_v21 = vld [vmem:[%s5754_s1 + $0x28] sm:$0xff] }
 0x179   : > { %p5789_p1 = pnand %p745_p11, %p712_p6  ;;  %v5836_v22 = vld [vmem:[%s5754_s1 + $0x30] sm:$0xff]  ;;  %v5839_v23 = vld [vmem:[%s5754_s1 + $0x38] sm:$0xff]  ;;  %v5842_v24 = vld [vmem:[%s5754_s1 + $0x40] sm:$0xff]  ;;  %s5853_s22 = scalar_lea.vmem %s6493_s9, %s3932_s28 }
 0x17a   : > { %v5845_v25 = vld [vmem:[%s5754_s1 + $0x48] sm:$0xff]  ;;  %v5848_v26 = vld [vmem:[%s5754_s1 + $0x50] sm:$0xff]  ;;  %v5856_v27 = vld [vmem:[%s5754_s1 + $0x58] sm:$0xff]  ;;  %v5144_v34 = vmov (!%p5789_p1), 0  }
 0x17b   : > { %v5859_v28 = vld [vmem:[%s5754_s1 + $0x60] sm:$0xff]  ;;  %v5862_v29 = vld [vmem:[%s5754_s1 + $0x68] sm:$0xff]  ;;  %v5865_v30 = vld [vmem:[%s5754_s1 + $0x70] sm:$0xff]  ;;  %749 = sbr.rel (%p5789_p1) target bundleno = 690 (0x2b2), region = 104  ;;  %926 = vmatprep.mubr.bf16.mxu0 (!%p5789_p1), %v5144_v34  ;;  %1279 = vmatprep.mubr.bf16.mxu1 (!%p5789_p1), %v5144_v34 }
 0x17c   : > { %v5868_v31 = vld [vmem:[%s5754_s1 + $0x78] sm:$0xff]  ;;  %v4490_v32 = vld [vmem:[#allocation12 + $0x4] ss:$8 sps:$4 sm:$0xff] (!%p5789_p1)   ;;  %v4494_v35 = vld [vmem:[#allocation12] ss:$8 sps:$4 sm:$0xff] (!%p5789_p1)   ;;  %4488 = vset.pattern.permute.xlu0 (!%p5789_p1), %v5144_v34  ;;  %4489 = vset.pattern.permute.xlu1 (!%p5789_p1), %v5144_v34 }
 0x17d   : > { %v4492_v33 = vld [vmem:[#allocation15 + $0x4] ss:$8 sps:$4 sm:$0xff] (!%p5789_p1)   ;;  %894 = vmatprep.subr.bf16.mxu0 (!%p5789_p1), %v4490_v32  ;;  %v4495_v36 = vld [vmem:[#allocation15] ss:$8 sps:$4 sm:$0xff] (!%p5789_p1)   ;;  %v4496_v37 = vld [vmem:[#allocation12 + $0x14] ss:$8 sps:$4 sm:$0xff] (!%p5789_p1)   ;;  %1009 = vperm.xlu0 (!%p5789_p1), %4488, %v5765_v2  }
 0x17e   : > { %1247 = vmatprep.subr.bf16.mxu1 (!%p5789_p1), %v4492_v33  ;;  %895 = vmatpush1.bf16.msra.mxu0 (!%p5789_p1), %v4494_v35  ;;  %v4498_v38 = vld [vmem:[#allocation15 + $0x14] ss:$8 sps:$4 sm:$0xff] (!%p5789_p1)   ;;  %v4500_v39 = vld [vmem:[#allocation12 + $0x10] ss:$8 sps:$4 sm:$0xff] (!%p5789_p1)   ;;  %v4502_v41 = vld [vmem:[#allocation12 + $0x24] ss:$8 sps:$4 sm:$0xff] (!%p5789_p1)   ;;  %v3764_v33 = vcombine.low (!%p5789_p1), %v5759_v0, %v5762_v1  ;;  %v3765_v35 = vcombine.low (!%p5789_p1), %v5768_v3, %v5771_v4 }
 0x17f   : > { %1248 = vmatpush1.bf16.msra.mxu1 (!%p5789_p1), %v4495_v36  ;;  %896 = vmatprep.subr.bf16.mxu0 (!%p5789_p1), %v4496_v37  ;;  %v4501_v40 = vld [vmem:[#allocation15 + $0x10] ss:$8 sps:$4 sm:$0xff] (!%p5789_p1)   ;;  %v4504_v42 = vld [vmem:[#allocation15 + $0x24] ss:$8 sps:$4 sm:$0xff] (!%p5789_p1)   ;;  %v4506_v43 = vld [vmem:[#allocation12 + $0x20] ss:$8 sps:$4 sm:$0xff] (!%p5789_p1)   ;;  %v3766_v36 = vcombine.low (!%p5789_p1), %v5774_v5, %v5777_v6  ;;  %v3767_v37 = vcombine.low (!%p5789_p1), %v5780_v7, %v5783_v8 }
 0x180   : > { %1249 = vmatprep.subr.bf16.mxu1 (!%p5789_p1), %v4498_v38  ;;  %1019 = vperm.xlu1 (!%p5789_p1), %4489, %v5824_v18   ;;  %v4507_v44 = vld [vmem:[#allocation15 + $0x20] ss:$8 sps:$4 sm:$0xff] (!%p5789_p1)   ;;  %v4508_v45 = vld [vmem:[#allocation12 + $0x34] ss:$8 sps:$4 sm:$0xff] (!%p5789_p1)   ;;  %v4512_v47 = vld [vmem:[#allocation12 + $0x30] ss:$8 sps:$4 sm:$0xff] (!%p5789_p1)   ;;  %v3768_v38 = vcombine.low (!%p5789_p1), %v5794_v9, %v5797_v10 }
 0x181   : > { %1014 = vperm.xlu0 (!%p5789_p1), %4488, %v5818_v17   ;;  %v4510_v46 = vld [vmem:[#allocation15 + $0x34] ss:$8 sps:$4 sm:$0xff] (!%p5789_p1)   ;;  %v4513_v48 = vld [vmem:[#allocation15 + $0x30] ss:$8 sps:$4 sm:$0xff] (!%p5789_p1)   ;;  %v4514_v49 = vld [vmem:[#allocation12 + $0x44] ss:$8 sps:$4 sm:$0xff] (!%p5789_p1)  }
 0x182   : > { %897 = vmatpush1.bf16.msra.mxu0 %v4500_v39  ;;  %v4516_v50 = vld [vmem:[#allocation15 + $0x44] ss:$8 sps:$4 sm:$0xff]   ;;  %v4518_v51 = vld [vmem:[#allocation12 + $0x40] ss:$8 sps:$4 sm:$0xff]   ;;  %v4520_v53 = vld [vmem:[#allocation12 + $0x54] ss:$8 sps:$4 sm:$0xff]   ;;  %v3769_v39 = vcombine.low %v5800_v11, %v5803_v12 }
 0x183   : > { %1250 = vmatpush1.bf16.msra.mxu1 %v4501_v40  ;;  %898 = vmatprep.subr.bf16.mxu0 %v4502_v41  ;;  %v4519_v52 = vld [vmem:[#allocation15 + $0x40] ss:$8 sps:$4 sm:$0xff]   ;;  %v4522_v54 = vld [vmem:[#allocation15 + $0x54] ss:$8 sps:$4 sm:$0xff]   ;;  %v4524_v55 = vld [vmem:[#allocation12 + $0x50] ss:$8 sps:$4 sm:$0xff]   ;;  %v3770_v40 = vcombine.low %v5806_v13, %v5809_v14  ;;  %v3771_v41 = vcombine.low %v5812_v15, %v5815_v16 }
 0x184   : > { %1251 = vmatprep.subr.bf16.mxu1 %v4504_v42  ;;  %1024 = vperm.xlu1 %4489, %v5827_v19   ;;  %v4525_v56 = vld [vmem:[#allocation15 + $0x50] ss:$8 sps:$4 sm:$0xff]   ;;  %v4526_v57 = vld [vmem:[#allocation12 + $0x64] ss:$8 sps:$4 sm:$0xff]   ;;  %v4530_v59 = vld [vmem:[#allocation12 + $0x60] ss:$8 sps:$4 sm:$0xff]  }
 0x185   : > { %1029 = vperm.xlu0 %4488, %v5830_v20   ;;  %v4528_v58 = vld [vmem:[#allocation15 + $0x64] ss:$8 sps:$4 sm:$0xff]   ;;  %v4531_v60 = vld [vmem:[#allocation15 + $0x60] ss:$8 sps:$4 sm:$0xff]   ;;  %v4532_v61 = vld [vmem:[#allocation12 + $0x74] ss:$8 sps:$4 sm:$0xff]  }
 0x186   : > { %899 = vmatpush1.bf16.msra.mxu0 %v4506_v43  ;;  %v4534_v62 = vld [vmem:[#allocation15 + $0x74] ss:$8 sps:$4 sm:$0xff]   ;;  %v4536_v63 = vld [vmem:[#allocation12 + $0x70] ss:$8 sps:$4 sm:$0xff]  }
 0x187   : > { %1252 = vmatpush1.bf16.msra.mxu1 %v4507_v44  ;;  %900 = vmatprep.subr.bf16.mxu0 %v4508_v45  ;;  %v4537_v32 = vld [vmem:[#allocation15 + $0x70] ss:$8 sps:$4 sm:$0xff]  }
 0x188   : > { %1253 = vmatprep.subr.bf16.mxu1 %v4510_v46  ;;  %1034 = vperm.xlu1 %4489, %v5833_v21  }
 0x189   : > { %1039 = vperm.xlu0 %4488, %v5836_v22  }
 0x18a   : > { %901 = vmatpush1.bf16.msra.mxu0 %v4512_v47 }
 0x18b   : > { %1254 = vmatpush1.bf16.msra.mxu1 %v4513_v48  ;;  %902 = vmatprep.subr.bf16.mxu0 %v4514_v49 }
 0x18c   : > { %1255 = vmatprep.subr.bf16.mxu1 %v4516_v50  ;;  %1044 = vperm.xlu1 %4489, %v5839_v23  }
 0x18d   : > { %1049 = vperm.xlu0 %4488, %v5842_v24  }
 0x18e   : > { %903 = vmatpush1.bf16.msra.mxu0 %v4518_v51 }
 0x18f   : > { %1256 = vmatpush1.bf16.msra.mxu1 %v4519_v52  ;;  %904 = vmatprep.subr.bf16.mxu0 %v4520_v53 }
 0x190   : > { %1257 = vmatprep.subr.bf16.mxu1 %v4522_v54  ;;  %1054 = vperm.xlu1 %4489, %v5845_v25  }
 0x191   : > { %1059 = vperm.xlu0 %4488, %v5848_v26  }
 0x192   : > { %905 = vmatpush1.bf16.msra.mxu0 %v4524_v55 }
 0x193   : > { %1258 = vmatpush1.bf16.msra.mxu1 %v4525_v56  ;;  %906 = vmatprep.subr.bf16.mxu0 %v4526_v57 }
 0x194   : > { %1259 = vmatprep.subr.bf16.mxu1 %v4528_v58  ;;  %1064 = vperm.xlu1 %4489, %v5856_v27  }
 0x195   : > { %1069 = vperm.xlu0 %4488, %v5859_v28  }
 0x196   : > { %907 = vmatpush1.bf16.msra.mxu0 %v4530_v59 }
 0x197   : > { %1260 = vmatpush1.bf16.msra.mxu1 %v4531_v60  ;;  %908 = vmatprep.subr.bf16.mxu0 %v4532_v61 }
 0x198   : > { %1261 = vmatprep.subr.bf16.mxu1 %v4534_v62  ;;  %1074 = vperm.xlu1 %4489, %v5862_v29  }
 0x199   : > { %1079 = vperm.xlu0 %4488, %v5865_v30  }
 0x19a   : > { %909 = vmatpush1.bf16.msra.mxu0 %v4536_v63 }
 0x19b   : > { %1262 = vmatpush1.bf16.msra.mxu1 %v4537_v32 }
 0x19c   : > { %1084 = vperm.xlu1 %4489, %v5868_v31  }
 0x19d   : > { %927 = vmatmul.mubr.bf16.vlgmr.msra.gmra.mrb[0].mxu0 %v3764_v33 }
 0x19e   : > { %1280 = vmatmul.mubr.bf16.vlgmr.msra.gmra.mrb[0].mxu1 %v3764_v33  ;;  %936 = vmatprep.mubr.bf16.mxu0 %v5144_v34 }
 0x19f   : > { %1289 = vmatprep.mubr.bf16.mxu1 %v5144_v34 }
 0x1a5   : > { %937 = vmatmul.mubr.bf16.gmra.mrb[4].mxu0 %v3765_v35 }
 0x1a6   : > { %1290 = vmatmul.mubr.bf16.gmra.mrb[4].mxu1 %v3765_v35  ;;  %946 = vmatprep.mubr.bf16.mxu0 %v5144_v34 }
 0x1a7   : > { %1299 = vmatprep.mubr.bf16.mxu1 %v5144_v34 }
 0x1ad   : > { %947 = vmatmul.mubr.bf16.gmra.mrb[8].mxu0 %v3766_v36 }
 0x1ae   : > { %1300 = vmatmul.mubr.bf16.gmra.mrb[8].mxu1 %v3766_v36  ;;  %956 = vmatprep.mubr.bf16.mxu0 %v5144_v34 }
 0x1af   : > { %1309 = vmatprep.mubr.bf16.mxu1 %v5144_v34 }
 0x1b5   : > { %957 = vmatmul.mubr.bf16.gmra.mrb[12].mxu0 %v3767_v37 }
 0x1b6   : > { %1310 = vmatmul.mubr.bf16.gmra.mrb[12].mxu1 %v3767_v37  ;;  %966 = vmatprep.mubr.bf16.mxu0 %v5144_v34 }
 0x1b7   : > { %1319 = vmatprep.mubr.bf16.mxu1 %v5144_v34 }
 0x1bd   : > { %967 = vmatmul.mubr.bf16.gmra.mrb[16].mxu0 %v3768_v38 }
 0x1be   : > { %1320 = vmatmul.mubr.bf16.gmra.mrb[16].mxu1 %v3768_v38  ;;  %976 = vmatprep.mubr.bf16.mxu0 %v5144_v34 }
 0x1bf   : > { %1329 = vmatprep.mubr.bf16.mxu1 %v5144_v34 }
 0x1c5   : > { %977 = vmatmul.mubr.bf16.gmra.mrb[20].mxu0 %v3769_v39 }
 0x1c6   : > { %1330 = vmatmul.mubr.bf16.gmra.mrb[20].mxu1 %v3769_v39  ;;  %986 = vmatprep.mubr.bf16.mxu0 %v5144_v34 }
 0x1c7   : > { %1339 = vmatprep.mubr.bf16.mxu1 %v5144_v34 }
 0x1cd   : > { %987 = vmatmul.mubr.bf16.gmra.mrb[24].mxu0 %v3770_v40 }
 0x1ce   : > { %1340 = vmatmul.mubr.bf16.gmra.mrb[24].mxu1 %v3770_v40  ;;  %996 = vmatprep.mubr.bf16.mxu0 %v5144_v34 }
 0x1cf   : > { %1349 = vmatprep.mubr.bf16.mxu1 %v5144_v34 }
 0x1d5   : > { %997 = vmatmul.mubr.bf16.gmra.mrb[28].mxu0 %v3771_v41 }
 0x1d6   : > { %1350 = vmatmul.mubr.bf16.gmra.mrb[28].mxu1 %v3771_v41 }
 0x1fc   : > { %v1010_v42 = vpop.permute.xlu0 %1009 }
 0x1ff   : > { %v1020_v44 = vpop.permute.xlu1 %1019 }
 0x200   : > { %v1015_v43 = vpop.permute.xlu0 %1014 }
 0x203   : > { %v1025_v32 = vpop.permute.xlu1 %1024 }
 0x270   : > { %v928_v45 = vpop.f32.mrb[0].mxu0 }
 0x271   : > { %v1281_v46 = vpop.f32.mrb[0].mxu1  ;;  %v930_v47 = vpop.f32.mrb[1].mxu0  ;;  %v1087_v51 = vmul.f32 %v1010_v42, %v928_v45 }
 0x272   : > { %v1283_v48 = vpop.f32.mrb[1].mxu1  ;;  %v932_v49 = vpop.f32.mrb[2].mxu0  ;;  %v1360_v52 = vmul.f32 %v1281_v46, %v1010_v42  ;;  %v1088_v56 = vmul.f32 %v1010_v42, %v930_v47 }
 0x273   : > { %v1285_v50 = vpop.f32.mrb[2].mxu1  ;;  %v1089_v53 = vmul.f32 %v1015_v43, %v932_v49  ;;  %v934_v55 = vpop.f32.mrb[3].mxu0  ;;  %v1361_v57 = vmul.f32 %v1283_v48, %v1010_v42 }
 0x274   : > { %v1362_v54 = vmul.f32 %v1285_v50, %v1015_v43  ;;  %v1287_v34 = vpop.f32.mrb[3].mxu1  ;;  %v1090_v58 = vmul.f32 %v1015_v43, %v934_v55  ;;  %v1035_v55 = vpop.permute.xlu1 %1034 }
 0x275   : > { %v1363_v59 = vmul.f32 %v1287_v34, %v1015_v43  ;;  %v1119_v60 = vpack.c.bf16 %v1089_v53, %v1087_v51  ;;  %v1030_v34 = vpop.permute.xlu0 %1029 }
 0x276   : > { %v1392_v61 = vpack.c.bf16 %v1362_v54, %v1360_v52  ;;  %v1120_v62 = vpack.c.bf16 %v1090_v58, %v1088_v56 }
 0x277   : > { %v1393_v63 = vpack.c.bf16 %v1363_v59, %v1361_v57  ;;  %1135 = vst [vmem:[#allocation2] sm:$0xff] %v1119_v60 }
 0x278   : > { %1408 = vst [vmem:[#allocation3] sm:$0xff] %v1392_v61  ;;  %1136 = vst [vmem:[#allocation2 + $0x8] sm:$0xff] %v1120_v62  ;;  %v938_v33 = vpop.f32.mrb[4].mxu0 }
 0x279   : > { %1409 = vst [vmem:[#allocation3 + $0x8] sm:$0xff] %v1393_v63  ;;  %v1291_v35 = vpop.f32.mrb[4].mxu1  ;;  %v940_v36 = vpop.f32.mrb[5].mxu0  ;;  %v1091_v40 = vmul.f32 %v1020_v44, %v938_v33 }
 0x27a   : > { %v1293_v37 = vpop.f32.mrb[5].mxu1  ;;  %v942_v38 = vpop.f32.mrb[6].mxu0  ;;  %v1364_v41 = vmul.f32 %v1291_v35, %v1020_v44  ;;  %v1092_v47 = vmul.f32 %v1020_v44, %v940_v36 }
 0x27b   : > { %v1295_v39 = vpop.f32.mrb[6].mxu1  ;;  %v1093_v42 = vmul.f32 %v1025_v32, %v942_v38  ;;  %v944_v43 = vpop.f32.mrb[7].mxu0  ;;  %v1365_v48 = vmul.f32 %v1293_v37, %v1020_v44 }
 0x27c   : > { %v1366_v45 = vmul.f32 %v1295_v39, %v1025_v32  ;;  %v1297_v46 = vpop.f32.mrb[7].mxu1  ;;  %v1094_v49 = vmul.f32 %v1025_v32, %v944_v43  ;;  %v1045_v43 = vpop.permute.xlu1 %1044 }
 0x27d   : > { %v1367_v50 = vmul.f32 %v1297_v46, %v1025_v32  ;;  %v1121_v51 = vpack.c.bf16 %v1093_v42, %v1091_v40  ;;  %v1040_v46 = vpop.permute.xlu0 %1039 }
 0x27e   : > { %v1394_v52 = vpack.c.bf16 %v1366_v45, %v1364_v41  ;;  %v1122_v53 = vpack.c.bf16 %v1094_v49, %v1092_v47 }
 0x27f   : > { %v1395_v54 = vpack.c.bf16 %v1367_v50, %v1365_v48  ;;  %1137 = vst [vmem:[#allocation2 + $0x10] sm:$0xff] %v1121_v51 }
 0x280   : > { %1410 = vst [vmem:[#allocation3 + $0x10] sm:$0xff] %v1394_v52  ;;  %1138 = vst [vmem:[#allocation2 + $0x18] sm:$0xff] %v1122_v53  ;;  %v948_v56 = vpop.f32.mrb[8].mxu0 }
 0x281   : > { %1411 = vst [vmem:[#allocation3 + $0x18] sm:$0xff] %v1395_v54  ;;  %v1301_v57 = vpop.f32.mrb[8].mxu1  ;;  %v950_v58 = vpop.f32.mrb[9].mxu0  ;;  %v1095_v62 = vmul.f32 %v1030_v34, %v948_v56 }
 0x282   : > { %v1303_v59 = vpop.f32.mrb[9].mxu1  ;;  %v952_v60 = vpop.f32.mrb[10].mxu0  ;;  %v1368_v44 = vmul.f32 %v1301_v57, %v1030_v34  ;;  %v1096_v36 = vmul.f32 %v1030_v34, %v950_v58 }
 0x283   : > { %v1305_v61 = vpop.f32.mrb[10].mxu1  ;;  %v1097_v63 = vmul.f32 %v1035_v55, %v952_v60  ;;  %v954_v33 = vpop.f32.mrb[11].mxu0  ;;  %v1369_v37 = vmul.f32 %v1303_v59, %v1030_v34 }
 0x284   : > { %v1370_v32 = vmul.f32 %v1305_v61, %v1035_v55  ;;  %v1307_v35 = vpop.f32.mrb[11].mxu1  ;;  %v1098_v38 = vmul.f32 %v1035_v55, %v954_v33  ;;  %v1055_v33 = vpop.permute.xlu1 %1054 }
 0x285   : > { %v1371_v39 = vmul.f32 %v1307_v35, %v1035_v55  ;;  %v1123_v40 = vpack.c.bf16 %v1097_v63, %v1095_v62  ;;  %v1050_v35 = vpop.permute.xlu0 %1049 }
 0x286   : > { %v1396_v41 = vpack.c.bf16 %v1370_v32, %v1368_v44  ;;  %v1124_v42 = vpack.c.bf16 %v1098_v38, %v1096_v36 }
 0x287   : > { %v1397_v45 = vpack.c.bf16 %v1371_v39, %v1369_v37  ;;  %1139 = vst [vmem:[#allocation2 + $0x20] sm:$0xff] %v1123_v40 }
 0x288   : > { %1412 = vst [vmem:[#allocation3 + $0x20] sm:$0xff] %v1396_v41  ;;  %1140 = vst [vmem:[#allocation2 + $0x28] sm:$0xff] %v1124_v42  ;;  %v958_v47 = vpop.f32.mrb[12].mxu0 }
 0x289   : > { %1413 = vst [vmem:[#allocation3 + $0x28] sm:$0xff] %v1397_v45  ;;  %v1311_v48 = vpop.f32.mrb[12].mxu1  ;;  %v960_v49 = vpop.f32.mrb[13].mxu0  ;;  %v1099_v53 = vmul.f32 %v1040_v46, %v958_v47 }
 0x28a   : > { %v1313_v50 = vpop.f32.mrb[13].mxu1  ;;  %v962_v51 = vpop.f32.mrb[14].mxu0  ;;  %v1372_v54 = vmul.f32 %v1311_v48, %v1040_v46  ;;  %v1100_v58 = vmul.f32 %v1040_v46, %v960_v49 }
 0x28b   : > { %v1315_v52 = vpop.f32.mrb[14].mxu1  ;;  %v1101_v34 = vmul.f32 %v1045_v43, %v962_v51  ;;  %v964_v56 = vpop.f32.mrb[15].mxu0  ;;  %v1373_v59 = vmul.f32 %v1313_v50, %v1040_v46 }
 0x28c   : > { %v1374_v55 = vmul.f32 %v1315_v52, %v1045_v43  ;;  %v1317_v57 = vpop.f32.mrb[15].mxu1  ;;  %v1102_v60 = vmul.f32 %v1045_v43, %v964_v56  ;;  %v1065_v56 = vpop.permute.xlu1 %1064 }
 0x28d   : > { %v1375_v61 = vmul.f32 %v1317_v57, %v1045_v43  ;;  %v1125_v62 = vpack.c.bf16 %v1101_v34, %v1099_v53  ;;  %v1060_v57 = vpop.permute.xlu0 %1059 }
 0x28e   : > { %v1398_v44 = vpack.c.bf16 %v1374_v55, %v1372_v54  ;;  %v1126_v63 = vpack.c.bf16 %v1102_v60, %v1100_v58 }
 0x28f   : > { %v1399_v32 = vpack.c.bf16 %v1375_v61, %v1373_v59  ;;  %1141 = vst [vmem:[#allocation2 + $0x30] sm:$0xff] %v1125_v62 }
 0x290   : > { %1414 = vst [vmem:[#allocation3 + $0x30] sm:$0xff] %v1398_v44  ;;  %1142 = vst [vmem:[#allocation2 + $0x38] sm:$0xff] %v1126_v63  ;;  %v968_v36 = vpop.f32.mrb[16].mxu0 }
 0x291   : > { %1415 = vst [vmem:[#allocation3 + $0x38] sm:$0xff] %v1399_v32  ;;  %v1321_v37 = vpop.f32.mrb[16].mxu1  ;;  %v970_v38 = vpop.f32.mrb[17].mxu0  ;;  %v1103_v42 = vmul.f32 %v1050_v35, %v968_v36 }
 0x292   : > { %v1323_v39 = vpop.f32.mrb[17].mxu1  ;;  %v972_v40 = vpop.f32.mrb[18].mxu0  ;;  %v1376_v45 = vmul.f32 %v1321_v37, %v1050_v35  ;;  %v1104_v49 = vmul.f32 %v1050_v35, %v970_v38 }
 0x293   : > { %v1325_v41 = vpop.f32.mrb[18].mxu1  ;;  %v1105_v46 = vmul.f32 %v1055_v33, %v972_v40  ;;  %v974_v47 = vpop.f32.mrb[19].mxu0  ;;  %v1377_v50 = vmul.f32 %v1323_v39, %v1050_v35 }
 0x294   : > { %v1378_v43 = vmul.f32 %v1325_v41, %v1055_v33  ;;  %v1327_v48 = vpop.f32.mrb[19].mxu1  ;;  %v1106_v51 = vmul.f32 %v1055_v33, %v974_v47  ;;  %v1075_v47 = vpop.permute.xlu1 %1074 }
 0x295   : > { %v1379_v52 = vmul.f32 %v1327_v48, %v1055_v33  ;;  %v1127_v53 = vpack.c.bf16 %v1105_v46, %v1103_v42  ;;  %v1070_v48 = vpop.permute.xlu0 %1069 }
 0x296   : > { %v1400_v54 = vpack.c.bf16 %v1378_v43, %v1376_v45  ;;  %v1128_v34 = vpack.c.bf16 %v1106_v51, %v1104_v49 }
 0x297   : > { %v1401_v55 = vpack.c.bf16 %v1379_v52, %v1377_v50  ;;  %1143 = vst [vmem:[#allocation2 + $0x40] sm:$0xff] %v1127_v53 }
 0x298   : > { %1416 = vst [vmem:[#allocation3 + $0x40] sm:$0xff] %v1400_v54  ;;  %1144 = vst [vmem:[#allocation2 + $0x48] sm:$0xff] %v1128_v34  ;;  %v978_v58 = vpop.f32.mrb[20].mxu0 }
 0x299   : > { %1417 = vst [vmem:[#allocation3 + $0x48] sm:$0xff] %v1401_v55  ;;  %v1331_v59 = vpop.f32.mrb[20].mxu1  ;;  %v980_v60 = vpop.f32.mrb[21].mxu0  ;;  %v1107_v63 = vmul.f32 %v1060_v57, %v978_v58 }
 0x29a   : > { %v1333_v61 = vpop.f32.mrb[21].mxu1  ;;  %v982_v62 = vpop.f32.mrb[22].mxu0  ;;  %v1380_v32 = vmul.f32 %v1331_v59, %v1060_v57  ;;  %v1108_v38 = vmul.f32 %v1060_v57, %v980_v60 }
 0x29b   : > { %v1335_v44 = vpop.f32.mrb[22].mxu1  ;;  %v1109_v35 = vmul.f32 %v1065_v56, %v982_v62  ;;  %v984_v36 = vpop.f32.mrb[23].mxu0  ;;  %v1381_v39 = vmul.f32 %v1333_v61, %v1060_v57 }
 0x29c   : > { %v1382_v33 = vmul.f32 %v1335_v44, %v1065_v56  ;;  %v1337_v37 = vpop.f32.mrb[23].mxu1  ;;  %v1110_v40 = vmul.f32 %v1065_v56, %v984_v36  ;;  %v1085_v36 = vpop.permute.xlu1 %1084 }
 0x29d   : > { %v1383_v41 = vmul.f32 %v1337_v37, %v1065_v56  ;;  %v1129_v42 = vpack.c.bf16 %v1109_v35, %v1107_v63  ;;  %v1080_v37 = vpop.permute.xlu0 %1079 }
 0x29e   : > { %v1402_v45 = vpack.c.bf16 %v1382_v33, %v1380_v32  ;;  %v1130_v46 = vpack.c.bf16 %v1110_v40, %v1108_v38 }
 0x29f   : > { %v1403_v43 = vpack.c.bf16 %v1383_v41, %v1381_v39  ;;  %1145 = vst [vmem:[#allocation2 + $0x50] sm:$0xff] %v1129_v42 }
 0x2a0   : > { %1418 = vst [vmem:[#allocation3 + $0x50] sm:$0xff] %v1402_v45  ;;  %1146 = vst [vmem:[#allocation2 + $0x58] sm:$0xff] %v1130_v46  ;;  %v988_v49 = vpop.f32.mrb[24].mxu0 }
 0x2a1   : > { %1419 = vst [vmem:[#allocation3 + $0x58] sm:$0xff] %v1403_v43  ;;  %v1341_v50 = vpop.f32.mrb[24].mxu1  ;;  %v990_v51 = vpop.f32.mrb[25].mxu0  ;;  %v1111_v34 = vmul.f32 %v1070_v48, %v988_v49 }
 0x2a2   : > { %v1343_v52 = vpop.f32.mrb[25].mxu1  ;;  %v992_v53 = vpop.f32.mrb[26].mxu0  ;;  %v1384_v55 = vmul.f32 %v1341_v50, %v1070_v48  ;;  %v1112_v60 = vmul.f32 %v1070_v48, %v990_v51 }
 0x2a3   : > { %v1345_v54 = vpop.f32.mrb[26].mxu1  ;;  %v1113_v57 = vmul.f32 %v1075_v47, %v992_v53  ;;  %v994_v58 = vpop.f32.mrb[27].mxu0  ;;  %v1385_v61 = vmul.f32 %v1343_v52, %v1070_v48 }
 0x2a4   : > { %v1386_v56 = vmul.f32 %v1345_v54, %v1075_v47  ;;  %v1347_v59 = vpop.f32.mrb[27].mxu1  ;;  %v1114_v62 = vmul.f32 %v1075_v47, %v994_v58 }
 0x2a5   : > { %v1387_v44 = vmul.f32 %v1347_v59, %v1075_v47  ;;  %v1131_v63 = vpack.c.bf16 %v1113_v57, %v1111_v34 }
 0x2a6   : > { %v1404_v32 = vpack.c.bf16 %v1386_v56, %v1384_v55  ;;  %v1132_v35 = vpack.c.bf16 %v1114_v62, %v1112_v60 }
 0x2a7   : > { %v1405_v33 = vpack.c.bf16 %v1387_v44, %v1385_v61  ;;  %1147 = vst [vmem:[#allocation2 + $0x60] sm:$0xff] %v1131_v63 }
 0x2a8   : > { %1420 = vst [vmem:[#allocation3 + $0x60] sm:$0xff] %v1404_v32  ;;  %1148 = vst [vmem:[#allocation2 + $0x68] sm:$0xff] %v1132_v35  ;;  %v998_v38 = vpop.f32.mrb[28].mxu0 }
 0x2a9   : > { %1421 = vst [vmem:[#allocation3 + $0x68] sm:$0xff] %v1405_v33  ;;  %v1351_v39 = vpop.f32.mrb[28].mxu1  ;;  %v1000_v40 = vpop.f32.mrb[29].mxu0  ;;  %v1115_v46 = vmul.f32 %v1080_v37, %v998_v38 }
 0x2aa   : > { %v1353_v41 = vpop.f32.mrb[29].mxu1  ;;  %v1002_v42 = vpop.f32.mrb[30].mxu0  ;;  %v1388_v43 = vmul.f32 %v1351_v39, %v1080_v37  ;;  %v1116_v51 = vmul.f32 %v1080_v37, %v1000_v40 }
 0x2ab   : > { %v1355_v45 = vpop.f32.mrb[30].mxu1  ;;  %v1117_v48 = vmul.f32 %v1085_v36, %v1002_v42  ;;  %v1004_v49 = vpop.f32.mrb[31].mxu0  ;;  %v1389_v52 = vmul.f32 %v1353_v41, %v1080_v37 }
 0x2ac   : > { %v1390_v47 = vmul.f32 %v1355_v45, %v1085_v36  ;;  %v1357_v50 = vpop.f32.mrb[31].mxu1  ;;  %v1118_v53 = vmul.f32 %v1085_v36, %v1004_v49 }
 0x2ad   : > { %v1391_v54 = vmul.f32 %v1357_v50, %v1085_v36  ;;  %v1133_v34 = vpack.c.bf16 %v1117_v48, %v1115_v46 }
 0x2ae   : > { %v1406_v55 = vpack.c.bf16 %v1390_v47, %v1388_v43  ;;  %v1134_v57 = vpack.c.bf16 %v1118_v53, %v1116_v51 }
 0x2af   : > { %v1407_v56 = vpack.c.bf16 %v1391_v54, %v1389_v52  ;;  %1149 = vst [vmem:[#allocation2 + $0x70] sm:$0xff] %v1133_v34 }
 0x2b0   : > { %1422 = vst [vmem:[#allocation3 + $0x70] sm:$0xff] %v1406_v55  ;;  %1150 = vst [vmem:[#allocation2 + $0x78] sm:$0xff] %v1134_v57 }
 0x2b1   : > { %1423 = vst [vmem:[#allocation3 + $0x78] sm:$0xff] %v1407_v56 }
 0x2b2 PF: > { %p1424_p0 = scmp.eq.s32.totalorder %s5747_s8, 0 }
 0x2b4   : > { %p1425_p3 = pnand %p1424_p0, %p745_p11 }
 0x2b5   : > { %v5145_v58 = vmov (!%p1425_p3), 0  }
 0x2b6   : > { %1428 = sbr.rel (%p1425_p3) target bundleno = 710 (0x2c6), region = 108  ;;  %1429 = vst [vmem:[#allocation2] sm:$0xff] (!%p1425_p3), %v5145_v58  ;;  %1430 = vst [vmem:[#allocation2 + $0x8] sm:$0xff] (!%p1425_p3), %v5145_v58 }
 0x2b7   : > { %1431 = vst [vmem:[#allocation2 + $0x10] sm:$0xff] (!%p1425_p3), %v5145_v58  ;;  %1432 = vst [vmem:[#allocation2 + $0x18] sm:$0xff] (!%p1425_p3), %v5145_v58 }
 0x2b8   : > { %1433 = vst [vmem:[#allocation2 + $0x20] sm:$0xff] (!%p1425_p3), %v5145_v58  ;;  %1434 = vst [vmem:[#allocation2 + $0x28] sm:$0xff] (!%p1425_p3), %v5145_v58 }
 0x2b9   : > { %1435 = vst [vmem:[#allocation2 + $0x30] sm:$0xff] (!%p1425_p3), %v5145_v58  ;;  %1436 = vst [vmem:[#allocation2 + $0x38] sm:$0xff] (!%p1425_p3), %v5145_v58 }
 0x2ba   : > { %1437 = vst [vmem:[#allocation2 + $0x40] sm:$0xff] (!%p1425_p3), %v5145_v58  ;;  %1438 = vst [vmem:[#allocation2 + $0x48] sm:$0xff] (!%p1425_p3), %v5145_v58 }
 0x2bb   : > { %1439 = vst [vmem:[#allocation2 + $0x50] sm:$0xff] (!%p1425_p3), %v5145_v58  ;;  %1440 = vst [vmem:[#allocation2 + $0x58] sm:$0xff] (!%p1425_p3), %v5145_v58 }
 0x2bc   : > { %1441 = vst [vmem:[#allocation2 + $0x60] sm:$0xff] (!%p1425_p3), %v5145_v58  ;;  %1442 = vst [vmem:[#allocation2 + $0x68] sm:$0xff] (!%p1425_p3), %v5145_v58 }
 0x2bd   : > { %1443 = vst [vmem:[#allocation2 + $0x70] sm:$0xff] %v5145_v58  ;;  %1444 = vst [vmem:[#allocation2 + $0x78] sm:$0xff] %v5145_v58 }
 0x2be   : > { %1445 = vst [vmem:[#allocation3] sm:$0xff] %v5145_v58  ;;  %1446 = vst [vmem:[#allocation3 + $0x8] sm:$0xff] %v5145_v58 }
 0x2bf   : > { %1447 = vst [vmem:[#allocation3 + $0x10] sm:$0xff] %v5145_v58  ;;  %1448 = vst [vmem:[#allocation3 + $0x18] sm:$0xff] %v5145_v58 }
 0x2c0   : > { %1449 = vst [vmem:[#allocation3 + $0x20] sm:$0xff] %v5145_v58  ;;  %1450 = vst [vmem:[#allocation3 + $0x28] sm:$0xff] %v5145_v58 }
 0x2c1   : > { %1451 = vst [vmem:[#allocation3 + $0x30] sm:$0xff] %v5145_v58  ;;  %1452 = vst [vmem:[#allocation3 + $0x38] sm:$0xff] %v5145_v58 }
 0x2c2   : > { %1453 = vst [vmem:[#allocation3 + $0x40] sm:$0xff] %v5145_v58  ;;  %1454 = vst [vmem:[#allocation3 + $0x48] sm:$0xff] %v5145_v58 }
 0x2c3   : > { %1455 = vst [vmem:[#allocation3 + $0x50] sm:$0xff] %v5145_v58  ;;  %1456 = vst [vmem:[#allocation3 + $0x58] sm:$0xff] %v5145_v58 }
 0x2c4   : > { %1457 = vst [vmem:[#allocation3 + $0x60] sm:$0xff] %v5145_v58  ;;  %1458 = vst [vmem:[#allocation3 + $0x68] sm:$0xff] %v5145_v58 }
 0x2c5   : > { %1459 = vst [vmem:[#allocation3 + $0x70] sm:$0xff] %v5145_v58  ;;  %1460 = vst [vmem:[#allocation3 + $0x78] sm:$0xff] %v5145_v58 }
 0x2c6 PF: > { %s6495_s0 = sld [smem:[#allocation35_spill]] }
 0x2cc   : > { %p3804_p2 = scmp.ne.s32.totalorder %s6495_s0, 0 }
 0x2cd   : > { %v5146_v59 = vmov (!%p3804_p2), 0.0  }
 0x2ce   : > { %1463 = sbr.rel (%p3804_p2) target bundleno = 734 (0x2de), region = 112  ;;  %1464 = vst [vmem:[#allocation4] sm:$0xff] (!%p3804_p2), %v5146_v59  ;;  %1465 = vst [vmem:[#allocation4 + $0x8] sm:$0xff] (!%p3804_p2), %v5146_v59 }
 0x2cf   : > { %1466 = vst [vmem:[#allocation4 + $0x10] sm:$0xff] (!%p3804_p2), %v5146_v59  ;;  %1467 = vst [vmem:[#allocation4 + $0x18] sm:$0xff] (!%p3804_p2), %v5146_v59 }
 0x2d0   : > { %1468 = vst [vmem:[#allocation4 + $0x20] sm:$0xff] (!%p3804_p2), %v5146_v59  ;;  %1469 = vst [vmem:[#allocation4 + $0x28] sm:$0xff] (!%p3804_p2), %v5146_v59 }
 0x2d1   : > { %1470 = vst [vmem:[#allocation4 + $0x30] sm:$0xff] (!%p3804_p2), %v5146_v59  ;;  %1471 = vst [vmem:[#allocation4 + $0x38] sm:$0xff] (!%p3804_p2), %v5146_v59 }
 0x2d2   : > { %1472 = vst [vmem:[#allocation4 + $0x40] sm:$0xff] (!%p3804_p2), %v5146_v59  ;;  %1473 = vst [vmem:[#allocation4 + $0x48] sm:$0xff] (!%p3804_p2), %v5146_v59 }
 0x2d3   : > { %1474 = vst [vmem:[#allocation4 + $0x50] sm:$0xff] (!%p3804_p2), %v5146_v59  ;;  %1475 = vst [vmem:[#allocation4 + $0x58] sm:$0xff] (!%p3804_p2), %v5146_v59 }
 0x2d4   : > { %1476 = vst [vmem:[#allocation4 + $0x60] sm:$0xff] (!%p3804_p2), %v5146_v59  ;;  %1477 = vst [vmem:[#allocation4 + $0x68] sm:$0xff] (!%p3804_p2), %v5146_v59 }
 0x2d5   : > { %1478 = vst [vmem:[#allocation4 + $0x70] sm:$0xff] %v5146_v59  ;;  %1479 = vst [vmem:[#allocation4 + $0x78] sm:$0xff] %v5146_v59 }
 0x2d6   : > { %1480 = vst [vmem:[#allocation4 + $0x80] sm:$0xff] %v5146_v59  ;;  %1481 = vst [vmem:[#allocation4 + $0x88] sm:$0xff] %v5146_v59 }
 0x2d7   : > { %1482 = vst [vmem:[#allocation4 + $0x90] sm:$0xff] %v5146_v59  ;;  %1483 = vst [vmem:[#allocation4 + $0x98] sm:$0xff] %v5146_v59 }
 0x2d8   : > { %1484 = vst [vmem:[#allocation4 + $0xa0] sm:$0xff] %v5146_v59  ;;  %1485 = vst [vmem:[#allocation4 + $0xa8] sm:$0xff] %v5146_v59 }
 0x2d9   : > { %1486 = vst [vmem:[#allocation4 + $0xb0] sm:$0xff] %v5146_v59  ;;  %1487 = vst [vmem:[#allocation4 + $0xb8] sm:$0xff] %v5146_v59 }
 0x2da   : > { %1488 = vst [vmem:[#allocation4 + $0xc0] sm:$0xff] %v5146_v59  ;;  %1489 = vst [vmem:[#allocation4 + $0xc8] sm:$0xff] %v5146_v59 }
 0x2db   : > { %1490 = vst [vmem:[#allocation4 + $0xd0] sm:$0xff] %v5146_v59  ;;  %1491 = vst [vmem:[#allocation4 + $0xd8] sm:$0xff] %v5146_v59 }
 0x2dc   : > { %1492 = vst [vmem:[#allocation4 + $0xe0] sm:$0xff] %v5146_v59  ;;  %1493 = vst [vmem:[#allocation4 + $0xe8] sm:$0xff] %v5146_v59 }
 0x2dd   : > { %1494 = vst [vmem:[#allocation4 + $0xf0] sm:$0xff] %v5146_v59  ;;  %1495 = vst [vmem:[#allocation4 + $0xf8] sm:$0xff] %v5146_v59 }
 0x2de PF: > { %v4538_v60 = vld [vmem:[%s5853_s22 + $0x40] sm:$0xff]   ;;  %v5937_v61 = vcombine.low %v5759_v0, %v5762_v1  ;;  %v4541_v63 = vld [vmem:[%s5853_s22 + $0x48] sm:$0xff]   ;;  %v4544_v0 = vld [vmem:[%s5853_s22 + $0x50] sm:$0xff]   ;;  %v5967_v55 = vcombine.low %v5768_v3, %v5771_v4  ;;  %v5973_v59 = vcombine.low %v5774_v5, %v5777_v6  ;;  %v5983_v6 = vcombine.low %v5780_v7, %v5783_v8 }
 0x2df   : > { %v4539_v62 = vld [vmem:[%s5707_s19] sm:$0xff]   ;;  %3934 = vmatprep.subr.bf16.mxu0 %v4538_v60  ;;  %v4542_v32 = vld [vmem:[%s5707_s19 + $0x8] sm:$0xff]   ;;  %v4545_v1 = vld [vmem:[%s5707_s19 + $0x10] sm:$0xff]  }
 0x2e0   : > { %v4540_v44 = vld [vmem:[%s5853_s22] sm:$0xff]   ;;  %4190 = vmatprep.mubr.bf16.mxu1 %v5937_v61  ;;  %4174 = vmatprep.subr.bf16.mxu1 %v4539_v62  ;;  %v4543_v35 = vld [vmem:[%s5853_s22 + $0x8] sm:$0xff]   ;;  %v4546_v33 = vld [vmem:[%s5853_s22 + $0x10] sm:$0xff]  }
 0x2e1   : > { %3935 = vmatpush3.bf16.msra.mxu0 %v4540_v44  ;;  %4175 = vmatpush3.bf16.msra.mxu1 %v4539_v62  ;;  %v4547_v36 = vld [vmem:[%s5853_s22 + $0x58] sm:$0xff]   ;;  %v4550_v39 = vld [vmem:[%s5853_s22 + $0x60] sm:$0xff]   ;;  %v4553_v42 = vld [vmem:[%s5853_s22 + $0x68] sm:$0xff]  }
 0x2e2   : > { %3936 = vmatprep.subr.bf16.mxu0 %v4541_v63  ;;  %4176 = vmatprep.subr.bf16.mxu1 %v4542_v32  ;;  %v4548_v37 = vld [vmem:[%s5707_s19 + $0x18] sm:$0xff]   ;;  %v4551_v40 = vld [vmem:[%s5707_s19 + $0x20] sm:$0xff]   ;;  %v4554_v45 = vld [vmem:[%s5707_s19 + $0x28] sm:$0xff]  }
 0x2e3   : > { %v4549_v38 = vld [vmem:[%s5853_s22 + $0x18] sm:$0xff]   ;;  %v4552_v41 = vld [vmem:[%s5853_s22 + $0x20] sm:$0xff]   ;;  %v4555_v46 = vld [vmem:[%s5853_s22 + $0x28] sm:$0xff]  }
 0x2e4   : > { %v4556_v43 = vld [vmem:[%s5853_s22 + $0x70] sm:$0xff]   ;;  %v4559_v49 = vld [vmem:[%s5853_s22 + $0x78] sm:$0xff]   ;;  %v1513_v50 = vld [vmem:[#allocation2 + $0x8] sm:$0xff] }
 0x2e5   : > { %3937 = vmatpush3.bf16.msra.mxu0 %v4543_v35  ;;  %4177 = vmatpush3.bf16.msra.mxu1 %v4542_v32  ;;  %v4557_v48 = vld [vmem:[%s5707_s19 + $0x30] sm:$0xff]   ;;  %v4560_v51 = vld [vmem:[%s5707_s19 + $0x38] sm:$0xff]   ;;  %v4562_v53 = vld [vmem:[%s5727_s13 + $0x40] sm:$0xff]   ;;  %v5989_v35 = vcombine.low %v5794_v9, %v5797_v10  ;;  %v5998_v9 = vcombine.low %v5800_v11, %v5803_v12 }
 0x2e6   : > { %3938 = vmatprep.subr.bf16.mxu0 %v4544_v0  ;;  %4178 = vmatprep.subr.bf16.mxu1 %v4545_v1  ;;  %v4558_v47 = vld [vmem:[%s5853_s22 + $0x30] sm:$0xff]   ;;  %v4561_v52 = vld [vmem:[%s5853_s22 + $0x38] sm:$0xff]   ;;  %v4564_v54 = vld [vmem:[%s5717_s6] sm:$0xff]  }
 0x2e7   : > { %1688 = vmatprep.mubr.bf16.mxu0 %v1513_v50  ;;  %v1512_v34 = vld [vmem:[#allocation2] sm:$0xff]  ;;  %v4565_v56 = vld [vmem:[%s5727_s13 + $0x48] sm:$0xff]   ;;  %v1515_v58 = vld [vmem:[#allocation2 + $0x18] sm:$0xff] }
 0x2e8   : > { %v4563_v57 = vld [vmem:[%s5727_s13] sm:$0xff]   ;;  %v4569_v60 = vld [vmem:[%s5717_s6 + $0x8] sm:$0xff]   ;;  %v4567_v4 = vld [vmem:[%s5727_s13 + $0x50] sm:$0xff]  }
 0x2e9   : > { %3939 = vmatpush3.bf16.msra.mxu0 %v4546_v33  ;;  %4179 = vmatpush3.bf16.msra.mxu1 %v4545_v1  ;;  %v4566_v3 = vld [vmem:[%s5727_s13 + $0x8] sm:$0xff]   ;;  %v4574_v62 = vld [vmem:[%s5717_s6 + $0x10] sm:$0xff]   ;;  %v4570_v63 = vld [vmem:[%s5727_s13 + $0x58] sm:$0xff]  }
 0x2ea   : > { %3940 = vmatprep.subr.bf16.mxu0 %v4547_v36  ;;  %4180 = vmatprep.subr.bf16.mxu1 %v4548_v37  ;;  %v1514_v5 = vld [vmem:[#allocation2 + $0x10] sm:$0xff]  ;;  %v1517_v32 = vld [vmem:[#allocation2 + $0x28] sm:$0xff]  ;;  %v4571_v0 = vld [vmem:[%s5727_s13 + $0x18] sm:$0xff]  }
 0x2eb   : > { %v4568_v44 = vld [vmem:[%s5727_s13 + $0x10] sm:$0xff]   ;;  %v4579_v7 = vld [vmem:[%s5717_s6 + $0x18] sm:$0xff]   ;;  %v4572_v8 = vld [vmem:[%s5727_s13 + $0x60] sm:$0xff]  }
 0x2ec   : > { %v1516_v1 = vld [vmem:[#allocation2 + $0x20] sm:$0xff]  ;;  %v4575_v33 = vld [vmem:[%s5727_s13 + $0x68] sm:$0xff]   ;;  %v1519_v36 = vld [vmem:[#allocation2 + $0x38] sm:$0xff] }
 0x2ed   : > { %3941 = vmatpush3.bf16.msra.mxu0 %v4549_v38  ;;  %4181 = vmatpush3.bf16.msra.mxu1 %v4548_v37  ;;  %v4573_v10 = vld [vmem:[%s5727_s13 + $0x20] sm:$0xff]   ;;  %v6004_v37 = vcombine.low %v5806_v13, %v5809_v14  ;;  %v4576_v11 = vld [vmem:[%s5727_s13 + $0x28] sm:$0xff]   ;;  %v6014_v13 = vcombine.low %v5812_v15, %v5815_v16  ;;  %v1518_v14 = vld [vmem:[#allocation2 + $0x30] sm:$0xff] }
 0x2ee   : > { %3942 = vmatprep.subr.bf16.mxu0 %v4550_v39  ;;  %4182 = vmatprep.subr.bf16.mxu1 %v4551_v40  ;;  %v4582_v38 = vld [vmem:[%s5717_s6 + $0x20] sm:$0xff]   ;;  %v4583_v12 = vld [vmem:[%s5717_s6 + $0x28] sm:$0xff]   ;;  %v4577_v39 = vld [vmem:[%s5727_s13 + $0x70] sm:$0xff]  }
 0x2ef   : > { %v1520_v15 = vld [vmem:[#allocation2 + $0x40] sm:$0xff]  ;;  %v1522_v50 = vld [vmem:[#allocation2 + $0x50] sm:$0xff] }
 0x2f0   : > { %v1962_v16 = vld [vmem:[#allocation3] sm:$0xff] }
 0x2f1   : > { %3943 = vmatpush3.bf16.msra.mxu0 %v4552_v41  ;;  %4183 = vmatpush3.bf16.msra.mxu1 %v4551_v40  ;;  %v4578_v40 = vld [vmem:[%s5727_s13 + $0x30] sm:$0xff]   ;;  %v4580_v41 = vld [vmem:[%s5727_s13 + $0x78] sm:$0xff]  }
 0x2f2   : > { %3944 = vmatprep.subr.bf16.mxu0 %v4553_v42  ;;  %4184 = vmatprep.subr.bf16.mxu1 %v4554_v45  ;;  %v1521_v42 = vld [vmem:[#allocation2 + $0x48] sm:$0xff] }
 0x2f5   : > { %3945 = vmatpush3.bf16.msra.mxu0 %v4555_v46  ;;  %4185 = vmatpush3.bf16.msra.mxu1 %v4554_v45  ;;  %v4581_v45 = vld [vmem:[%s5727_s13 + $0x38] sm:$0xff]   ;;  %v1963_v46 = vld [vmem:[#allocation3 + $0x8] sm:$0xff] }
 0x2f6   : > { %3946 = vmatprep.subr.bf16.mxu0 %v4556_v43  ;;  %4186 = vmatprep.subr.bf16.mxu1 %v4557_v48  ;;  %v4584_v43 = vld [vmem:[%s5717_s6 + $0x30] sm:$0xff]  }
 0x2f9   : > { %3947 = vmatpush3.bf16.msra.mxu0 %v4558_v47  ;;  %4187 = vmatpush3.bf16.msra.mxu1 %v4557_v48  ;;  %v1523_v48 = vld [vmem:[#allocation2 + $0x58] sm:$0xff] }
 0x2fa   : > { %3948 = vmatprep.subr.bf16.mxu0 %v4559_v49  ;;  %4188 = vmatprep.subr.bf16.mxu1 %v4560_v51  ;;  %v1965_v47 = vld [vmem:[#allocation3 + $0x18] sm:$0xff] }
 0x2fb   : > { %v4585_v49 = vld [vmem:[%s5717_s6 + $0x38] sm:$0xff]  }
 0x2fd   : > { %3949 = vmatpush3.bf16.msra.mxu0 %v4561_v52  ;;  %4189 = vmatpush3.bf16.msra.mxu1 %v4560_v51  ;;  %v1964_v51 = vld [vmem:[#allocation3 + $0x10] sm:$0xff]  ;;  %v1525_v52 = vld [vmem:[#allocation2 + $0x68] sm:$0xff] }
 0x2fe   : > { %4014 = vmatprep.subr.bf16.mxu1 %v4562_v53  ;;  %4206 = vmatprep.subr.bf16.mxu0 %v4564_v54  ;;  %v1967_v53 = vld [vmem:[#allocation3 + $0x28] sm:$0xff] }
 0x300   : > { %1689 = vmatmul.mubr.bf16.vlgmr.msra.gmra.mrb[0].mxu0 %v1512_v34  ;;  %4191 = vmatmul.mubr.bf16.vlgmr.msra.gmra.mrb[0].mxu1 %v5967_v55  ;;  %v1966_v34 = vld [vmem:[#allocation3 + $0x20] sm:$0xff] }
 0x301   : > { %4015 = vmatpush3.bf16.msra.mxu1 %v4563_v57  ;;  %4207 = vmatpush3.bf16.msra.mxu0 %v4564_v54  ;;  %v1524_v54 = vld [vmem:[#allocation2 + $0x60] sm:$0xff]  ;;  %v1527_v57 = vld [vmem:[#allocation2 + $0x78] sm:$0xff] }
 0x302   : > { %4016 = vmatprep.subr.bf16.mxu1 %v4565_v56  ;;  %1696 = vmatprep.mubr.bf16.mxu0 %v1515_v58  ;;  %v1969_v56 = vld [vmem:[#allocation3 + $0x38] sm:$0xff]  ;;  %v1526_v58 = vld [vmem:[#allocation2 + $0x70] sm:$0xff] }
 0x303   : > { %4194 = vmatprep.mubr.bf16.mxu1 %v5973_v59  ;;  %4208 = vmatprep.subr.bf16.mxu0 %v4569_v60 }
 0x305   : > { %4017 = vmatpush3.bf16.msra.mxu1 %v4566_v3  ;;  %4209 = vmatpush3.bf16.msra.mxu0 %v4569_v60  ;;  %v1968_v60 = vld [vmem:[#allocation3 + $0x30] sm:$0xff]  ;;  %v1971_v3 = vld [vmem:[#allocation3 + $0x48] sm:$0xff] }
 0x306   : > { %4018 = vmatprep.subr.bf16.mxu1 %v4567_v4  ;;  %4210 = vmatprep.subr.bf16.mxu0 %v4574_v62  ;;  %v1970_v4 = vld [vmem:[#allocation3 + $0x40] sm:$0xff] }
 0x308   : > { %1697 = vmatmul.mubr.bf16.gmra.mrb[4].mxu0 %v1514_v5  ;;  %4195 = vmatmul.mubr.bf16.gmra.mrb[4].mxu1 %v5983_v6  ;;  %v1972_v5 = vld [vmem:[#allocation3 + $0x50] sm:$0xff] }
 0x309   : > { %4019 = vmatpush3.bf16.msra.mxu1 %v4568_v44  ;;  %1704 = vmatprep.mubr.bf16.mxu0 %v1517_v32  ;;  %v1975_v44 = vld [vmem:[#allocation3 + $0x68] sm:$0xff]  ;;  %v4588_v32 = vld [vmem:[%s5733_s25 + $0x10] sm:$0xff]  }
 0x30a   : > { %4020 = vmatprep.subr.bf16.mxu1 %v4570_v63  ;;  %4198 = vmatprep.mubr.bf16.mxu1 %v5989_v35  ;;  %v1974_v63 = vld [vmem:[#allocation3 + $0x60] sm:$0xff] }
 0x30b   : > { %4211 = vmatpush3.bf16.msra.mxu0 %v4574_v62  ;;  %v1973_v62 = vld [vmem:[#allocation3 + $0x58] sm:$0xff] }
 0x30c   : > { %4212 = vmatprep.subr.bf16.mxu0 %v4579_v7 }
 0x30d   : > { %4021 = vmatpush3.bf16.msra.mxu1 %v4571_v0  ;;  %v4590_v0 = vld [vmem:[%s5733_s25 + $0x20] sm:$0xff]  }
 0x30e   : > { %4022 = vmatprep.subr.bf16.mxu1 %v4572_v8  ;;  %v4592_v8 = vld [vmem:[%s5733_s25 + $0x30] sm:$0xff]  }
 0x30f   : > { %4213 = vmatpush3.bf16.msra.mxu0 %v4579_v7  ;;  %v4591_v7 = vld [vmem:[%s5733_s25 + $0x28] sm:$0xff]  }
 0x310   : > { %1705 = vmatmul.mubr.bf16.gmra.mrb[8].mxu0 %v1516_v1  ;;  %4199 = vmatmul.mubr.bf16.gmra.mrb[8].mxu1 %v5998_v9  ;;  %v4593_v1 = vld [vmem:[%s5733_s25 + $0x38] sm:$0xff]  }
 0x311   : > { %4023 = vmatpush3.bf16.msra.mxu1 %v4573_v10  ;;  %1712 = vmatprep.mubr.bf16.mxu0 %v1519_v36 }
 0x312   : > { %4024 = vmatprep.subr.bf16.mxu1 %v4575_v33  ;;  %4202 = vmatprep.mubr.bf16.mxu1 %v6004_v37 }
 0x313   : > { %4214 = vmatprep.subr.bf16.mxu0 %v4582_v38 }
 0x314   : > { %4215 = vmatpush3.bf16.msra.mxu0 %v4582_v38 }
 0x315   : > { %4025 = vmatpush3.bf16.msra.mxu1 %v4576_v11  ;;  %4216 = vmatprep.subr.bf16.mxu0 %v4583_v12 }
 0x316   : > { %4026 = vmatprep.subr.bf16.mxu1 %v4577_v39 }
 0x318   : > { %1713 = vmatmul.mubr.bf16.gmra.mrb[12].mxu0 %v1518_v14  ;;  %4203 = vmatmul.mubr.bf16.gmra.mrb[12].mxu1 %v6014_v13 }
 0x319   : > { %4027 = vmatpush3.bf16.msra.mxu1 %v4578_v40  ;;  %1720 = vmatprep.mubr.bf16.mxu0 %v1521_v42 }
 0x31a   : > { %4028 = vmatprep.subr.bf16.mxu1 %v4580_v41  ;;  %2138 = vmatprep.mubr.bf16.mxu1 %v1963_v46 }
 0x31b   : > { %4217 = vmatpush3.bf16.msra.mxu0 %v4583_v12 }
 0x31c   : > { %4218 = vmatprep.subr.bf16.mxu0 %v4584_v43 }
 0x31d   : > { %4029 = vmatpush3.bf16.msra.mxu1 %v4581_v45 }
 0x31f   : > { %4219 = vmatpush3.bf16.msra.mxu0 %v4584_v43 }
 0x320   : > { %1721 = vmatmul.mubr.bf16.gmra.mrb[16].mxu0 %v1520_v15  ;;  %2139 = vmatmul.mubr.bf16.vlgmr.msra.gmra.mrb[16].mxu1 %v1962_v16 }
 0x321   : > { %1728 = vmatprep.mubr.bf16.mxu0 %v1523_v48  ;;  %2146 = vmatprep.mubr.bf16.mxu1 %v1965_v47 }
 0x322   : > { %4220 = vmatprep.subr.bf16.mxu0 %v4585_v49 }
 0x323   : > { %4221 = vmatpush3.bf16.msra.mxu0 %v4585_v49 }
 0x328   : > { %1729 = vmatmul.mubr.bf16.gmra.mrb[20].mxu0 %v1522_v50  ;;  %2147 = vmatmul.mubr.bf16.gmra.mrb[20].mxu1 %v1964_v51 }
 0x329   : > { %1736 = vmatprep.mubr.bf16.mxu0 %v1525_v52  ;;  %2154 = vmatprep.mubr.bf16.mxu1 %v1967_v53 }
 0x330   : > { %1737 = vmatmul.mubr.bf16.gmra.mrb[24].mxu0 %v1524_v54  ;;  %2155 = vmatmul.mubr.bf16.gmra.mrb[24].mxu1 %v1966_v34 }
 0x331   : > { %1744 = vmatprep.mubr.bf16.mxu0 %v1527_v57  ;;  %2162 = vmatprep.mubr.bf16.mxu1 %v1969_v56 }
 0x338   : > { %1745 = vmatmul.mubr.bf16.gmra.mrb[28].mxu0 %v1526_v58  ;;  %2163 = vmatmul.mubr.bf16.gmra.mrb[28].mxu1 %v1968_v60 }
 0x339   : > { %2170 = vmatprep.mubr.bf16.mxu1 %v1971_v3  ;;  %4222 = vmatprep.mubr.bf16.mxu0 %v5937_v61  ;;  %v1977_v61 = vld [vmem:[#allocation3 + $0x78] sm:$0xff] }
 0x340   : > { %2171 = vmatmul.mubr.bf16.gmra.mrb[32].mxu1 %v1970_v4  ;;  %4223 = vmatmul.mubr.bf16.vlgmr.msra.gmra.mrb[32].mxu0 %v5967_v55  ;;  %v1976_v55 = vld [vmem:[#allocation3 + $0x70] sm:$0xff] }
 0x341   : > { %2178 = vmatprep.mubr.bf16.mxu1 %v1973_v62  ;;  %4226 = vmatprep.mubr.bf16.mxu0 %v5973_v59  ;;  %v4586_v59 = vld [vmem:[%s5733_s25] sm:$0xff]  }
 0x342   : > { %4270 = vmatprep.subr.bf16.mxu1 %v4586_v59  ;;  %4238 = vmatprep.subr.bf16.mxu0 %v4586_v59 }
 0x343   : > { %4278 = vmatpush3.bf16.msra.mxu1 %v4586_v59  ;;  %4239 = vmatpush3.bf16.msra.mxu0 %v4586_v59 }
 0x348   : > { %2179 = vmatmul.mubr.bf16.gmra.mrb[36].mxu1 %v1972_v5  ;;  %4227 = vmatmul.mubr.bf16.gmra.mrb[36].mxu0 %v5983_v6  ;;  %v4587_v6 = vld [vmem:[%s5733_s25 + $0x8] sm:$0xff]  }
 0x349   : > { %2186 = vmatprep.mubr.bf16.mxu1 %v1975_v44  ;;  %4230 = vmatprep.mubr.bf16.mxu0 %v5989_v35  ;;  %v4589_v35 = vld [vmem:[%s5733_s25 + $0x18] sm:$0xff]  }
 0x34a   : > { %4271 = vmatprep.subr.bf16.mxu1 %v4587_v6  ;;  %4240 = vmatprep.subr.bf16.mxu0 %v4587_v6 }
 0x34b   : > { %4279 = vmatpush3.bf16.msra.mxu1 %v4587_v6  ;;  %4241 = vmatpush3.bf16.msra.mxu0 %v4587_v6 }
 0x34c   : > { %4272 = vmatprep.subr.bf16.mxu1 %v4588_v32  ;;  %4242 = vmatprep.subr.bf16.mxu0 %v4588_v32 }
 0x34f   : > { %4280 = vmatpush3.bf16.msra.mxu1 %v4588_v32  ;;  %4243 = vmatpush3.bf16.msra.mxu0 %v4588_v32 }
 0x350   : > { %2187 = vmatmul.mubr.bf16.gmra.mrb[40].mxu1 %v1974_v63  ;;  %4231 = vmatmul.mubr.bf16.gmra.mrb[40].mxu0 %v5998_v9 }
 0x351   : > { %2194 = vmatprep.mubr.bf16.mxu1 %v1977_v61  ;;  %4234 = vmatprep.mubr.bf16.mxu0 %v6004_v37 }
 0x352   : > { %4273 = vmatprep.subr.bf16.mxu1 %v4589_v35  ;;  %4244 = vmatprep.subr.bf16.mxu0 %v4589_v35 }
 0x353   : > { %4281 = vmatpush3.bf16.msra.mxu1 %v4589_v35  ;;  %4245 = vmatpush3.bf16.msra.mxu0 %v4589_v35 }
 0x354   : > { %4246 = vmatprep.subr.bf16.mxu0 %v4590_v0  ;;  %4274 = vmatprep.subr.bf16.mxu1 %v4590_v0 }
 0x357   : > { %4247 = vmatpush3.bf16.msra.mxu0 %v4590_v0  ;;  %4282 = vmatpush3.bf16.msra.mxu1 %v4590_v0 }
 0x358   : > { %2195 = vmatmul.mubr.bf16.gmra.mrb[44].mxu1 %v1976_v55  ;;  %4235 = vmatmul.mubr.bf16.gmra.mrb[44].mxu0 %v6014_v13 }
 0x359   : > { %4248 = vmatprep.subr.bf16.mxu0 %v4591_v7  ;;  %4275 = vmatprep.subr.bf16.mxu1 %v4591_v7 }
 0x35b   : > { %4249 = vmatpush3.bf16.msra.mxu0 %v4591_v7  ;;  %4283 = vmatpush3.bf16.msra.mxu1 %v4591_v7 }
 0x35c   : > { %4250 = vmatprep.subr.bf16.mxu0 %v4592_v8  ;;  %4276 = vmatprep.subr.bf16.mxu1 %v4592_v8 }
 0x35f   : > { %4251 = vmatpush3.bf16.msra.mxu0 %v4592_v8  ;;  %4284 = vmatpush3.bf16.msra.mxu1 %v4592_v8 }
 0x360   : > { %4252 = vmatprep.subr.bf16.mxu0 %v4593_v1  ;;  %4277 = vmatprep.subr.bf16.mxu1 %v4593_v1 }
 0x363   : > { %4253 = vmatpush3.bf16.msra.mxu0 %v4593_v1  ;;  %4285 = vmatpush3.bf16.msra.mxu1 %v4593_v1 }
 0x3d3   : > { %v3950_v9 = vpop.f32.mrb[0].mxu0  ;;  %v4192_v10 = vpop.f32.mrb[0].mxu1 }
 0x3d4   : > { %v3951_v33 = vpop.f32.mrb[1].mxu0  ;;  %v1883_v36 = vpop.f32.mrb[1].mxu1 }
 0x3d5   : > { %v3952_v37 = vadd.f32 %v3951_v33, %v3950_v9  ;;  %v3953_v38 = vpop.f32.mrb[2].mxu0  ;;  %v4193_v11 = vpop.f32.mrb[2].mxu1 }
 0x3d6   : > { %v3954_v12 = vpop.f32.mrb[3].mxu0  ;;  %v1886_v39 = vpop.f32.mrb[3].mxu1 }
 0x3d7   : > { %v6038_v13 = vadd.f32 %v3952_v37, %v1883_v36  ;;  %v3955_v14 = vadd.f32 %v3954_v12, %v3953_v38 }
 0x3d9   : > { %v6040_v40 = vadd.f32 %v3955_v14, %v1886_v39  ;;  %v3861_v61 = vmul.f32 -1.442695, %v6038_v13 }
 0x3db   : > { %v3956_v41 = vpop.f32.mrb[4].mxu0  ;;  %v4196_v42 = vpop.f32.mrb[4].mxu1  ;;  %v3862_v6 = vmul.f32 -1.442695, %v6040_v40  ;;  %4594 = vpow2.f32 %v3861_v61 }
 0x3dc   : > { %v3957_v45 = vpop.f32.mrb[5].mxu0  ;;  %v1899_v46 = vpop.f32.mrb[5].mxu1 }
 0x3dd   : > { %v3958_v43 = vadd.f32 %v3957_v45, %v3956_v41  ;;  %v3959_v15 = vpop.f32.mrb[6].mxu0  ;;  %v4197_v16 = vpop.f32.mrb[6].mxu1  ;;  %4596 = vpow2.f32 %v3862_v6 }
 0x3de   : > { %v3960_v48 = vpop.f32.mrb[7].mxu0  ;;  %v1902_v47 = vpop.f32.mrb[7].mxu1 }
 0x3df   : > { %v6042_v49 = vadd.f32 %v4192_v10, %v3958_v43  ;;  %v3961_v50 = vadd.f32 %v3960_v48, %v3959_v15 }
 0x3e1   : > { %v6044_v51 = vadd.f32 %v4193_v11, %v3961_v50  ;;  %v3863_v1 = vmul.f32 -1.442695, %v6042_v49 }
 0x3e3   : > { %v3962_v52 = vpop.f32.mrb[8].mxu0  ;;  %v6046_v53 = vpop.f32.mrb[8].mxu1  ;;  %v3864_v33 = vmul.f32 -1.442695, %v6044_v51  ;;  %4598 = vpow2.f32 %v3863_v1 }
 0x3e4   : > { %v3963_v54 = vpop.f32.mrb[9].mxu0  ;;  %v1915_v34 = vpop.f32.mrb[9].mxu1 }
 0x3e5   : > { %v3964_v57 = vadd.f32 %v3963_v54, %v3962_v52  ;;  %v3965_v56 = vpop.f32.mrb[10].mxu0  ;;  %v6048_v58 = vpop.f32.mrb[10].mxu1  ;;  %4600 = vpow2.f32 %v3864_v33 }
 0x3e6   : > { %v3966_v60 = vpop.f32.mrb[11].mxu0  ;;  %v1918_v3 = vpop.f32.mrb[11].mxu1 }
 0x3e7   : > { %v6050_v4 = vadd.f32 %v3964_v57, %v1899_v46  ;;  %v3967_v62 = vadd.f32 %v3966_v60, %v3965_v56  ;;  %v4595_v52 = vpop.eup %4594 }
 0x3e8   : > { %v4597_v54 = vpop.eup %4596 }
 0x3e9   : > { %v6052_v5 = vadd.f32 %v3967_v62, %v1902_v47  ;;  %v3865_v43 = vmul.f32 -1.442695, %v6050_v4  ;;  %v2397_v1 = vadd.f32 1.0, %v4597_v54 }
 0x3eb   : > { %v3968_v44 = vpop.f32.mrb[12].mxu0  ;;  %v6054_v63 = vpop.f32.mrb[12].mxu1  ;;  %4602 = vpow2.f32 %v3865_v43  ;;  %v3866_v57 = vmul.f32 -1.442695, %v6052_v5 }
 0x3ec   : > { %v3969_v55 = vpop.f32.mrb[13].mxu0  ;;  %v6057_v59 = vpop.f32.mrb[13].mxu1 }
 0x3ed   : > { %v3970_v32 = vadd.f32 %v3969_v55, %v3968_v44  ;;  %v3971_v35 = vpop.f32.mrb[14].mxu0  ;;  %v6060_v0 = vpop.f32.mrb[14].mxu1 }
 0x3ee   : > { %v3972_v7 = vpop.f32.mrb[15].mxu0  ;;  %v6062_v8 = vpop.f32.mrb[15].mxu1 }
 0x3ef   : > { %v6065_v9 = vadd.f32 %v4196_v42, %v3970_v32  ;;  %v3973_v10 = vadd.f32 %v3972_v7, %v3971_v35  ;;  %v4599_v61 = vpop.eup %4598  ;;  %v2396_v7 = vadd.f32 1.0, %v4595_v52 }
 0x3f1   : > { %v6068_v36 = vadd.f32 %v4197_v16, %v3973_v10  ;;  %v3867_v47 = vmul.f32 -1.442695, %v6065_v9 }
 0x3f3   : > { %v3974_v37 = vpop.f32.mrb[16].mxu0  ;;  %v4030_v38 = vpop.f32.mrb[16].mxu1  ;;  %4604 = vpow2.f32 %v3867_v47  ;;  %v3868_v62 = vmul.f32 -1.442695, %v6068_v36 }
 0x3f4   : > { %v3975_v11 = vpop.f32.mrb[17].mxu0  ;;  %v4031_v12 = vpop.f32.mrb[17].mxu1  ;;  %4606 = vpow2.f32 %v3866_v57 }
 0x3f5   : > { %v3976_v39 = vadd.f32 %v3975_v11, %v3974_v37  ;;  %v6070_v14 = vadd.f32 %v4031_v12, %v4030_v38  ;;  %v3977_v41 = vpop.f32.mrb[18].mxu0  ;;  %v4033_v45 = vpop.f32.mrb[18].mxu1  ;;  %v2398_v12 = vadd.f32 1.0, %v4599_v61  ;;  %4608 = vpow2.f32 %v3868_v62 }
 0x3f6   : > { %v3978_v42 = vpop.f32.mrb[19].mxu0  ;;  %v4034_v46 = vpop.f32.mrb[19].mxu1  ;;  %4610 = vrcp.f32 %v2396_v7 }
 0x3f7   : > { %v6073_v15 = vadd.f32 %v3976_v39, %v1915_v34  ;;  %v3979_v48 = vadd.f32 %v3978_v42, %v3977_v41  ;;  %v6075_v16 = vadd.f32 %v4034_v46, %v4033_v45  ;;  %4612 = vrcp.f32 %v2397_v1 }
 0x3f8   : > { %4614 = vrcp.f32 %v2398_v12 }
 0x3f9   : > { %v6078_v50 = vadd.f32 %v3979_v48, %v1918_v3  ;;  %v4601_v3 = vpop.eup %4600  ;;  %v3869_v42 = vmul.f32 -1.442695, %v6073_v15 }
 0x3fa   : > { %v2399_v39 = vadd.f32 1.0, %v4601_v3  ;;  %v4603_v52 = vpop.eup %4602 }
 0x3fb   : > { %v3980_v56 = vpop.f32.mrb[20].mxu0  ;;  %v4036_v60 = vpop.f32.mrb[20].mxu1  ;;  %v3870_v54 = vmul.f32 -1.442695, %v6078_v50 }
 0x3fc   : > { %v3981_v44 = vpop.f32.mrb[21].mxu0  ;;  %v4037_v34 = vpop.f32.mrb[21].mxu1  ;;  %4616 = vrcp.f32 %v2399_v39 }
 0x3fd   : > { %v3982_v55 = vadd.f32 %v3981_v44, %v3980_v56  ;;  %v6082_v6 = vadd.f32 %v4037_v34, %v4036_v60  ;;  %v3983_v32 = vpop.f32.mrb[22].mxu0  ;;  %v4039_v35 = vpop.f32.mrb[22].mxu1 }
 0x3fe   : > { %v3984_v10 = vpop.f32.mrb[23].mxu0  ;;  %v4040_v33 = vpop.f32.mrb[23].mxu1 }
 0x3ff   : > { %v6085_v37 = vadd.f32 %v6046_v53, %v3982_v55  ;;  %v3985_v38 = vadd.f32 %v3984_v10, %v3983_v32  ;;  %v6087_v11 = vadd.f32 %v4040_v33, %v4039_v35  ;;  %v4605_v62 = vpop.eup %4604  ;;  %v2400_v35 = vadd.f32 1.0, %v4603_v52 }
 0x400   : > { %v4607_v3 = vpop.eup %4606  ;;  %v2402_v7 = vadd.f32 1.0, %v4605_v62 }
 0x401   : > { %v6090_v41 = vadd.f32 %v6048_v58, %v3985_v38  ;;  %v3871_v45 = vmul.f32 -1.442695, %v6085_v37  ;;  %v4609_v10 = vpop.eup %4608 }
 0x403   : > { %v3986_v46 = vpop.f32.mrb[24].mxu0  ;;  %v4042_v43 = vpop.f32.mrb[24].mxu1  ;;  %v3872_v53 = vmul.f32 -1.442695, %v6090_v41  ;;  %4618 = vpow2.f32 %v3871_v45  ;;  %v2401_v45 = vadd.f32 1.0, %v4607_v3 }
 0x404   : > { %v3987_v48 = vpop.f32.mrb[25].mxu0  ;;  %v4043_v47 = vpop.f32.mrb[25].mxu1  ;;  %4620 = vpow2.f32 %v3869_v42 }
 0x405   : > { %v3988_v57 = vadd.f32 %v3987_v48, %v3986_v46  ;;  %v6096_v58 = vadd.f32 %v4043_v47, %v4042_v43  ;;  %v3989_v56 = vpop.f32.mrb[26].mxu0  ;;  %v4045_v60 = vpop.f32.mrb[26].mxu1  ;;  %4622 = vpow2.f32 %v3872_v53  ;;  %v2403_v53 = vadd.f32 1.0, %v4609_v10 }
 0x406   : > { %v3990_v44 = vpop.f32.mrb[27].mxu0  ;;  %v4046_v34 = vpop.f32.mrb[27].mxu1  ;;  %4624 = vpow2.f32 %v3870_v54 }
 0x407   : > { %v6099_v61 = vadd.f32 %v3988_v57, %v6057_v59  ;;  %v3991_v55 = vadd.f32 %v3990_v44, %v3989_v56  ;;  %v6101_v32 = vadd.f32 %v4046_v34, %v4045_v60  ;;  %v4611_v59 = vpop.eup %4610  ;;  %4626 = vrcp.f32 %v2400_v35 }
 0x408   : > { %v4613_v43 = vpop.eup %4612  ;;  %4628 = vrcp.f32 %v2402_v7 }
 0x409   : > { %v6104_v1 = vadd.f32 %v3991_v55, %v6062_v8  ;;  %v3873_v33 = vmul.f32 -1.442695, %v6099_v61  ;;  %v4615_v54 = vpop.eup %4614 }
 0x40a   : > { %v4617_v60 = vpop.eup %4616 }
 0x40b   : > { %v3874_v38 = vmul.f32 -1.442695, %v6104_v1  ;;  %v3992_v12 = vpop.f32.mrb[28].mxu0  ;;  %v4048_v39 = vpop.f32.mrb[28].mxu1  ;;  %4630 = vpow2.f32 %v3873_v33 }
 0x40c   : > { %v3993_v42 = vpop.f32.mrb[29].mxu0  ;;  %v4049_v46 = vpop.f32.mrb[29].mxu1 }
 0x40d   : > { %v3994_v48 = vadd.f32 %v3993_v42, %v3992_v12  ;;  %v6108_v47 = vadd.f32 %v4049_v46, %v4048_v39  ;;  %v3995_v8 = vpop.f32.mrb[30].mxu0  ;;  %v4051_v52 = vpop.f32.mrb[30].mxu1  ;;  %4632 = vpow2.f32 %v3874_v38  ;;  %v2444_v12 = vmul.f32 %v4611_v59, %v6038_v13 }
 0x40e   : > { %v3996_v57 = vpop.f32.mrb[31].mxu0  ;;  %v4052_v56 = vpop.f32.mrb[31].mxu1  ;;  %4634 = vrcp.f32 %v2401_v45  ;;  %v2445_v46 = vmul.f32 %v4613_v43, %v6040_v40  ;;  %v2447_v43 = vmul.f32 %v4617_v60, %v6044_v51 }
 0x40f   : > { %v6111_v62 = vadd.f32 %v6054_v63, %v3994_v48  ;;  %v3997_v44 = vadd.f32 %v3996_v57, %v3995_v8  ;;  %v6113_v34 = vadd.f32 %v4052_v56, %v4051_v52  ;;  %v4619_v55 = vpop.eup %4618  ;;  %4636 = vrcp.f32 %v2403_v53 }
 0x410   : > { %v4621_v35 = vpop.eup %4620  ;;  %v2406_v38 = vadd.f32 1.0, %v4619_v55  ;;  %v2446_v48 = vmul.f32 %v4615_v54, %v6042_v49 }
 0x411   : > { %v3875_v3 = vmul.f32 -1.442695, %v6111_v62  ;;  %v6117_v7 = vadd.f32 %v6060_v0, %v3997_v44  ;;  %v4623_v10 = vpop.eup %4622  ;;  %v2404_v45 = vadd.f32 1.0, %v4621_v35 }
 0x412   : > { %v4625_v33 = vpop.eup %4624  ;;  %v2407_v52 = vadd.f32 1.0, %v4623_v10 }
 0x413   : > { %4638 = vpow2.f32 %v3875_v3  ;;  %v3876_v63 = vmul.f32 -1.442695, %v6117_v7  ;;  %v4054_v39 = vpop.f32.mrb[32].mxu1  ;;  %v4224_v42 = vpop.f32.mrb[32].mxu0  ;;  %v2405_v55 = vadd.f32 1.0, %v4625_v33 }
 0x414   : > { %v2294_v53 = vadd.f32 %v4224_v42, %v6082_v6  ;;  %v4055_v8 = vpop.f32.mrb[33].mxu1  ;;  %v2285_v0 = vpop.f32.mrb[33].mxu0 }
 0x415   : > { %4640 = vpow2.f32 %v3876_v63  ;;  %v6124_v57 = vadd.f32 %v4055_v8, %v4054_v39  ;;  %v2286_v13 = vadd.f32 %v6070_v14, %v2285_v0  ;;  %v4057_v59 = vpop.f32.mrb[34].mxu1  ;;  %v4225_v56 = vpop.f32.mrb[34].mxu0 }
 0x416   : > { %v4627_v44 = vpop.eup %4626  ;;  %v2462_v3 = vmul.f32 %v2446_v48, %v2294_v53  ;;  %v2297_v40 = vadd.f32 %v4225_v56, %v6087_v11  ;;  %v4058_v6 = vpop.f32.mrb[35].mxu1  ;;  %4642 = vrcp.f32 %v2406_v38 }
 0x417   : > { %v2288_v35 = vpop.f32.mrb[35].mxu0  ;;  %v4629_v49 = vpop.eup %4628  ;;  %v2460_v54 = vmul.f32 %v2444_v12, %v2286_v13  ;;  %v6129_v10 = vadd.f32 %v4058_v6, %v4057_v59  ;;  %4644 = vrcp.f32 %v2404_v45  ;;  %v2448_v56 = vmul.f32 %v4627_v44, %v6050_v4 }
 0x418   : > { %v2289_v63 = vadd.f32 %v6075_v16, %v2288_v35  ;;  %v4631_v39 = vpop.eup %4630  ;;  %v2463_v14 = vmul.f32 %v2447_v43, %v2297_v40  ;;  %4646 = vrcp.f32 %v2407_v52  ;;  %v2450_v16 = vmul.f32 %v4629_v49, %v6065_v9 }
 0x419   : > { %v4633_v42 = vpop.eup %4632  ;;  %4648 = vrcp.f32 %v2405_v55  ;;  %v2408_v60 = vadd.f32 1.0, %v4631_v39 }
 0x41a   : > { %v2461_v33 = vmul.f32 %v2445_v46, %v2289_v63  ;;  %v4635_v53 = vpop.eup %4634  ;;  %v6132_v11 = vpack.c.bf16 %v2463_v14, %v2462_v3  ;;  %v2409_v12 = vadd.f32 1.0, %v4633_v42 }
 0x41b   : > { %v4637_v51 = vpop.eup %4636  ;;  %v4060_v48 = vpop.f32.mrb[36].mxu1  ;;  %v2449_v40 = vmul.f32 %v4635_v53, %v6052_v5  ;;  %4650 = vrcp.f32 %v2408_v60 }
 0x41c   : > { %v4228_v8 = vpop.f32.mrb[36].mxu0  ;;  %v6134_v38 = vpack.c.bf16 %v2461_v33, %v2460_v54  ;;  %v4061_v45 = vpop.f32.mrb[37].mxu1  ;;  %v2451_v9 = vmul.f32 %v4637_v51, %v6068_v36  ;;  %4652 = vrcp.f32 %v2409_v12 }
 0x41d   : > { %v2310_v0 = vadd.f32 %v4228_v8, %v6108_v47  ;;  %v2301_v13 = vpop.f32.mrb[37].mxu0  ;;  %v4639_v59 = vpop.eup %4638  ;;  %v4062_v52 = vadd.f32 %v4061_v45, %v4060_v48 }
 0x41e   : > { %v2302_v46 = vadd.f32 %v6096_v58, %v2301_v13  ;;  %v4063_v55 = vpop.f32.mrb[38].mxu1  ;;  %v4229_v3 = vpop.f32.mrb[38].mxu0  ;;  %4254 = vmatprep.mubr.bf16.mxu0 %v6134_v38  ;;  %v2410_v43 = vadd.f32 1.0, %v4639_v59 }
 0x41f   : > { %v2466_v6 = vmul.f32 %v2450_v16, %v2310_v0  ;;  %v2313_v47 = vadd.f32 %v4229_v3, %v6113_v34  ;;  %v4064_v35 = vpop.f32.mrb[39].mxu1  ;;  %v2304_v49 = vpop.f32.mrb[39].mxu0  ;;  %4255 = vmatmul.mubr.bf16.vlgmr.msra.gmra.mrb[48].mxu0 %v6132_v11 }
 0x420   : > { %v4641_v54 = vpop.eup %4640  ;;  %v2464_v58 = vmul.f32 %v2448_v56, %v2302_v46  ;;  %v4065_v4 = vadd.f32 %v4064_v35, %v4063_v55  ;;  %v2305_v44 = vadd.f32 %v6101_v32, %v2304_v49  ;;  %4654 = vrcp.f32 %v2410_v43 }
 0x421   : > { %v2411_v63 = vadd.f32 1.0, %v4641_v54  ;;  %v2467_v39 = vmul.f32 %v2451_v9, %v2313_v47  ;;  %v4643_v5 = vpop.eup %4642 }
 0x422   : > { %v2465_v14 = vmul.f32 %v2449_v40, %v2305_v44  ;;  %v4645_v42 = vpop.eup %4644  ;;  %v2454_v8 = vmul.f32 %v4643_v5, %v6085_v37 }
 0x423   : > { %v6146_v34 = vpack.c.bf16 %v2467_v39, %v2466_v6  ;;  %v4647_v36 = vpop.eup %4646  ;;  %v4066_v33 = vpop.f32.mrb[40].mxu1  ;;  %4656 = vrcp.f32 %v2411_v63  ;;  %v2452_v45 = vmul.f32 %v4645_v42, %v6073_v15 }
 0x424   : > { %v4232_v53 = vpop.f32.mrb[40].mxu0  ;;  %v6148_v51 = vpack.c.bf16 %v2465_v14, %v2464_v58  ;;  %v4649_v48 = vpop.eup %4648  ;;  %v2455_v55 = vmul.f32 %v4647_v36, %v6090_v41 }
 0x425   : > { %v2326_v60 = vadd.f32 %v4232_v53, %v4062_v52  ;;  %v4067_v32 = vpop.f32.mrb[41].mxu1  ;;  %v2317_v12 = vpop.f32.mrb[41].mxu0 }
 0x426   : > { %v4068_v0 = vadd.f32 %v4067_v32, %v4066_v33  ;;  %v2318_v16 = vadd.f32 %v6124_v57, %v2317_v12  ;;  %v4069_v13 = vpop.f32.mrb[42].mxu1  ;;  %v4233_v59 = vpop.f32.mrb[42].mxu0  ;;  %4258 = vmatprep.mubr.bf16.mxu0 %v6148_v51  ;;  %v2453_v57 = vmul.f32 %v4649_v48, %v6078_v50 }
 0x427   : > { %v2470_v46 = vmul.f32 %v2454_v8, %v2326_v60  ;;  %v2329_v56 = vadd.f32 %v4233_v59, %v4065_v4  ;;  %v4070_v3 = vpop.f32.mrb[43].mxu1  ;;  %v2320_v40 = vpop.f32.mrb[43].mxu0  ;;  %4259 = vmatmul.mubr.bf16.gmra.mrb[52].mxu0 %v6146_v34 }
 0x428   : > { %v2468_v37 = vmul.f32 %v2452_v45, %v2318_v16  ;;  %v4071_v52 = vadd.f32 %v4070_v3, %v4069_v13  ;;  %v2321_v43 = vadd.f32 %v6129_v10, %v2320_v40  ;;  %v4651_v15 = vpop.eup %4650 }
 0x429   : > { %v2471_v6 = vmul.f32 %v2455_v55, %v2329_v56  ;;  %v4653_v9 = vpop.eup %4652  ;;  %v2456_v5 = vmul.f32 %v4651_v15, %v6099_v61 }
 0x42a   : > { %v2469_v47 = vmul.f32 %v2453_v57, %v2321_v43  ;;  %v4655_v49 = vpop.eup %4654  ;;  %v2457_v53 = vmul.f32 %v4653_v9, %v6104_v1 }
 0x42b   : > { %v6158_v35 = vpack.c.bf16 %v2471_v6, %v2470_v46  ;;  %v4072_v54 = vpop.f32.mrb[44].mxu1  ;;  %v4236_v58 = vpop.f32.mrb[44].mxu0  ;;  %v2458_v42 = vmul.f32 %v4655_v49, %v6111_v62 }
 0x42c   : > { %v6160_v41 = vpack.c.bf16 %v2469_v47, %v2468_v37  ;;  %v4073_v4 = vpop.f32.mrb[45].mxu1  ;;  %v2333_v44 = vpop.f32.mrb[45].mxu0 }
 0x42d   : > { %v4074_v63 = vadd.f32 %v4073_v4, %v4072_v54  ;;  %v2334_v39 = vadd.f32 %v4068_v0, %v2333_v44  ;;  %v4075_v10 = vpop.f32.mrb[46].mxu1  ;;  %v4237_v14 = vpop.f32.mrb[46].mxu0 }
 0x42e   : > { %4262 = vmatprep.mubr.bf16.mxu1 %v6160_v41  ;;  %v4657_v50 = vpop.eup %4656  ;;  %v4076_v36 = vpop.f32.mrb[47].mxu1 }
 0x42f   : > { %v2336_v33 = vpop.f32.mrb[47].mxu0  ;;  %4263 = vmatmul.mubr.bf16.vlgmr.msra.gmra.mrb[48].mxu1 %v6158_v35  ;;  %v2342_v48 = vadd.f32 %v4236_v58, %v4074_v63  ;;  %v2472_v60 = vmul.f32 %v2456_v5, %v2334_v39  ;;  %v4077_v8 = vadd.f32 %v4076_v36, %v4075_v10  ;;  %v2459_v12 = vmul.f32 %v4657_v50, %v6117_v7 }
 0x430   : > { %v2337_v32 = vadd.f32 %v4071_v52, %v2336_v33 }
 0x431   : > { %v2474_v61 = vmul.f32 %v2458_v42, %v2342_v48  ;;  %v2345_v0 = vadd.f32 %v4237_v14, %v4077_v8 }
 0x432   : > { %v2473_v16 = vmul.f32 %v2457_v53, %v2337_v32 }
 0x433   : > { %v2475_v45 = vmul.f32 %v2459_v12, %v2345_v0 }
 0x434   : > { %v6168_v13 = vpack.c.bf16 %v2473_v16, %v2472_v60 }
 0x435   : > { %v6171_v62 = vpack.c.bf16 %v2475_v45, %v2474_v61 }
 0x436   : > { %4266 = vmatprep.mubr.bf16.mxu1 %v6168_v13 }
 0x437   : > { %4267 = vmatmul.mubr.bf16.gmra.mrb[52].mxu1 %v6171_v62 }
 0x4f2   : > { %v4256_v1 = vpop.f32.mrb[48].mxu0 }
 0x4f3   : > { %v2582_v59 = vpop.f32.mrb[49].mxu0  ;;  %2650 = vst [vmem:[%s5872_s12 + $0x10] sm:$0xff] (!%p3804_p2), %v4256_v1 }
 0x4f4   : > { %v4257_v46 = vpop.f32.mrb[50].mxu0  ;;  %2648 = vst [vmem:[%s5872_s12] sm:$0xff] (!%p3804_p2), %v2582_v59 }
 0x4f5   : > { %v2585_v56 = vpop.f32.mrb[51].mxu0  ;;  %2651 = vst [vmem:[%s5872_s12 + $0x18] sm:$0xff] (!%p3804_p2), %v4257_v46 }
 0x4f6   : > { %2649 = vst [vmem:[%s5872_s12 + $0x8] sm:$0xff] (!%p3804_p2), %v2585_v56 }
 0x4fa   : > { %v4260_v55 = vpop.f32.mrb[52].mxu0 }
 0x4fb   : > { %v2598_v3 = vpop.f32.mrb[53].mxu0  ;;  %2654 = vst [vmem:[%s5872_s12 + $0x30] sm:$0xff] (!%p3804_p2), %v4260_v55 }
 0x4fc   : > { %v4261_v40 = vpop.f32.mrb[54].mxu0  ;;  %2652 = vst [vmem:[%s5872_s12 + $0x20] sm:$0xff] (!%p3804_p2), %v2598_v3 }
 0x4fd   : > { %v2601_v7 = vpop.f32.mrb[55].mxu0  ;;  %2655 = vst [vmem:[%s5872_s12 + $0x38] sm:$0xff] (!%p3804_p2), %v4261_v40 }
 0x4fe   : > { %2653 = vst [vmem:[%s5872_s12 + $0x28] sm:$0xff] (!%p3804_p2), %v2601_v7 }
 0x502   : > { %v4264_v37 = vpop.f32.mrb[48].mxu1 }
 0x503   : > { %v2614_v52 = vpop.f32.mrb[49].mxu1  ;;  %2658 = vst [vmem:[%s5872_s12 + $0x50] sm:$0xff] (!%p3804_p2), %v4264_v37 }
 0x504   : > { %v4265_v43 = vpop.f32.mrb[50].mxu1  ;;  %2656 = vst [vmem:[%s5872_s12 + $0x40] sm:$0xff] (!%p3804_p2), %v2614_v52 }
 0x505   : > { %v2617_v57 = vpop.f32.mrb[51].mxu1  ;;  %2659 = vst [vmem:[%s5872_s12 + $0x58] sm:$0xff] (!%p3804_p2), %v4265_v43 }
 0x506   : > { %2657 = vst [vmem:[%s5872_s12 + $0x48] sm:$0xff] (!%p3804_p2), %v2617_v57 }
 0x507   : > { %2647 = sbr.rel (%p3804_p2) target bundleno = 1295 (0x50f), region = 116 }
 0x50a   : > { %v4268_v6 = vpop.f32.mrb[52].mxu1 }
 0x50b   : > { %v2630_v15 = vpop.f32.mrb[53].mxu1  ;;  %2662 = vst [vmem:[%s5872_s12 + $0x70] sm:$0xff] (!%p3804_p2), %v4268_v6 }
 0x50c   : > { %v6174_v47 = vpop.f32.mrb[54].mxu1  ;;  %2660 = vst [vmem:[%s5872_s12 + $0x60] sm:$0xff] (!%p3804_p2), %v2630_v15 }
 0x50d   : > { %v2633_v9 = vpop.f32.mrb[55].mxu1  ;;  %2663 = vst [vmem:[%s5872_s12 + $0x78] sm:$0xff] (!%p3804_p2), %v6174_v47 }
 0x50e   : > { %2661 = vst [vmem:[%s5872_s12 + $0x68] sm:$0xff] %v2633_v9 }
 0x50f PF: > { %2667 = sbr.rel (%p745_p11) target bundleno = 1306 (0x51a), region = 120  ;;  %v2668_v49 = vld [vmem:[%s5872_s12] sm:$0xff] (!%p745_p11)  ;;  %v2669_v54 = vld [vmem:[%s5872_s12 + $0x8] sm:$0xff] (!%p745_p11)  ;;  %v2670_v58 = vld [vmem:[%s5872_s12 + $0x10] sm:$0xff] (!%p745_p11) }
 0x510   : > { %v2684_v4 = vadd.f32 (!%p745_p11), %v2668_v49, %v2582_v59  ;;  %v2685_v44 = vadd.f32 (!%p745_p11), %v2669_v54, %v2585_v56  ;;  %v2686_v63 = vadd.f32 (!%p745_p11), %v4256_v1, %v2670_v58  ;;  %v2671_v39 = vld [vmem:[%s5872_s12 + $0x18] sm:$0xff] (!%p745_p11)  ;;  %v2672_v5 = vld [vmem:[%s5872_s12 + $0x20] sm:$0xff] (!%p745_p11)  ;;  %v2673_v10 = vld [vmem:[%s5872_s12 + $0x28] sm:$0xff] (!%p745_p11) }
 0x511   : > { %v2687_v14 = vadd.f32 (!%p745_p11), %v4257_v46, %v2671_v39  ;;  %v2688_v50 = vadd.f32 (!%p745_p11), %v2672_v5, %v2598_v3  ;;  %v2689_v42 = vadd.f32 (!%p745_p11), %v2673_v10, %v2601_v7  ;;  %v2674_v36 = vld [vmem:[%s5872_s12 + $0x30] sm:$0xff] (!%p745_p11)  ;;  %v2675_v33 = vld [vmem:[%s5872_s12 + $0x38] sm:$0xff] (!%p745_p11)  ;;  %v2676_v53 = vld [vmem:[%s5872_s12 + $0x40] sm:$0xff] (!%p745_p11) }
 0x512   : > { %2700 = vst [vmem:[%s5872_s12] sm:$0xff] (!%p745_p11), %v2684_v4  ;;  %2701 = vst [vmem:[%s5872_s12 + $0x8] sm:$0xff] (!%p745_p11), %v2685_v44  ;;  %v2690_v48 = vadd.f32 (!%p745_p11), %v4260_v55, %v2674_v36  ;;  %v2691_v60 = vadd.f32 (!%p745_p11), %v4261_v40, %v2675_v33  ;;  %v2692_v8 = vadd.f32 (!%p745_p11), %v2676_v53, %v2614_v52  ;;  %v2677_v32 = vld [vmem:[%s5872_s12 + $0x48] sm:$0xff] (!%p745_p11)  ;;  %v2678_v12 = vld [vmem:[%s5872_s12 + $0x50] sm:$0xff] (!%p745_p11) }
 0x513   : > { %2702 = vst [vmem:[%s5872_s12 + $0x10] sm:$0xff] (!%p745_p11), %v2686_v63  ;;  %v2679_v61 = vld [vmem:[%s5872_s12 + $0x58] sm:$0xff] (!%p745_p11)  ;;  %2703 = vst [vmem:[%s5872_s12 + $0x18] sm:$0xff] (!%p745_p11), %v2687_v14  ;;  %v2693_v0 = vadd.f32 (!%p745_p11), %v2677_v32, %v2617_v57  ;;  %v2694_v16 = vadd.f32 (!%p745_p11), %v4264_v37, %v2678_v12  ;;  %v2682_v46 = vld [vmem:[%s5872_s12 + $0x70] sm:$0xff] (!%p745_p11) }
 0x514   : > { %2704 = vst [vmem:[%s5872_s12 + $0x20] sm:$0xff] (!%p745_p11), %v2688_v50  ;;  %2705 = vst [vmem:[%s5872_s12 + $0x28] sm:$0xff] (!%p745_p11), %v2689_v42  ;;  %v2695_v45 = vadd.f32 (!%p745_p11), %v4265_v43, %v2679_v61  ;;  %v2680_v1 = vld [vmem:[%s5872_s12 + $0x60] sm:$0xff] (!%p745_p11)  ;;  %v2698_v3 = vadd.f32 (!%p745_p11), %v4268_v6, %v2682_v46 }
 0x515   : > { %v2681_v59 = vld [vmem:[%s5872_s12 + $0x68] sm:$0xff] (!%p745_p11)  ;;  %2706 = vst [vmem:[%s5872_s12 + $0x30] sm:$0xff] (!%p745_p11), %v2690_v48  ;;  %2707 = vst [vmem:[%s5872_s12 + $0x38] sm:$0xff] (!%p745_p11), %v2691_v60  ;;  %v2696_v56 = vadd.f32 (!%p745_p11), %v2680_v1, %v2630_v15  ;;  %v2683_v40 = vld [vmem:[%s5872_s12 + $0x78] sm:$0xff] (!%p745_p11) }
 0x516   : > { %2708 = vst [vmem:[%s5872_s12 + $0x40] sm:$0xff] %v2692_v8  ;;  %v2697_v55 = vadd.f32 %v2681_v59, %v2633_v9  ;;  %2709 = vst [vmem:[%s5872_s12 + $0x48] sm:$0xff] %v2693_v0  ;;  %v2699_v7 = vadd.f32 %v6174_v47, %v2683_v40 }
 0x517   : > { %2710 = vst [vmem:[%s5872_s12 + $0x50] sm:$0xff] %v2694_v16  ;;  %2711 = vst [vmem:[%s5872_s12 + $0x58] sm:$0xff] %v2695_v45 }
 0x518   : > { %2712 = vst [vmem:[%s5872_s12 + $0x60] sm:$0xff] %v2696_v56  ;;  %2713 = vst [vmem:[%s5872_s12 + $0x68] sm:$0xff] %v2697_v55 }
 0x519   : > { %2714 = vst [vmem:[%s5872_s12 + $0x70] sm:$0xff] %v2698_v3  ;;  %2715 = vst [vmem:[%s5872_s12 + $0x78] sm:$0xff] %v2699_v7 }
 0x51a PF: > { %2718 = sbr.rel (%p1424_p0) target bundleno = 1582 (0x62e), region = 124  ;;  %v4658_v37 = vld [vmem:[%s5735_s23 + $0x4] ss:$8 sps:$4 sm:$0xff] (!%p1424_p0)   ;;  %v4660_v52 = vld [vmem:[%s5735_s23] ss:$8 sps:$4 sm:$0xff] (!%p1424_p0)   ;;  %v5147_v43 = vmov (!%p1424_p0), 0  }
 0x51b   : > { %2879 = vmatprep.mubr.bf16.mxu0 (!%p1424_p0), %v5147_v43  ;;  %2919 = vmatprep.mubr.bf16.mxu1 (!%p1424_p0), %v5147_v43  ;;  %v4661_v57 = vld [vmem:[%s5735_s23 + $0x14] ss:$8 sps:$4 sm:$0xff] (!%p1424_p0)   ;;  %v4663_v6 = vld [vmem:[%s5735_s23 + $0x10] ss:$8 sps:$4 sm:$0xff] (!%p1424_p0)   ;;  %v4664_v15 = vld [vmem:[%s5735_s23 + $0x24] ss:$8 sps:$4 sm:$0xff] (!%p1424_p0)  }
 0x51c   : > { %2847 = vmatprep.subr.bf16.mxu0 (!%p1424_p0), %v4658_v37  ;;  %4286 = vmatprep.subr.bf16.mxu1 (!%p1424_p0), %v4658_v37  ;;  %v4666_v47 = vld [vmem:[%s5735_s23 + $0x20] ss:$8 sps:$4 sm:$0xff] (!%p1424_p0)   ;;  %v4667_v9 = vld [vmem:[%s5735_s23 + $0x34] ss:$8 sps:$4 sm:$0xff] (!%p1424_p0)   ;;  %v4669_v49 = vld [vmem:[%s5735_s23 + $0x30] ss:$8 sps:$4 sm:$0xff] (!%p1424_p0)  }
 0x51d   : > { %2848 = vmatpush1.bf16.msra.mxu0 (!%p1424_p0), %v4660_v52  ;;  %4294 = vmatpush1.bf16.msra.mxu1 (!%p1424_p0), %v4660_v52  ;;  %v4670_v54 = vld [vmem:[%s5735_s23 + $0x44] ss:$8 sps:$4 sm:$0xff] (!%p1424_p0)   ;;  %v4672_v58 = vld [vmem:[%s5735_s23 + $0x40] ss:$8 sps:$4 sm:$0xff] (!%p1424_p0)   ;;  %v4673_v4 = vld [vmem:[%s5735_s23 + $0x54] ss:$8 sps:$4 sm:$0xff] (!%p1424_p0)  }
 0x51e   : > { %2849 = vmatprep.subr.bf16.mxu0 (!%p1424_p0), %v4661_v57  ;;  %4287 = vmatprep.subr.bf16.mxu1 (!%p1424_p0), %v4661_v57  ;;  %v4675_v44 = vld [vmem:[%s5735_s23 + $0x50] ss:$8 sps:$4 sm:$0xff] (!%p1424_p0)   ;;  %v4676_v63 = vld [vmem:[%s5735_s23 + $0x64] ss:$8 sps:$4 sm:$0xff] (!%p1424_p0)   ;;  %v4678_v39 = vld [vmem:[%s5735_s23 + $0x60] ss:$8 sps:$4 sm:$0xff] (!%p1424_p0)  }
 0x51f   : > { %v4679_v5 = vld [vmem:[%s5735_s23 + $0x74] ss:$8 sps:$4 sm:$0xff] (!%p1424_p0)   ;;  %v4681_v10 = vld [vmem:[%s5735_s23 + $0x70] ss:$8 sps:$4 sm:$0xff] (!%p1424_p0)   ;;  %v2720_v14 = vld [vmem:[#allocation4 + $0x8] sm:$0xff] (!%p1424_p0) }
 0x520   : > { %v2736_v50 = vld [vmem:[#allocation4 + $0x88] sm:$0xff] (!%p1424_p0)  ;;  %v2721_v36 = vld [vmem:[#allocation4 + $0x10] sm:$0xff] (!%p1424_p0)  ;;  %v2722_v60 = vld [vmem:[#allocation4 + $0x18] sm:$0xff] (!%p1424_p0) }
 0x521   : > { %2850 = vmatpush1.bf16.msra.mxu0 %v4663_v6  ;;  %4295 = vmatpush1.bf16.msra.mxu1 %v4663_v6  ;;  %v2723_v59 = vld [vmem:[#allocation4 + $0x20] sm:$0xff]  ;;  %v2724_v56 = vld [vmem:[#allocation4 + $0x28] sm:$0xff]  ;;  %v2725_v7 = vld [vmem:[#allocation4 + $0x30] sm:$0xff] }
 0x522   : > { %2851 = vmatprep.subr.bf16.mxu0 %v4664_v15  ;;  %4288 = vmatprep.subr.bf16.mxu1 %v4664_v15  ;;  %v2739_v46 = vld [vmem:[#allocation4 + $0xa0] sm:$0xff]  ;;  %v2740_v55 = vld [vmem:[#allocation4 + $0xa8] sm:$0xff]  ;;  %v2741_v37 = vld [vmem:[#allocation4 + $0xb0] sm:$0xff] }
 0x523   : > { %v2726_v15 = vld [vmem:[#allocation4 + $0x38] sm:$0xff] }
 0x525   : > { %2852 = vmatpush1.bf16.msra.mxu0 %v4666_v47  ;;  %4296 = vmatpush1.bf16.msra.mxu1 %v4666_v47  ;;  %v2742_v47 = vld [vmem:[#allocation4 + $0xb8] sm:$0xff] }
 0x526   : > { %2853 = vmatprep.subr.bf16.mxu0 %v4667_v9  ;;  %4289 = vmatprep.subr.bf16.mxu1 %v4667_v9 }
 0x529   : > { %2854 = vmatpush1.bf16.msra.mxu0 %v4669_v49  ;;  %4297 = vmatpush1.bf16.msra.mxu1 %v4669_v49 }
 0x52a   : > { %2855 = vmatprep.subr.bf16.mxu0 %v4670_v54  ;;  %4290 = vmatprep.subr.bf16.mxu1 %v4670_v54 }
 0x52d   : > { %2856 = vmatpush1.bf16.msra.mxu0 %v4672_v58  ;;  %4298 = vmatpush1.bf16.msra.mxu1 %v4672_v58 }
 0x52e   : > { %2857 = vmatprep.subr.bf16.mxu0 %v4673_v4  ;;  %4291 = vmatprep.subr.bf16.mxu1 %v4673_v4 }
 0x531   : > { %2858 = vmatpush1.bf16.msra.mxu0 %v4675_v44  ;;  %4299 = vmatpush1.bf16.msra.mxu1 %v4675_v44 }
 0x532   : > { %2859 = vmatprep.subr.bf16.mxu0 %v4676_v63  ;;  %4292 = vmatprep.subr.bf16.mxu1 %v4676_v63 }
 0x535   : > { %2860 = vmatpush1.bf16.msra.mxu0 %v4678_v39  ;;  %4300 = vmatpush1.bf16.msra.mxu1 %v4678_v39 }
 0x536   : > { %2861 = vmatprep.subr.bf16.mxu0 %v4679_v5  ;;  %4293 = vmatprep.subr.bf16.mxu1 %v4679_v5 }
 0x539   : > { %2862 = vmatpush1.bf16.msra.mxu0 %v4681_v10  ;;  %4301 = vmatpush1.bf16.msra.mxu1 %v4681_v10 }
 0x53c   : > { %2880 = vmatmul.mubr.bf16.vlgmr.msra.gmra.mrb[0].mxu0 %v6134_v38  ;;  %2920 = vmatmul.mubr.bf16.vlgmr.msra.gmra.mrb[0].mxu1 %v6160_v41  ;;  %v2719_v38 = vld [vmem:[#allocation4] sm:$0xff] }
 0x53d   : > { %2889 = vmatprep.mubr.bf16.mxu0 %v5147_v43  ;;  %2929 = vmatprep.mubr.bf16.mxu1 %v5147_v43  ;;  %v2735_v41 = vld [vmem:[#allocation4 + $0x80] sm:$0xff] }
 0x544   : > { %2890 = vmatmul.mubr.bf16.gmra.mrb[4].mxu0 %v6132_v11  ;;  %2930 = vmatmul.mubr.bf16.gmra.mrb[4].mxu1 %v6158_v35  ;;  %v2737_v35 = vld [vmem:[#allocation4 + $0x90] sm:$0xff] }
 0x545   : > { %2899 = vmatprep.mubr.bf16.mxu0 %v5147_v43  ;;  %2939 = vmatprep.mubr.bf16.mxu1 %v5147_v43 }
 0x54c   : > { %2900 = vmatmul.mubr.bf16.gmra.mrb[8].mxu0 %v6148_v51  ;;  %2940 = vmatmul.mubr.bf16.gmra.mrb[8].mxu1 %v6168_v13  ;;  %v2738_v13 = vld [vmem:[#allocation4 + $0x98] sm:$0xff] }
 0x54d   : > { %2909 = vmatprep.mubr.bf16.mxu0 %v5147_v43  ;;  %2949 = vmatprep.mubr.bf16.mxu1 %v5147_v43 }
 0x554   : > { %2910 = vmatmul.mubr.bf16.gmra.mrb[12].mxu0 %v6146_v34  ;;  %2950 = vmatmul.mubr.bf16.gmra.mrb[12].mxu1 %v6171_v62 }
 0x60f   : > { %v2881_v42 = vpop.f32.mrb[0].mxu0  ;;  %v2921_v11 = vpop.f32.mrb[0].mxu1 }
 0x610   : > { %v2960_v33 = vadd.f32 %v2881_v42, %v2719_v38  ;;  %v2976_v53 = vadd.f32 %v2921_v11, %v2735_v41  ;;  %v2883_v48 = vpop.f32.mrb[1].mxu0  ;;  %v2923_v51 = vpop.f32.mrb[1].mxu1  ;;  %v2727_v38 = vld [vmem:[#allocation4 + $0x40] sm:$0xff] }
 0x611   : > { %v2961_v8 = vadd.f32 %v2883_v48, %v2720_v14  ;;  %v2977_v32 = vadd.f32 %v2923_v51, %v2736_v50  ;;  %v2885_v12 = vpop.f32.mrb[2].mxu0  ;;  %v2925_v34 = vpop.f32.mrb[2].mxu1  ;;  %v2743_v41 = vld [vmem:[#allocation4 + $0xc0] sm:$0xff]  ;;  %v2728_v14 = vld [vmem:[#allocation4 + $0x48] sm:$0xff] }
 0x612   : > { %2992 = vst [vmem:[#allocation4] sm:$0xff] %v2960_v33  ;;  %3008 = vst [vmem:[#allocation4 + $0x80] sm:$0xff] %v2976_v53  ;;  %v2962_v62 = vadd.f32 %v2885_v12, %v2721_v36  ;;  %v2978_v61 = vadd.f32 %v2925_v34, %v2737_v35  ;;  %v2887_v0 = vpop.f32.mrb[3].mxu0  ;;  %v2927_v16 = vpop.f32.mrb[3].mxu1  ;;  %v2744_v50 = vld [vmem:[#allocation4 + $0xc8] sm:$0xff]  ;;  %v2729_v36 = vld [vmem:[#allocation4 + $0x50] sm:$0xff] }
 0x613   : > { %2993 = vst [vmem:[#allocation4 + $0x8] sm:$0xff] %v2961_v8  ;;  %3009 = vst [vmem:[#allocation4 + $0x88] sm:$0xff] %v2977_v32  ;;  %v2963_v45 = vadd.f32 %v2887_v0, %v2722_v60  ;;  %v2979_v1 = vadd.f32 %v2927_v16, %v2738_v13  ;;  %v2745_v35 = vld [vmem:[#allocation4 + $0xd0] sm:$0xff]  ;;  %v2730_v60 = vld [vmem:[#allocation4 + $0x58] sm:$0xff] }
 0x614   : > { %2994 = vst [vmem:[#allocation4 + $0x10] sm:$0xff] %v2962_v62  ;;  %3010 = vst [vmem:[#allocation4 + $0x90] sm:$0xff] %v2978_v61  ;;  %v2746_v13 = vld [vmem:[#allocation4 + $0xd8] sm:$0xff] }
 0x615   : > { %2995 = vst [vmem:[#allocation4 + $0x18] sm:$0xff] %v2963_v45  ;;  %3011 = vst [vmem:[#allocation4 + $0x98] sm:$0xff] %v2979_v1 }
 0x617   : > { %v2891_v3 = vpop.f32.mrb[4].mxu0  ;;  %v2931_v40 = vpop.f32.mrb[4].mxu1 }
 0x618   : > { %v2964_v52 = vadd.f32 %v2891_v3, %v2723_v59  ;;  %v2980_v43 = vadd.f32 %v2931_v40, %v2739_v46  ;;  %v2893_v57 = vpop.f32.mrb[5].mxu0  ;;  %v2933_v6 = vpop.f32.mrb[5].mxu1  ;;  %v2731_v59 = vld [vmem:[#allocation4 + $0x60] sm:$0xff] }
 0x619   : > { %v2965_v9 = vadd.f32 %v2893_v57, %v2724_v56  ;;  %v2981_v49 = vadd.f32 %v2933_v6, %v2740_v55  ;;  %v2895_v54 = vpop.f32.mrb[6].mxu0  ;;  %v2935_v58 = vpop.f32.mrb[6].mxu1  ;;  %v2747_v46 = vld [vmem:[#allocation4 + $0xe0] sm:$0xff]  ;;  %v2732_v56 = vld [vmem:[#allocation4 + $0x68] sm:$0xff] }
 0x61a   : > { %2996 = vst [vmem:[#allocation4 + $0x20] sm:$0xff] %v2964_v52  ;;  %3012 = vst [vmem:[#allocation4 + $0xa0] sm:$0xff] %v2980_v43  ;;  %v2966_v4 = vadd.f32 %v2895_v54, %v2725_v7  ;;  %v2982_v44 = vadd.f32 %v2935_v58, %v2741_v37  ;;  %v2897_v63 = vpop.f32.mrb[7].mxu0  ;;  %v2937_v39 = vpop.f32.mrb[7].mxu1  ;;  %v2748_v55 = vld [vmem:[#allocation4 + $0xe8] sm:$0xff]  ;;  %v2733_v7 = vld [vmem:[#allocation4 + $0x70] sm:$0xff] }
 0x61b   : > { %2997 = vst [vmem:[#allocation4 + $0x28] sm:$0xff] %v2965_v9  ;;  %3013 = vst [vmem:[#allocation4 + $0xa8] sm:$0xff] %v2981_v49  ;;  %v2967_v5 = vadd.f32 %v2897_v63, %v2726_v15  ;;  %v2983_v10 = vadd.f32 %v2937_v39, %v2742_v47  ;;  %v2749_v37 = vld [vmem:[#allocation4 + $0xf0] sm:$0xff]  ;;  %v2734_v15 = vld [vmem:[#allocation4 + $0x78] sm:$0xff] }
 0x61c   : > { %2998 = vst [vmem:[#allocation4 + $0x30] sm:$0xff] %v2966_v4  ;;  %3014 = vst [vmem:[#allocation4 + $0xb0] sm:$0xff] %v2982_v44  ;;  %v2750_v47 = vld [vmem:[#allocation4 + $0xf8] sm:$0xff] }
 0x61d   : > { %2999 = vst [vmem:[#allocation4 + $0x38] sm:$0xff] %v2967_v5  ;;  %3015 = vst [vmem:[#allocation4 + $0xb8] sm:$0xff] %v2983_v10 }
 0x61f   : > { %v2901_v42 = vpop.f32.mrb[8].mxu0  ;;  %v2941_v11 = vpop.f32.mrb[8].mxu1 }
 0x620   : > { %v2968_v33 = vadd.f32 %v2901_v42, %v2727_v38  ;;  %v2984_v53 = vadd.f32 %v2941_v11, %v2743_v41  ;;  %v2903_v48 = vpop.f32.mrb[9].mxu0  ;;  %v2943_v51 = vpop.f32.mrb[9].mxu1 }
 0x621   : > { %v2969_v8 = vadd.f32 %v2903_v48, %v2728_v14  ;;  %v2985_v32 = vadd.f32 %v2943_v51, %v2744_v50  ;;  %v2905_v12 = vpop.f32.mrb[10].mxu0  ;;  %v2945_v34 = vpop.f32.mrb[10].mxu1 }
 0x622   : > { %3000 = vst [vmem:[#allocation4 + $0x40] sm:$0xff] %v2968_v33  ;;  %3016 = vst [vmem:[#allocation4 + $0xc0] sm:$0xff] %v2984_v53  ;;  %v2970_v62 = vadd.f32 %v2905_v12, %v2729_v36  ;;  %v2986_v61 = vadd.f32 %v2945_v34, %v2745_v35  ;;  %v2907_v0 = vpop.f32.mrb[11].mxu0  ;;  %v2947_v16 = vpop.f32.mrb[11].mxu1 }
 0x623   : > { %3001 = vst [vmem:[#allocation4 + $0x48] sm:$0xff] %v2969_v8  ;;  %3017 = vst [vmem:[#allocation4 + $0xc8] sm:$0xff] %v2985_v32  ;;  %v2971_v45 = vadd.f32 %v2907_v0, %v2730_v60  ;;  %v2987_v1 = vadd.f32 %v2947_v16, %v2746_v13 }
 0x624   : > { %3002 = vst [vmem:[#allocation4 + $0x50] sm:$0xff] %v2970_v62  ;;  %3018 = vst [vmem:[#allocation4 + $0xd0] sm:$0xff] %v2986_v61 }
 0x625   : > { %3003 = vst [vmem:[#allocation4 + $0x58] sm:$0xff] %v2971_v45  ;;  %3019 = vst [vmem:[#allocation4 + $0xd8] sm:$0xff] %v2987_v1 }
 0x627   : > { %v2911_v3 = vpop.f32.mrb[12].mxu0  ;;  %v2951_v40 = vpop.f32.mrb[12].mxu1 }
 0x628   : > { %v2972_v52 = vadd.f32 %v2911_v3, %v2731_v59  ;;  %v2988_v43 = vadd.f32 %v2951_v40, %v2747_v46  ;;  %v2913_v57 = vpop.f32.mrb[13].mxu0  ;;  %v2953_v6 = vpop.f32.mrb[13].mxu1 }
 0x629   : > { %v2973_v9 = vadd.f32 %v2913_v57, %v2732_v56  ;;  %v2989_v49 = vadd.f32 %v2953_v6, %v2748_v55  ;;  %v2915_v54 = vpop.f32.mrb[14].mxu0  ;;  %v2955_v58 = vpop.f32.mrb[14].mxu1 }
 0x62a   : > { %3004 = vst [vmem:[#allocation4 + $0x60] sm:$0xff] %v2972_v52  ;;  %3020 = vst [vmem:[#allocation4 + $0xe0] sm:$0xff] %v2988_v43  ;;  %v2974_v4 = vadd.f32 %v2915_v54, %v2733_v7  ;;  %v2990_v44 = vadd.f32 %v2955_v58, %v2749_v37  ;;  %v2917_v63 = vpop.f32.mrb[15].mxu0  ;;  %v2957_v39 = vpop.f32.mrb[15].mxu1 }
 0x62b   : > { %3005 = vst [vmem:[#allocation4 + $0x68] sm:$0xff] %v2973_v9  ;;  %3021 = vst [vmem:[#allocation4 + $0xe8] sm:$0xff] %v2989_v49  ;;  %v2975_v5 = vadd.f32 %v2917_v63, %v2734_v15  ;;  %v2991_v10 = vadd.f32 %v2957_v39, %v2750_v47 }
 0x62c   : > { %3006 = vst [vmem:[#allocation4 + $0x70] sm:$0xff] %v2974_v4  ;;  %3022 = vst [vmem:[#allocation4 + $0xf0] sm:$0xff] %v2990_v44 }
 0x62d   : > { %3007 = vst [vmem:[#allocation4 + $0x78] sm:$0xff] %v2975_v5  ;;  %3023 = vst [vmem:[#allocation4 + $0xf8] sm:$0xff] %v2991_v10 }
 0x62e PF: > { %s6498_s13 = sld [smem:[#allocation35_spill]] }
 0x634   : > { %p3024_p5 = scmp.eq.s32.totalorder %s6498_s13, 1 }
 0x636   : > { %p3025_p12 = pnand %p3024_p5, %p712_p6 }
 0x637   : > { %v4684_v38 = vld [vmem:[#allocation21 + $0x40] sm:$0xff] (!%p3025_p12)   ;;  %v5148_v41 = vmov (!%p3025_p12), 0   ;;  %v4686_v50 = vld [vmem:[#allocation21 + $0x48] sm:$0xff] (!%p3025_p12)   ;;  %v4688_v11 = vld [vmem:[#allocation21 + $0x50] sm:$0xff] (!%p3025_p12)  }
 0x638   : > { %3028 = sbr.rel (%p3025_p12) target bundleno = 1974 (0x7b6), region = 128  ;;  %4683 = vset.pattern.permute.xlu1 (!%p3025_p12), %v5148_v41  ;;  %4682 = vset.pattern.permute.xlu0 (!%p3025_p12), %v5148_v41  ;;  %v4685_v14 = vld [vmem:[#allocation21] sm:$0xff] (!%p3025_p12)   ;;  %v4687_v42 = vld [vmem:[#allocation21 + $0x8] sm:$0xff] (!%p3025_p12)   ;;  %v4689_v36 = vld [vmem:[#allocation21 + $0x10] sm:$0xff] (!%p3025_p12)  }
 0x639   : > { %3103 = vperm.xlu1 (!%p3025_p12), %4683, %v5842_v24   ;;  %3063 = vperm.xlu0 (!%p3025_p12), %4682, %v5765_v2   ;;  %v4690_v24 = vld [vmem:[#allocation21 + $0x58] sm:$0xff] (!%p3025_p12)   ;;  %v4692_v35 = vld [vmem:[#allocation21 + $0x60] sm:$0xff] (!%p3025_p12)   ;;  %v3030_v48 = vld [vmem:[#allocation4 + $0x8] sm:$0xff] (!%p3025_p12) }
 0x63a   : > { %4110 = vmatprep.subr.bf16.mxu0 (!%p3025_p12), %v4684_v38  ;;  %4302 = vmatprep.subr.bf16.mxu1 (!%p3025_p12), %v4684_v38  ;;  %v4691_v2 = vld [vmem:[#allocation21 + $0x18] sm:$0xff] (!%p3025_p12)   ;;  %v3029_v53 = vld [vmem:[#allocation4] sm:$0xff] (!%p3025_p12)  ;;  %v3034_v45 = vld [vmem:[#allocation4 + $0x28] sm:$0xff] (!%p3025_p12) }
 0x63b   : > { %4111 = vmatpush3.bf16.msra.mxu0 (!%p3025_p12), %v4685_v14  ;;  %4310 = vmatpush3.bf16.msra.mxu1 (!%p3025_p12), %v4685_v14  ;;  %v3048_v51 = vld [vmem:[#allocation4 + $0x98] sm:$0xff] (!%p3025_p12)  ;;  %v3035_v40 = vld [vmem:[#allocation4 + $0x30] sm:$0xff] (!%p3025_p12)  ;;  %v3033_v37 = vld [vmem:[#allocation4 + $0x20] sm:$0xff] (!%p3025_p12) }
 0x63c   : > { %4112 = vmatprep.subr.bf16.mxu0 (!%p3025_p12), %v4686_v50  ;;  %4303 = vmatprep.subr.bf16.mxu1 (!%p3025_p12), %v4686_v50  ;;  %v3032_v60 = vld [vmem:[#allocation4 + $0x18] sm:$0xff] (!%p3025_p12)  ;;  %v3051_v43 = vld [vmem:[#allocation4 + $0xb0] sm:$0xff] (!%p3025_p12)  ;;  %v3049_v6 = vld [vmem:[#allocation4 + $0xa0] sm:$0xff] (!%p3025_p12) }
 0x63d   : > { %3108 = vperm.xlu1 (!%p3025_p12), %4683, %v5845_v25   ;;  %3068 = vperm.xlu0 (!%p3025_p12), %4682, %v5818_v17   ;;  %v4693_v17 = vld [vmem:[#allocation21 + $0x20] sm:$0xff] (!%p3025_p12)   ;;  %v4694_v25 = vld [vmem:[#allocation21 + $0x68] sm:$0xff] (!%p3025_p12)   ;;  %v3036_v16 = vld [vmem:[#allocation4 + $0x38] sm:$0xff] (!%p3025_p12) }
 0x63e   : > { %v3052_v57 = vld [vmem:[#allocation4 + $0xb8] sm:$0xff] (!%p3025_p12)  ;;  %v3050_v15 = vld [vmem:[#allocation4 + $0xa8] sm:$0xff] (!%p3025_p12) }
 0x63f   : > { %4113 = vmatpush3.bf16.msra.mxu0 %v4687_v42  ;;  %4311 = vmatpush3.bf16.msra.mxu1 %v4687_v42  ;;  %v3040_v5 = vld [vmem:[#allocation4 + $0x58] sm:$0xff]  ;;  %v3038_v10 = vld [vmem:[#allocation4 + $0x48] sm:$0xff] }
 0x640   : > { %4114 = vmatprep.subr.bf16.mxu0 %v4688_v11  ;;  %4304 = vmatprep.subr.bf16.mxu1 %v4688_v11  ;;  %v3039_v11 = vld [vmem:[#allocation4 + $0x50] sm:$0xff] }
 0x641   : > { %3078 = vperm.xlu1 %4683, %v5827_v19   ;;  %3073 = vperm.xlu0 %4682, %v5824_v18   ;;  %v4695_v18 = vld [vmem:[#allocation21 + $0x28] sm:$0xff]   ;;  %v4696_v19 = vld [vmem:[#allocation21 + $0x70] sm:$0xff]  }
 0x643   : > { %4115 = vmatpush3.bf16.msra.mxu0 %v4689_v36  ;;  %4312 = vmatpush3.bf16.msra.mxu1 %v4689_v36 }
 0x644   : > { %4116 = vmatprep.subr.bf16.mxu0 %v4690_v24  ;;  %4305 = vmatprep.subr.bf16.mxu1 %v4690_v24  ;;  %v3037_v24 = vld [vmem:[#allocation4 + $0x40] sm:$0xff] }
 0x645   : > { %3118 = vperm.xlu1 %4683, %v5856_v27   ;;  %3113 = vperm.xlu0 %4682, %v5848_v26   ;;  %v4697_v26 = vld [vmem:[#allocation21 + $0x30] sm:$0xff]   ;;  %v4698_v27 = vld [vmem:[#allocation21 + $0x78] sm:$0xff]  }
 0x647   : > { %4117 = vmatpush3.bf16.msra.mxu0 %v4691_v2  ;;  %4313 = vmatpush3.bf16.msra.mxu1 %v4691_v2 }
 0x648   : > { %4118 = vmatprep.subr.bf16.mxu0 %v4692_v35  ;;  %4306 = vmatprep.subr.bf16.mxu1 %v4692_v35  ;;  %v3055_v35 = vld [vmem:[#allocation4 + $0xd0] sm:$0xff] }
 0x649   : > { %3088 = vperm.xlu1 %4683, %v5833_v21   ;;  %3083 = vperm.xlu0 %4682, %v5830_v20   ;;  %v4699_v20 = vld [vmem:[#allocation21 + $0x38] sm:$0xff]  }
 0x64b   : > { %4119 = vmatpush3.bf16.msra.mxu0 %v4693_v17  ;;  %4314 = vmatpush3.bf16.msra.mxu1 %v4693_v17  ;;  %v3056_v17 = vld [vmem:[#allocation4 + $0xd8] sm:$0xff] }
 0x64c   : > { %4120 = vmatprep.subr.bf16.mxu0 %v4694_v25  ;;  %4307 = vmatprep.subr.bf16.mxu1 %v4694_v25  ;;  %v3053_v25 = vld [vmem:[#allocation4 + $0xc0] sm:$0xff] }
 0x64d   : > { %3128 = vperm.xlu1 %4683, %v5862_v29   ;;  %3123 = vperm.xlu0 %4682, %v5859_v28   ;;  %v3045_v28 = vld [vmem:[#allocation4 + $0x80] sm:$0xff]  ;;  %v3046_v29 = vld [vmem:[#allocation4 + $0x88] sm:$0xff] }
 0x64f   : > { %4121 = vmatpush3.bf16.msra.mxu0 %v4695_v18  ;;  %4315 = vmatpush3.bf16.msra.mxu1 %v4695_v18  ;;  %v3054_v18 = vld [vmem:[#allocation4 + $0xc8] sm:$0xff] }
 0x650   : > { %4122 = vmatprep.subr.bf16.mxu0 %v4696_v19  ;;  %4308 = vmatprep.subr.bf16.mxu1 %v4696_v19 }
 0x651   : > { %3098 = vperm.xlu1 %4683, %v5839_v23   ;;  %3093 = vperm.xlu0 %4682, %v5836_v22   ;;  %v3047_v23 = vld [vmem:[#allocation4 + $0x90] sm:$0xff] }
 0x652   : > { %v3031_v22 = vld [vmem:[#allocation4 + $0x10] sm:$0xff] }
 0x653   : > { %4123 = vmatpush3.bf16.msra.mxu0 %v4697_v26  ;;  %4316 = vmatpush3.bf16.msra.mxu1 %v4697_v26 }
 0x654   : > { %4124 = vmatprep.subr.bf16.mxu0 %v4698_v27  ;;  %4309 = vmatprep.subr.bf16.mxu1 %v4698_v27 }
 0x655   : > { %3138 = vperm.xlu1 %4683, %v5868_v31   ;;  %3133 = vperm.xlu0 %4682, %v5865_v30  }
 0x657   : > { %4125 = vmatpush3.bf16.msra.mxu0 %v4699_v20  ;;  %4317 = vmatpush3.bf16.msra.mxu1 %v4699_v20 }
 0x6b8   : > { %v3104_v21 = vpop.permute.xlu1 %3103  ;;  %v3064_v33 = vpop.permute.xlu0 %3063 }
 0x6b9   : > { %v3157_v13 = vmul.f32 %v3104_v21, %v3045_v28  ;;  %v3158_v8 = vmul.f32 %v3104_v21, %v3046_v29  ;;  %v3141_v32 = vmul.f32 %v3064_v33, %v3029_v53  ;;  %v3142_v12 = vmul.f32 %v3064_v33, %v3030_v48  ;;  %v3044_v48 = vld [vmem:[#allocation4 + $0x78] sm:$0xff] }
 0x6bc   : > { %v3109_v34 = vpop.permute.xlu1 %3108  ;;  %v3069_v31 = vpop.permute.xlu0 %3068 }
 0x6bd   : > { %v3159_v62 = vmul.f32 %v3109_v34, %v3047_v23  ;;  %v3160_v30 = vmul.f32 %v3109_v34, %v3048_v51  ;;  %v3143_v61 = vmul.f32 %v3069_v31, %v3031_v22  ;;  %v3144_v0 = vmul.f32 %v3069_v31, %v3032_v60  ;;  %v3042_v23 = vld [vmem:[#allocation4 + $0x68] sm:$0xff]  ;;  %v3041_v34 = vld [vmem:[#allocation4 + $0x60] sm:$0xff] }
 0x6bf   : > { %v3181_v1 = vpack.c.bf16 %v3159_v62, %v3157_v13  ;;  %v3173_v59 = vpack.c.bf16 %v3143_v61, %v3141_v32  ;;  %v3174_v46 = vpack.c.bf16 %v3144_v0, %v3142_v12  ;;  %v3182_v56 = vpack.c.bf16 %v3160_v30, %v3158_v8  ;;  %v3043_v32 = vld [vmem:[#allocation4 + $0x70] sm:$0xff]  ;;  %v3060_v30 = vld [vmem:[#allocation4 + $0xf8] sm:$0xff]  ;;  %v3057_v61 = vld [vmem:[#allocation4 + $0xe0] sm:$0xff] }
 0x6c0   : > { %v3079_v55 = vpop.permute.xlu1 %3078  ;;  %v3074_v3 = vpop.permute.xlu0 %3073  ;;  %v3059_v62 = vld [vmem:[#allocation4 + $0xf0] sm:$0xff]  ;;  %v3058_v0 = vld [vmem:[#allocation4 + $0xe8] sm:$0xff] }
 0x6c1   : > { %v3148_v7 = vmul.f32 %v3079_v55, %v3036_v16  ;;  %v3146_v52 = vmul.f32 %v3074_v3, %v3034_v45  ;;  %3365 = vmatprep.mubr.bf16.mxu0 %v3174_v46  ;;  %3397 = vmatprep.mubr.bf16.mxu1 %v3182_v56  ;;  %v3147_v9 = vmul.f32 %v3079_v55, %v3035_v40 }
 0x6c2   : > { %3366 = vmatmul.mubr.bf16.vlgmr.msra.gmra.mrb[0].mxu0 %v3173_v59  ;;  %3398 = vmatmul.mubr.bf16.vlgmr.msra.gmra.mrb[0].mxu1 %v3181_v1  ;;  %v3145_v49 = vmul.f32 %v3074_v3, %v3033_v37 }
 0x6c3   : > { %v3176_v47 = vpack.c.bf16 %v3148_v7, %v3146_v52 }
 0x6c4   : > { %v3119_v54 = vpop.permute.xlu1 %3118  ;;  %v3114_v58 = vpop.permute.xlu0 %3113  ;;  %v3175_v14 = vpack.c.bf16 %v3147_v9, %v3145_v49  ;;  %v3197_v9 = vld [vmem:[%s5872_s12 + $0x40] sm:$0xff] }
 0x6c5   : > { %v3163_v4 = vmul.f32 %v3119_v54, %v3051_v43  ;;  %v3164_v44 = vmul.f32 %v3119_v54, %v3052_v57  ;;  %v3161_v63 = vmul.f32 %v3114_v58, %v3049_v6  ;;  %v3162_v39 = vmul.f32 %v3114_v58, %v3050_v15  ;;  %3373 = vmatprep.mubr.bf16.mxu0 %v3176_v47  ;;  %v3189_v6 = vld [vmem:[%s5872_s12] sm:$0xff] }
 0x6c7   : > { %v3183_v38 = vpack.c.bf16 %v3163_v4, %v3161_v63  ;;  %v3184_v41 = vpack.c.bf16 %v3164_v44, %v3162_v39  ;;  %v3190_v44 = vld [vmem:[%s5872_s12 + $0x8] sm:$0xff] }
 0x6c8   : > { %v3089_v50 = vpop.permute.xlu1 %3088  ;;  %v3084_v42 = vpop.permute.xlu0 %3083 }
 0x6c9   : > { %v3152_v36 = vmul.f32 %v3089_v50, %v3040_v5  ;;  %v3150_v2 = vmul.f32 %v3084_v42, %v3038_v10  ;;  %3405 = vmatprep.mubr.bf16.mxu1 %v3184_v41  ;;  %v3151_v26 = vmul.f32 %v3089_v50, %v3039_v11  ;;  %v3149_v27 = vmul.f32 %v3084_v42, %v3037_v24  ;;  %v3198_v10 = vld [vmem:[%s5872_s12 + $0x48] sm:$0xff]  ;;  %v3191_v24 = vld [vmem:[%s5872_s12 + $0x10] sm:$0xff] }
 0x6ca   : > { %3374 = vmatmul.mubr.bf16.gmra.mrb[4].mxu0 %v3175_v14  ;;  %3406 = vmatmul.mubr.bf16.gmra.mrb[4].mxu1 %v3183_v38 }
 0x6cb   : > { %v3178_v19 = vpack.c.bf16 %v3152_v36, %v3150_v2  ;;  %v3177_v60 = vpack.c.bf16 %v3151_v26, %v3149_v27  ;;  %v3192_v27 = vld [vmem:[%s5872_s12 + $0x18] sm:$0xff] }
 0x6cc   : > { %v3129_v20 = vpop.permute.xlu1 %3128  ;;  %v3124_v21 = vpop.permute.xlu0 %3123 }
 0x6cd   : > { %v3167_v28 = vmul.f32 %v3129_v20, %v3055_v35  ;;  %v3168_v29 = vmul.f32 %v3129_v20, %v3056_v17  ;;  %v3165_v33 = vmul.f32 %v3124_v21, %v3053_v25  ;;  %v3166_v53 = vmul.f32 %v3124_v21, %v3054_v18  ;;  %3381 = vmatprep.mubr.bf16.mxu0 %v3178_v19  ;;  %v3199_v17 = vld [vmem:[%s5872_s12 + $0x50] sm:$0xff] }
 0x6cf   : > { %v3185_v51 = vpack.c.bf16 %v3167_v28, %v3165_v33  ;;  %v3186_v22 = vpack.c.bf16 %v3168_v29, %v3166_v53  ;;  %v3200_v29 = vld [vmem:[%s5872_s12 + $0x58] sm:$0xff] }
 0x6d0   : > { %v3099_v13 = vpop.permute.xlu1 %3098  ;;  %v3094_v8 = vpop.permute.xlu0 %3093 }
 0x6d1   : > { %v3156_v12 = vmul.f32 %v3099_v13, %v3044_v48  ;;  %v3154_v31 = vmul.f32 %v3094_v8, %v3042_v23  ;;  %3413 = vmatprep.mubr.bf16.mxu1 %v3186_v22  ;;  %v3155_v45 = vmul.f32 %v3099_v13, %v3043_v32  ;;  %v3153_v1 = vmul.f32 %v3094_v8, %v3041_v34  ;;  %v3193_v13 = vld [vmem:[%s5872_s12 + $0x20] sm:$0xff] }
 0x6d2   : > { %3382 = vmatmul.mubr.bf16.gmra.mrb[8].mxu0 %v3177_v60  ;;  %3414 = vmatmul.mubr.bf16.gmra.mrb[8].mxu1 %v3185_v51 }
 0x6d3   : > { %v3180_v16 = vpack.c.bf16 %v3156_v12, %v3154_v31  ;;  %v3179_v52 = vpack.c.bf16 %v3155_v45, %v3153_v1  ;;  %v3201_v12 = vld [vmem:[%s5872_s12 + $0x60] sm:$0xff]  ;;  %v3202_v1 = vld [vmem:[%s5872_s12 + $0x68] sm:$0xff] }
 0x6d4   : > { %v3139_v59 = vpop.permute.xlu1 %3138  ;;  %v3134_v46 = vpop.permute.xlu0 %3133 }
 0x6d5   : > { %v3171_v56 = vmul.f32 %v3139_v59, %v3059_v62  ;;  %v3172_v55 = vmul.f32 %v3139_v59, %v3060_v30  ;;  %v3169_v3 = vmul.f32 %v3134_v46, %v3057_v61  ;;  %v3170_v40 = vmul.f32 %v3134_v46, %v3058_v0  ;;  %3389 = vmatprep.mubr.bf16.mxu0 %v3180_v16  ;;  %v3194_v61 = vld [vmem:[%s5872_s12 + $0x28] sm:$0xff] }
 0x6d7   : > { %v3187_v7 = vpack.c.bf16 %v3171_v56, %v3169_v3  ;;  %v3188_v37 = vpack.c.bf16 %v3172_v55, %v3170_v40 }
 0x6d9   : > { %3421 = vmatprep.mubr.bf16.mxu1 %v3188_v37  ;;  %v3195_v37 = vld [vmem:[%s5872_s12 + $0x30] sm:$0xff] }
 0x6da   : > { %3390 = vmatmul.mubr.bf16.gmra.mrb[12].mxu0 %v3179_v52  ;;  %3422 = vmatmul.mubr.bf16.gmra.mrb[12].mxu1 %v3187_v7 }
 0x795   : > { %v4126_v43 = vpop.f32.mrb[0].mxu0  ;;  %v4150_v57 = vpop.f32.mrb[0].mxu1 }
 0x796   : > { %v4127_v15 = vpop.f32.mrb[1].mxu0  ;;  %v4151_v49 = vpop.f32.mrb[1].mxu1 }
 0x797   : > { %v4128_v47 = vadd.f32 %v4127_v15, %v4126_v43  ;;  %v4129_v54 = vpop.f32.mrb[2].mxu0  ;;  %v4152_v58 = vadd.f32 %v4151_v49, %v4150_v57  ;;  %v4153_v4 = vpop.f32.mrb[2].mxu1  ;;  %v3203_v57 = vld [vmem:[%s5872_s12 + $0x70] sm:$0xff]  ;;  %v3196_v49 = vld [vmem:[%s5872_s12 + $0x38] sm:$0xff] }
 0x798   : > { %v4130_v63 = vpop.f32.mrb[3].mxu0  ;;  %v4154_v38 = vpop.f32.mrb[3].mxu1 }
 0x799   : > { %v3430_v39 = vadd.f32 %v4128_v47, %v3189_v6  ;;  %v4131_v5 = vadd.f32 %v4130_v63, %v4129_v54  ;;  %v3438_v41 = vadd.f32 %v4152_v58, %v3197_v9  ;;  %v4155_v14 = vadd.f32 %v4154_v38, %v4153_v4 }
 0x79b   : > { %3446 = vst [vmem:[%s5872_s12] sm:$0xff] %v3430_v39  ;;  %v3431_v50 = vadd.f32 %v4131_v5, %v3190_v44  ;;  %3454 = vst [vmem:[%s5872_s12 + $0x40] sm:$0xff] %v3438_v41  ;;  %v3439_v42 = vadd.f32 %v4155_v14, %v3198_v10  ;;  %v3204_v44 = vld [vmem:[%s5872_s12 + $0x78] sm:$0xff] }
 0x79d   : > { %3447 = vst [vmem:[%s5872_s12 + $0x8] sm:$0xff] %v3431_v50  ;;  %v4132_v11 = vpop.f32.mrb[4].mxu0  ;;  %3455 = vst [vmem:[%s5872_s12 + $0x48] sm:$0xff] %v3439_v42  ;;  %v4156_v36 = vpop.f32.mrb[4].mxu1 }
 0x79e   : > { %v4133_v2 = vpop.f32.mrb[5].mxu0  ;;  %v4157_v25 = vpop.f32.mrb[5].mxu1 }
 0x79f   : > { %v4134_v35 = vadd.f32 %v4133_v2, %v4132_v11  ;;  %v4135_v18 = vpop.f32.mrb[6].mxu0  ;;  %v4158_v19 = vadd.f32 %v4157_v25, %v4156_v36  ;;  %v4159_v26 = vpop.f32.mrb[6].mxu1 }
 0x7a0   : > { %v4136_v20 = vpop.f32.mrb[7].mxu0  ;;  %v4160_v33 = vpop.f32.mrb[7].mxu1 }
 0x7a1   : > { %v3432_v21 = vadd.f32 %v4134_v35, %v3191_v24  ;;  %v4137_v28 = vadd.f32 %v4136_v20, %v4135_v18  ;;  %v3440_v53 = vadd.f32 %v4158_v19, %v3199_v17  ;;  %v4161_v48 = vadd.f32 %v4160_v33, %v4159_v26 }
 0x7a3   : > { %3448 = vst [vmem:[%s5872_s12 + $0x10] sm:$0xff] %v3432_v21  ;;  %v3433_v23 = vadd.f32 %v4137_v28, %v3192_v27  ;;  %3456 = vst [vmem:[%s5872_s12 + $0x50] sm:$0xff] %v3440_v53  ;;  %v3441_v51 = vadd.f32 %v4161_v48, %v3200_v29 }
 0x7a5   : > { %3449 = vst [vmem:[%s5872_s12 + $0x18] sm:$0xff] %v3433_v23  ;;  %v4138_v22 = vpop.f32.mrb[8].mxu0  ;;  %3457 = vst [vmem:[%s5872_s12 + $0x58] sm:$0xff] %v3441_v51  ;;  %v4162_v60 = vpop.f32.mrb[8].mxu1 }
 0x7a6   : > { %v4139_v8 = vpop.f32.mrb[9].mxu0  ;;  %v4163_v34 = vpop.f32.mrb[9].mxu1 }
 0x7a7   : > { %v4140_v32 = vadd.f32 %v4139_v8, %v4138_v22  ;;  %v4141_v31 = vpop.f32.mrb[10].mxu0  ;;  %v4164_v62 = vadd.f32 %v4163_v34, %v4162_v60  ;;  %v4165_v30 = vpop.f32.mrb[10].mxu1 }
 0x7a8   : > { %v4142_v0 = vpop.f32.mrb[11].mxu0  ;;  %v4166_v59 = vpop.f32.mrb[11].mxu1 }
 0x7a9   : > { %v3434_v16 = vadd.f32 %v4140_v32, %v3193_v13  ;;  %v4143_v45 = vadd.f32 %v4142_v0, %v4141_v31  ;;  %v3442_v46 = vadd.f32 %v4164_v62, %v3201_v12  ;;  %v4167_v56 = vadd.f32 %v4166_v59, %v4165_v30 }
 0x7ab   : > { %3450 = vst [vmem:[%s5872_s12 + $0x20] sm:$0xff] %v3434_v16  ;;  %v3435_v55 = vadd.f32 %v4143_v45, %v3194_v61  ;;  %3458 = vst [vmem:[%s5872_s12 + $0x60] sm:$0xff] %v3442_v46  ;;  %v3443_v3 = vadd.f32 %v4167_v56, %v3202_v1 }
 0x7ad   : > { %3451 = vst [vmem:[%s5872_s12 + $0x28] sm:$0xff] %v3435_v55  ;;  %v4144_v40 = vpop.f32.mrb[12].mxu0  ;;  %3459 = vst [vmem:[%s5872_s12 + $0x68] sm:$0xff] %v3443_v3  ;;  %v4168_v7 = vpop.f32.mrb[12].mxu1 }
 0x7ae   : > { %v4145_v52 = vpop.f32.mrb[13].mxu0  ;;  %v4169_v6 = vpop.f32.mrb[13].mxu1 }
 0x7af   : > { %v4146_v43 = vadd.f32 %v4145_v52, %v4144_v40  ;;  %v4147_v15 = vpop.f32.mrb[14].mxu0  ;;  %v4170_v47 = vadd.f32 %v4169_v6, %v4168_v7  ;;  %v4171_v9 = vpop.f32.mrb[14].mxu1 }
 0x7b0   : > { %v4148_v54 = vpop.f32.mrb[15].mxu0  ;;  %v4172_v63 = vpop.f32.mrb[15].mxu1 }
 0x7b1   : > { %v3436_v58 = vadd.f32 %v4146_v43, %v3195_v37  ;;  %v4149_v4 = vadd.f32 %v4148_v54, %v4147_v15  ;;  %v3444_v39 = vadd.f32 %v4170_v47, %v3203_v57  ;;  %v4173_v5 = vadd.f32 %v4172_v63, %v4171_v9 }
 0x7b3   : > { %3452 = vst [vmem:[%s5872_s12 + $0x30] sm:$0xff] %v3436_v58  ;;  %v3437_v10 = vadd.f32 %v4149_v4, %v3196_v49  ;;  %3460 = vst [vmem:[%s5872_s12 + $0x70] sm:$0xff] %v3444_v39  ;;  %v3445_v38 = vadd.f32 %v4173_v5, %v3204_v44 }
 0x7b5   : > { %3453 = vst [vmem:[%s5872_s12 + $0x38] sm:$0xff] %v3437_v10  ;;  %3461 = vst [vmem:[%s5872_s12 + $0x78] sm:$0xff] %v3445_v38 }
 0x7b6 PF: > { %s6499_s25 = sld [smem:[#allocation36_spill]]  ;;  %s3476_s24 = sshll.u32 %s5872_s12, 4  ;;  %s6314_s24 = int_to_ptr.vmem [resolvable:$true] %s3476_s24 }
 0x7b7   : > { %s6500_s27 = sld [smem:[#allocation54_spill]]  ;;  %s3463_s28 = scalar_lea.sflag [#allocation9], %s5695_s14 }
 0x7b8   : > { %s4976_s2 = scalar_lea.vmem %s6314_s24, 2048  ;;  %p6502_p13 = scmp.ne.s32.totalorder %s6465_s5, 0 }
 0x7b9   : > { %p4977_p7 = scmp.ne.s32.totalorder %s6314_s24, %s4976_s2  ;;  %s5149_s16 = smov [#allocation22]  }
 0x7ba   : > { %s4980_s9 = sshll.u32 %s5149_s16, 4  ;;  %s4981_s9 = int_to_ptr.vmem [resolvable:$false] %s4980_s9 }
 0x7bb   : > { %p4978_p9 = pnand %p4977_p7, %p6502_p13  ;;  %s4982_s22 = scalar_lea.vmem %s4981_s9, 4096 }
 0x7bc   : > { %s3933_s23 = sshll.u32 %s6499_s25, 11  ;;  %p4983_p8 = scmp.lt.s32.totalorder %s6314_s24, %s4981_s9 }
 0x7bd   : > { %s6501_s21 = smov %s6500_s27  ;;  %s6311_s1 = scalar_lea.hbm %s6500_s27, %s3933_s23 }
 0x7be   : > { %p4979_p4 = pneg %p4978_p9  ;;  %p4984_p11 = scmp.lt.s32.totalorder %s4982_s22, %s4976_s2 }
 0x7c0   : > { %p4985_p10 = por %p4984_p11, %p4983_p8 }
 0x7c2   : > { %p4986_p6 = pnand %p4985_p10, %p4979_p4 }
 0x7c4   : > { %4989 = shalt.err (!%p4986_p6)
}
 0x7c5   : > { %s4990_s12 = scalar_lea.hbm %s6311_s1, 2048  ;;  %s4994_s19 = scalar_lea.hbm %s6501_s21, 4096 }
 0x7c6   : > { %p4991_p1 = scmp.ne.s32.totalorder %s6311_s1, %s4990_s12  ;;  %p4995_p2 = scmp.lt.u32.totalorder %s6311_s1, %s6501_s21 }
 0x7c7   : > { %p4996_p5 = scmp.lt.u32.totalorder %s4994_s19, %s4990_s12  ;;  %p4998_p7 = scmp.lt.u32.totalorder %s4990_s12, %s6311_s1 }
 0x7c8   : > { %p4992_p0 = pnand %p4991_p1, %p6502_p13 }
 0x7c9   : > { %p4997_p12 = por %p4996_p5, %p4995_p2 }
 0x7ca   : > { %p4993_p3 = pneg %p4992_p0 }
 0x7cb   : > { %p4999_p9 = por %p4998_p7, %p4997_p12 }
 0x7cd   : > { %p5000_p4 = pnand %p4999_p9, %p4993_p3 }
 0x7cf   : > { %5003 = shalt.err (!%p5000_p4)
}
 0x7d0   : > { %s5150_s25 = smov 128   ;;  %s5151_s23 = smov 8  }
 0x7d1   : > { %4342 = dma.vmem_to_hbm [thread:$0]  (%p6502_p13), %s6314_s24, 2048, %s6311_s1, %s3463_s28, %s5150_s25, %s5150_s25, %s5151_s23  }
 0x7d2 PF: > { %s6503_s8 = sld [smem:[#allocation34_spill]]  ;;  %s6504_s4 = sld [smem:[#allocation40_spill]] }
 0x7d3   : > { %p4384_p8 = scmp.ge.s32.totalorder %s5128_s17, 2 }
 0x7d8   : > { %s3491_s27 = sand.u32 1, %s6503_s8   ;;  %p6505_p11 = scmp.ne.s32.totalorder %s6504_s4, 0 }
 0x7d9   : > { %s3492_s2 = scalar_lea.sflag [#allocation9], %s3491_s27 }
 0x7da   : > { %p4374_p10 = pnand %p4384_p8, %p6505_p11 }
 0x7dc   : > { %5083 = dma.done.wait (!%p4374_p10), %s3492_s2, 2048  }
 0x7dd   : > { %5085 = vsyncadd (!%p4374_p10), %s3492_s2, 4294965248  ;;  %s46_s17 = sadd.s32 1, %s5128_s17   ;;  %s6506_s16 = sld [smem:[#allocation33_spill]] }
 0x7de   : > { %p43_p6 = scmp.ge.s32.totalorder %s46_s17, 6   ;;  %s6507_s27 = sld [smem:[#allocation43_spill]] }
 0x7df   : > { %s6508_s14 = sld [smem:[#allocation37_spill]]  ;;  %s6509_s5 = sld [smem:[#allocation42_spill]] }
 0x7e0   : > { %s6510_s1 = sld [smem:[#allocation44_spill]]  ;;  %s6511_s0 = smov %s5092_s26 }
 0x7e1   : > { %s6513_s28 = smov %s5104_s29  ;;  %s6514_s29 = smov %s5108_s30 }
 0x7e2   : > { %s6515_s30 = smov %s5520_s11  ;;  %s6516_s13 = smov %s5120_s15 }
 0x7e3   : > { %s6512_s26 = smov %s6506_s16  ;;  %45 = sbr.rel (!%p43_p6) target bundleno = 34 (0x22), region = 218 }
 0x7e5   : > { %s6517_s15 = smov %s6509_s5 }
 0x7e6   : > { %s6518_s16 = smov %s6510_s1 }
 0x7ea   :  { %3497 = vsyncpa [#allocation8], 1 }
 0x7eb   :  { %3499 = vsyncpa [#allocation8 + $0x1], 1 }
 0x7ec   :  { %3500 = vsyncpa [#allocation11], 1 }
 0x7ed   :  { %3502 = vsyncpa [#allocation11 + $0x1], 1 }
 0x7ee   :  { %3503 = vsyncpa [#allocation14], 1 }
 0x7ef   :  { %3505 = vsyncpa [#allocation14 + $0x1], 1 }
 0x7f0   :  { %3506 = vsyncpa [#allocation17], 1 }
 0x7f1   :  { %3508 = vsyncpa [#allocation17 + $0x1], 1 }
 0x7f2   :  { %3509 = vsyncpa [#allocation20], 1 }
 0x7f3   :  { %3511 = vsyncpa [#allocation20 + $0x1], 1 }
 0x7f4   :  { %3512 = vsyncpa [#allocation9], 1 }
 0x7f5   :  { %3514 = vsyncpa [#allocation9 + $0x1], 1 }

</bundles_post_ra>
